<compile_context>
chip_gen: v7x
topology: tpu7x:2x2x1
jax: 0.10.0
libtpu: 0.0.40
codegen_flags: <defaults>
</compile_context>

<pallas_src>
import functools

import numpy as np

import jax
import jax.numpy as jnp
from jax import lax
from jax.experimental import pallas as pl
from jax.experimental.pallas import tpu as pltpu

EPS = 1e-5                       # PyTorch BatchNorm2d default eps
MXU_PREC = jax.lax.Precision.HIGHEST   # keep f32 taps exact through the MXU
                                        # (cost is negligible at these sizes)


def _dot(a, b):
    return jnp.dot(a, b, preferred_element_type=jnp.float32, precision=MXU_PREC)


def _bn_relu(t, bias, gamma, beta, inv_count):
    # conv bias + training-mode BatchNorm + ReLU in a single data pass:
    # biased var = E[t^2] - E[t]^2 (matches PyTorch normalization).
    t = t + bias
    s = jnp.sum(t, axis=1, keepdims=True)
    ss = jnp.sum(t * t, axis=1, keepdims=True)
    mean = s * inv_count
    var = ss * inv_count - mean * mean
    y = gamma * (t - mean) * lax.rsqrt(var + EPS) + beta
    return jnp.maximum(y, 0.0)


def stem_kernel(x_ref, w1_ref, wc1_ref, wc2_ref, w3_ref, m0_ref, m1_ref,
                s01_ref, s12_ref, p16_ref, p32_ref, o_ref, *, n, h, w):
    p0 = n * h * w
    ha, wa = h // 2, w // 2
    pa = n * ha * wa
    pb = pa // 4
    inv_pa = 1.0 / float(pa)
    inv_pb = 1.0 / float(pb)

    x = x_ref[...]                 # (1, p0)
    m0 = m0_ref[...]               # (9, p0)  tap validity masks, full res
    m1 = m1_ref[...]               # (9, pa)  tap validity masks, half res
    sel01 = s01_ref[...]           # (p0, pa) even-even stride-2 selection
    sel12 = s12_ref[...]           # (pa, pb)
    p16 = p16_ref[...]             # (16, 9): [b,g,e] x {stem1, conv1, conv2}
    p32 = p32_ref[...]             # (32, 3): [b,g,e] stem3

    # ---- stem1: 3x3 / stride 2 / pad 1, 1 -> 16 channels -------------------
    # stride-1 taps via lane rotation, one elementwise mask multiply, all nine
    # taps reduced by a single (16,9)x(9,p0) matmul, then stride-2 subsample.
    taps = []
    for kh in range(3):
        for kw in range(3):
            s = (kh - 1) * w + (kw - 1)
            taps.append(x if s == 0 else pltpu.roll(x, shift=(-s) % p0, axis=1))
    patches = jnp.concatenate(taps, axis=0) * m0               # (9, p0)
    y_full = _dot(w1_ref[...], patches)                        # (16, p0)
    y1 = _dot(y_full, sel01)                                   # (16, pa)
    y1 = _bn_relu(y1, p16[:, 0:1], p16[:, 1:2], p16[:, 2:3], inv_pa)

    # ---- branch A: 2x2 / stride 2 maxpool -----------------------------------
    # running max of the 4 window taps (wrapped lanes land on odd rows/cols,
    # which the even-even subsample discards), then the same selection matmul.
    zmax = jnp.maximum(
        jnp.maximum(y1, pltpu.roll(y1, shift=pa - 1, axis=1)),
        jnp.maximum(pltpu.roll(y1, shift=pa - wa, axis=1),
                    pltpu.roll(y1, shift=pa - wa - 1, axis=1)))
    x1 = _dot(zmax, sel12)                                     # (16, pb)

    # ---- branch B: 1x1 conv -> BN -> ReLU ------------------------------------
    t = _dot(wc1_ref[...], y1)                                 # (16, pa)
    t = _bn_relu(t, p16[:, 3:4], p16[:, 4:5], p16[:, 5:6], inv_pa)

    # 3x3 / stride 2 / pad 1, 16 -> 16: nine masked taps stacked along K so the
    # whole conv is one (16,144)x(144,pa) MXU matmul, then subsample.
    taps = []
    for kh in range(3):
        for kw in range(3):
            k = kh * 3 + kw
            s = (kh - 1) * wa + (kw - 1)
            ts = t if s == 0 else pltpu.roll(t, shift=(-s) % pa, axis=1)
            taps.append(ts * m1[k:k + 1, :])
    big = jnp.concatenate(taps, axis=0)                        # (144, pa)
    y2 = _dot(wc2_ref[...], big)                               # (16, pa)
    x2 = _dot(y2, sel12)                                       # (16, pb)
    x2 = _bn_relu(x2, p16[:, 6:7], p16[:, 7:8], p16[:, 8:9], inv_pb)

    # ---- concat -> 1x1 conv (32 -> 32) -> BN -> ReLU, one dense store --------
    cat = jnp.concatenate([x1, x2], axis=0)                    # (32, pb)
    y3 = _dot(w3_ref[...], cat)
    y3 = _bn_relu(y3, p32[:, 0:1], p32[:, 1:2], p32[:, 2:3], inv_pb)
    o_ref[...] = y3


# ----------------------------- host-side helpers -----------------------------

def _tap_masks(n, h, w):
    """(9, n*h*w) 0/1 masks: validity of each 3x3 tap at every spatial site."""
    hh = np.arange(h)[:, None]
    ww = np.arange(w)[None, :]
    rows = []
    for kh in range(3):
        for kw in range(3):
            dh, dw = kh - 1, kw - 1
            v = ((hh + dh >= 0) & (hh + dh < h) &
                 (ww + dw >= 0) & (ww + dw < w)).astype(np.float32)
            rows.append(np.tile(v.reshape(-1), n))
    return jnp.asarray(np.stack(rows, axis=0))


def _stride2_select(n, h, w):
    """(n*h*w, n*(h//2)*(w//2)) 0/1 matrix picking even-row / even-col sites."""
    ho, wo = h // 2, w // 2
    sel = np.zeros((n * h * w, n * ho * wo), np.float32)
    for b in range(n):
        for i in range(ho):
            for j in range(wo):
                sel[b * h * w + 2 * i * w + 2 * j,
                    b * ho * wo + i * wo + j] = 1.0
    return jnp.asarray(sel)


def stem_block(x_nchw, params):
    n, c, h, w = x_nchw.shape
    assert c == 1 and h % 4 == 0 and w % 4 == 0
    ha, wa, hb, wb = h // 2, w // 2, h // 4, w // 4
    p0, pa, pb = n * h * w, n * ha * wa, n * hb * wb
    (w1, b1, g1, e1, wc1, bc1, gc1, ec1,
     wc2, bc2, gc2, ec2, w3, b3, g3, e3) = params

    x2d = x_nchw.reshape(1, p0)                     # C == 1: free reshape
    w1f = w1.reshape(16, 9)                         # (O,1,3,3) -> (O, kh*3+kw)
    wc1f = wc1.reshape(16, 16)
    wc2f = jnp.transpose(wc2, (0, 2, 3, 1)).reshape(16, 144)   # (O,(kh,kw,I))
    w3f = w3.reshape(32, 32)
    p16 = jnp.stack([b1, g1, e1, bc1, gc1, ec1, bc2, gc2, ec2], axis=1)
    p32 = jnp.stack([b3, g3, e3], axis=1)

    m0 = _tap_masks(n, h, w)                        # (9, p0)
    m1 = _tap_masks(n, ha, wa)                      # (9, pa)
    s01 = _stride2_select(n, h, w)                  # (p0, pa)
    s12 = _stride2_select(n, ha, wa)                # (pa, pb)

    def full(shape):
        return pl.BlockSpec(shape, lambda i, _s=shape: (0,) * len(_s))

    kern = functools.partial(stem_kernel, n=n, h=h, w=w)
    out2d = pl.pallas_call(
        kern,
        out_shape=jax.ShapeDtypeStruct((32, pb), jnp.float32),
        grid=(1,),
        in_specs=[full((1, p0)), full((16, 9)), full((16, 16)),
                  full((16, 144)), full((32, 32)), full((9, p0)),
                  full((9, pa)), full((p0, pa)), full((pa, pb)),
                  full((16, 9)), full((32, 3))],
        out_specs=full((32, pb)),
        compiler_params=pltpu.CompilerParams(
            dimension_semantics=("arbitrary",),
            vmem_limit_bytes=64 * 1024 * 1024),
    )(x2d, w1f, wc1f, wc2f, w3f, m0, m1, s01, s12, p16, p32)

    # tiny (32 x pb) slab; reshape/transpose back to NCHW is negligible here
    return out2d.reshape(32, n, hb, wb).transpose(1, 0, 2, 3)


# ------------------------------- pure-JAX reference ---------------------------

def reference(x, params):
    """NCHW reference matching the PyTorch forward in training mode."""
    (w1, b1, g1, e1, wc1, bc1, gc1, ec1,
     wc2, bc2, gc2, ec2, w3, b3, g3, e3) = params

    def conv(z, wgt, bias, stride, pad):
        out = lax.conv_general_dilated(
            z, wgt, (stride, stride), [(pad, pad), (pad, pad)],
            dimension_numbers=('NCHW', 'OIHW', 'NCHW'),
            precision=lax.Precision.HIGHEST)
        return out + bias[None, :, None, None]

    def bn_relu(z, gamma, beta):
        mean = z.mean(axis=(0, 2, 3), keepdims=True)
        var = ((z - mean) ** 2).mean(axis=(0, 2, 3), keepdims=True)
        y = (gamma[None, :, None, None] * (z - mean) / jnp.sqrt(var + EPS)
             + beta[None, :, None, None])
        return jnp.maximum(y, 0.0)

    y = bn_relu(conv(x, w1, b1, 2, 1), g1, e1)
    x1 = lax.reduce_window(y, -jnp.inf, lax.max,
                           (1, 1, 2, 2), (1, 1, 2, 2), 'VALID')
    x2 = bn_relu(conv(y, wc1, bc1, 1, 0), gc1, ec1)
    x2 = bn_relu(conv(x2, wc2, bc2, 2, 1), gc2, ec2)
    return bn_relu(conv(jnp.concatenate([x1, x2], axis=1), w3, b3, 1, 0),
                   g3, e3)


def make_params(key):
    ks = jax.random.split(key, 16)

    def wgt(k, shape, fan_in):
        return jax.random.normal(k, shape, jnp.float32) / np.sqrt(fan_in)

    w1 = wgt(ks[0], (16, 1, 3, 3), 9.0)
    wc1 = wgt(ks[1], (16, 16, 1, 1), 16.0)
    wc2 = wgt(ks[2], (16, 16, 3, 3), 144.0)
    w3 = wgt(ks[3], (32, 32, 1, 1), 32.0)
    b1, bc1, bc2 = (0.1 * jax.random.normal(ks[4 + i], (16,), jnp.float32)
                    for i in range(3))
    b3 = 0.1 * jax.random.normal(ks[7], (32,), jnp.float32)
    # non-default BatchNorm affine params so the gamma/beta paths are validated
    g1, gc1, gc2 = (1.0 + 0.3 * jax.random.normal(ks[8 + i], (16,), jnp.float32)
                    for i in range(3))
    g3 = 1.0 + 0.3 * jax.random.normal(ks[11], (32,), jnp.float32)
    e1, ec1, ec2 = (0.1 * jax.random.normal(ks[12 + i], (16,), jnp.float32)
                    for i in range(3))
    e3 = 0.1 * jax.random.normal(ks[15], (32,), jnp.float32)
    return (w1, b1, g1, e1, wc1, bc1, gc1, ec1,
            wc2, bc2, gc2, ec2, w3, b3, g3, e3)


if __name__ == "__main__":
    key = jax.random.PRNGKey(0)
    kx, kp = jax.random.split(key)
    N, C, H, W = 2, 1, 16, 16
    x = jax.random.normal(kx, (N, C, H, W), jnp.float32)
    params = make_params(kp)

    out = jax.block_until_ready(stem_block(x, params))
    ref = jax.block_until_ready(reference(x, params))

    assert out.shape == (N, 32, H // 4, W // 4), out.shape
    max_err = float(jnp.max(jnp.abs(out - ref)))
    assert jnp.allclose(out, ref, atol=1e-2, rtol=1e-2), max_err
    print("KERNEL_OK")
</pallas_src>

<mosaic_0001>
module attributes {stable_mosaic.version = 11 : i64} {
  func.func @stem_kernel(%arg0: i32, %arg1: memref<1x512xf32, #tpu.memory_space<vmem>>, %arg2: memref<16x9xf32, #tpu.memory_space<vmem>>, %arg3: memref<16x16xf32, #tpu.memory_space<vmem>>, %arg4: memref<16x144xf32, #tpu.memory_space<vmem>>, %arg5: memref<32x32xf32, #tpu.memory_space<vmem>>, %arg6: memref<9x512xf32, #tpu.memory_space<vmem>>, %arg7: memref<9x128xf32, #tpu.memory_space<vmem>>, %arg8: memref<512x128xf32, #tpu.memory_space<vmem>>, %arg9: memref<128x32xf32, #tpu.memory_space<vmem>>, %arg10: memref<16x9xf32, #tpu.memory_space<vmem>>, %arg11: memref<32x3xf32, #tpu.memory_space<vmem>>, %arg12: memref<32x32xf32, #tpu.memory_space<vmem>>) attributes {dimension_semantics = [#tpu.dimension_semantics<arbitrary>], iteration_bounds = array<i64: 1>, scalar_prefetch = 0 : i64, scratch_operands = 0 : i64, tpu.core_type = #tpu.core_type<tc>, window_params = [{pipeline_mode = #tpu.pipeline_mode<synchronous>, transform_indices = @transform_0, window_bounds = array<i64: 1, 512>}, {pipeline_mode = #tpu.pipeline_mode<synchronous>, transform_indices = @transform_1, window_bounds = array<i64: 16, 9>}, {pipeline_mode = #tpu.pipeline_mode<synchronous>, transform_indices = @transform_2, window_bounds = array<i64: 16, 16>}, {pipeline_mode = #tpu.pipeline_mode<synchronous>, transform_indices = @transform_3, window_bounds = array<i64: 16, 144>}, {pipeline_mode = #tpu.pipeline_mode<synchronous>, transform_indices = @transform_4, window_bounds = array<i64: 32, 32>}, {pipeline_mode = #tpu.pipeline_mode<synchronous>, transform_indices = @transform_5, window_bounds = array<i64: 9, 512>}, {pipeline_mode = #tpu.pipeline_mode<synchronous>, transform_indices = @transform_6, window_bounds = array<i64: 9, 128>}, {pipeline_mode = #tpu.pipeline_mode<synchronous>, transform_indices = @transform_7, window_bounds = array<i64: 512, 128>}, {pipeline_mode = #tpu.pipeline_mode<synchronous>, transform_indices = @transform_8, window_bounds = array<i64: 128, 32>}, {pipeline_mode = #tpu.pipeline_mode<synchronous>, transform_indices = @transform_9, window_bounds = array<i64: 16, 9>}, {pipeline_mode = #tpu.pipeline_mode<synchronous>, transform_indices = @transform_10, window_bounds = array<i64: 32, 3>}, {pipeline_mode = #tpu.pipeline_mode<synchronous>, transform_indices = @transform_11, window_bounds = array<i64: 32, 32>}]} {
    %c0 = arith.constant 0 : index
    %c0_0 = arith.constant 0 : index
    %0 = vector.load %arg1[%c0, %c0_0] : memref<1x512xf32, #tpu.memory_space<vmem>>, vector<1x512xf32>
    %c0_1 = arith.constant 0 : index
    %c0_2 = arith.constant 0 : index
    %1 = vector.load %arg6[%c0_1, %c0_2] : memref<9x512xf32, #tpu.memory_space<vmem>>, vector<9x512xf32>
    %c0_3 = arith.constant 0 : index
    %c0_4 = arith.constant 0 : index
    %2 = vector.load %arg7[%c0_3, %c0_4] : memref<9x128xf32, #tpu.memory_space<vmem>>, vector<9x128xf32>
    %c0_5 = arith.constant 0 : index
    %c0_6 = arith.constant 0 : index
    %3 = vector.load %arg8[%c0_5, %c0_6] : memref<512x128xf32, #tpu.memory_space<vmem>>, vector<512x128xf32>
    %c0_7 = arith.constant 0 : index
    %c0_8 = arith.constant 0 : index
    %4 = vector.load %arg9[%c0_7, %c0_8] : memref<128x32xf32, #tpu.memory_space<vmem>>, vector<128x32xf32>
    %c0_9 = arith.constant 0 : index
    %c0_10 = arith.constant 0 : index
    %5 = vector.load %arg10[%c0_9, %c0_10] : memref<16x9xf32, #tpu.memory_space<vmem>>, vector<16x9xf32>
    %c0_11 = arith.constant 0 : index
    %c0_12 = arith.constant 0 : index
    %6 = vector.load %arg11[%c0_11, %c0_12] : memref<32x3xf32, #tpu.memory_space<vmem>>, vector<32x3xf32>
    %c17_i32 = arith.constant 17 : i32
    %7 = tpu.dynamic_rotate %0 by %c17_i32 dim 1 : vector<1x512xf32>, i32 -> vector<1x512xf32>
    %c16_i32 = arith.constant 16 : i32
    %8 = tpu.dynamic_rotate %0 by %c16_i32 dim 1 : vector<1x512xf32>, i32 -> vector<1x512xf32>
    %c15_i32 = arith.constant 15 : i32
    %9 = tpu.dynamic_rotate %0 by %c15_i32 dim 1 : vector<1x512xf32>, i32 -> vector<1x512xf32>
    %c1_i32 = arith.constant 1 : i32
    %10 = tpu.dynamic_rotate %0 by %c1_i32 dim 1 : vector<1x512xf32>, i32 -> vector<1x512xf32>
    %c511_i32 = arith.constant 511 : i32
    %11 = tpu.dynamic_rotate %0 by %c511_i32 dim 1 : vector<1x512xf32>, i32 -> vector<1x512xf32>
    %c497_i32 = arith.constant 497 : i32
    %12 = tpu.dynamic_rotate %0 by %c497_i32 dim 1 : vector<1x512xf32>, i32 -> vector<1x512xf32>
    %c496_i32 = arith.constant 496 : i32
    %13 = tpu.dynamic_rotate %0 by %c496_i32 dim 1 : vector<1x512xf32>, i32 -> vector<1x512xf32>
    %c495_i32 = arith.constant 495 : i32
    %14 = tpu.dynamic_rotate %0 by %c495_i32 dim 1 : vector<1x512xf32>, i32 -> vector<1x512xf32>
    %15 = tpu.concatenate %7, %8, %9, %10, %0, %11, %12, %13, %14 in 0 : vector<1x512xf32>, vector<1x512xf32>, vector<1x512xf32>, vector<1x512xf32>, vector<1x512xf32>, vector<1x512xf32>, vector<1x512xf32>, vector<1x512xf32>, vector<1x512xf32> -> vector<9x512xf32>
    %16 = arith.mulf %15, %1 : vector<9x512xf32>
    %c0_13 = arith.constant 0 : index
    %c0_14 = arith.constant 0 : index
    %17 = vector.load %arg2[%c0_13, %c0_14] : memref<16x9xf32, #tpu.memory_space<vmem>>, vector<16x9xf32>
    %cst = arith.constant dense<0.000000e+00> : vector<16x512xf32>
    %18 = tpu.matmul %17, %16, %cst {dimension_numbers = #tpu.dot_dimension_numbers<[1], [0], [0], [1], [0, 0, 1, 1], [], []>, precision = #tpu.contract_precision<fp32>} : vector<16x9xf32>, vector<9x512xf32>, vector<16x512xf32> -> vector<16x512xf32>
    %cst_15 = arith.constant dense<0.000000e+00> : vector<16x128xf32>
    %19 = tpu.matmul %18, %3, %cst_15 {dimension_numbers = #tpu.dot_dimension_numbers<[1], [0], [0], [1], [0, 0, 1, 1], [], []>, precision = #tpu.contract_precision<fp32>} : vector<16x512xf32>, vector<512x128xf32>, vector<16x128xf32> -> vector<16x128xf32>
    %20 = vector.extract_strided_slice %5 {offsets = [0, 0], sizes = [16, 1], strides = [1, 1]} : vector<16x9xf32> to vector<16x1xf32>
    %21 = vector.extract_strided_slice %5 {offsets = [0, 1], sizes = [16, 1], strides = [1, 1]} : vector<16x9xf32> to vector<16x1xf32>
    %22 = vector.extract_strided_slice %5 {offsets = [0, 2], sizes = [16, 1], strides = [1, 1]} : vector<16x9xf32> to vector<16x1xf32>
    %23 = vector.broadcast %20 : vector<16x1xf32> to vector<16x128xf32>
    %24 = arith.addf %19, %23 : vector<16x128xf32>
    %cst_16 = arith.constant dense<0.000000e+00> : vector<16xf32>
    %25 = vector.multi_reduction <add>, %24, %cst_16 [1] : vector<16x128xf32> to vector<16xf32>
    %26 = vector.shape_cast %25 : vector<16xf32> to vector<16x1xf32>
    %27 = arith.mulf %24, %24 : vector<16x128xf32>
    %cst_17 = arith.constant dense<0.000000e+00> : vector<16xf32>
    %28 = vector.multi_reduction <add>, %27, %cst_17 [1] : vector<16x128xf32> to vector<16xf32>
    %29 = vector.shape_cast %28 : vector<16xf32> to vector<16x1xf32>
    %cst_18 = arith.constant 7.812500e-03 : f32
    %30 = vector.broadcast %cst_18 : f32 to vector<16x1xf32>
    %31 = arith.mulf %26, %30 : vector<16x1xf32>
    %cst_19 = arith.constant 7.812500e-03 : f32
    %32 = vector.broadcast %cst_19 : f32 to vector<16x1xf32>
    %33 = arith.mulf %29, %32 : vector<16x1xf32>
    %34 = arith.mulf %31, %31 : vector<16x1xf32>
    %35 = arith.subf %33, %34 : vector<16x1xf32>
    %36 = vector.broadcast %31 : vector<16x1xf32> to vector<16x128xf32>
    %37 = arith.subf %24, %36 : vector<16x128xf32>
    %38 = vector.broadcast %21 : vector<16x1xf32> to vector<16x128xf32>
    %39 = arith.mulf %38, %37 : vector<16x128xf32>
    %cst_20 = arith.constant 9.99999974E-6 : f32
    %40 = vector.broadcast %cst_20 : f32 to vector<16x1xf32>
    %41 = arith.addf %35, %40 : vector<16x1xf32>
    %42 = math.rsqrt %41 : vector<16x1xf32>
    %43 = vector.broadcast %42 : vector<16x1xf32> to vector<16x128xf32>
    %44 = arith.mulf %39, %43 : vector<16x128xf32>
    %45 = vector.broadcast %22 : vector<16x1xf32> to vector<16x128xf32>
    %46 = arith.addf %44, %45 : vector<16x128xf32>
    %cst_21 = arith.constant 0.000000e+00 : f32
    %47 = vector.broadcast %cst_21 : f32 to vector<16x128xf32>
    %48 = arith.maximumf %46, %47 : vector<16x128xf32>
    %c127_i32 = arith.constant 127 : i32
    %49 = tpu.dynamic_rotate %48 by %c127_i32 dim 1 : vector<16x128xf32>, i32 -> vector<16x128xf32>
    %50 = arith.maximumf %48, %49 : vector<16x128xf32>
    %c120_i32 = arith.constant 120 : i32
    %51 = tpu.dynamic_rotate %48 by %c120_i32 dim 1 : vector<16x128xf32>, i32 -> vector<16x128xf32>
    %c119_i32 = arith.constant 119 : i32
    %52 = tpu.dynamic_rotate %48 by %c119_i32 dim 1 : vector<16x128xf32>, i32 -> vector<16x128xf32>
    %53 = arith.maximumf %51, %52 : vector<16x128xf32>
    %54 = arith.maximumf %50, %53 : vector<16x128xf32>
    %cst_22 = arith.constant dense<0.000000e+00> : vector<16x32xf32>
    %55 = tpu.matmul %54, %4, %cst_22 {dimension_numbers = #tpu.dot_dimension_numbers<[1], [0], [0], [1], [0, 0, 1, 1], [], []>, precision = #tpu.contract_precision<fp32>} : vector<16x128xf32>, vector<128x32xf32>, vector<16x32xf32> -> vector<16x32xf32>
    %c0_23 = arith.constant 0 : index
    %c0_24 = arith.constant 0 : index
    %56 = vector.load %arg3[%c0_23, %c0_24] : memref<16x16xf32, #tpu.memory_space<vmem>>, vector<16x16xf32>
    %cst_25 = arith.constant dense<0.000000e+00> : vector<16x128xf32>
    %57 = tpu.matmul %56, %48, %cst_25 {dimension_numbers = #tpu.dot_dimension_numbers<[1], [0], [0], [1], [0, 0, 1, 1], [], []>, precision = #tpu.contract_precision<fp32>} : vector<16x16xf32>, vector<16x128xf32>, vector<16x128xf32> -> vector<16x128xf32>
    %58 = vector.extract_strided_slice %5 {offsets = [0, 3], sizes = [16, 1], strides = [1, 1]} : vector<16x9xf32> to vector<16x1xf32>
    %59 = vector.extract_strided_slice %5 {offsets = [0, 4], sizes = [16, 1], strides = [1, 1]} : vector<16x9xf32> to vector<16x1xf32>
    %60 = vector.extract_strided_slice %5 {offsets = [0, 5], sizes = [16, 1], strides = [1, 1]} : vector<16x9xf32> to vector<16x1xf32>
    %61 = vector.broadcast %58 : vector<16x1xf32> to vector<16x128xf32>
    %62 = arith.addf %57, %61 : vector<16x128xf32>
    %cst_26 = arith.constant dense<0.000000e+00> : vector<16xf32>
    %63 = vector.multi_reduction <add>, %62, %cst_26 [1] : vector<16x128xf32> to vector<16xf32>
    %64 = vector.shape_cast %63 : vector<16xf32> to vector<16x1xf32>
    %65 = arith.mulf %62, %62 : vector<16x128xf32>
    %cst_27 = arith.constant dense<0.000000e+00> : vector<16xf32>
    %66 = vector.multi_reduction <add>, %65, %cst_27 [1] : vector<16x128xf32> to vector<16xf32>
    %67 = vector.shape_cast %66 : vector<16xf32> to vector<16x1xf32>
    %cst_28 = arith.constant 7.812500e-03 : f32
    %68 = vector.broadcast %cst_28 : f32 to vector<16x1xf32>
    %69 = arith.mulf %64, %68 : vector<16x1xf32>
    %cst_29 = arith.constant 7.812500e-03 : f32
    %70 = vector.broadcast %cst_29 : f32 to vector<16x1xf32>
    %71 = arith.mulf %67, %70 : vector<16x1xf32>
    %72 = arith.mulf %69, %69 : vector<16x1xf32>
    %73 = arith.subf %71, %72 : vector<16x1xf32>
    %74 = vector.broadcast %69 : vector<16x1xf32> to vector<16x128xf32>
    %75 = arith.subf %62, %74 : vector<16x128xf32>
    %76 = vector.broadcast %59 : vector<16x1xf32> to vector<16x128xf32>
    %77 = arith.mulf %76, %75 : vector<16x128xf32>
    %cst_30 = arith.constant 9.99999974E-6 : f32
    %78 = vector.broadcast %cst_30 : f32 to vector<16x1xf32>
    %79 = arith.addf %73, %78 : vector<16x1xf32>
    %80 = math.rsqrt %79 : vector<16x1xf32>
    %81 = vector.broadcast %80 : vector<16x1xf32> to vector<16x128xf32>
    %82 = arith.mulf %77, %81 : vector<16x128xf32>
    %83 = vector.broadcast %60 : vector<16x1xf32> to vector<16x128xf32>
    %84 = arith.addf %82, %83 : vector<16x128xf32>
    %cst_31 = arith.constant 0.000000e+00 : f32
    %85 = vector.broadcast %cst_31 : f32 to vector<16x128xf32>
    %86 = arith.maximumf %84, %85 : vector<16x128xf32>
    %c9_i32 = arith.constant 9 : i32
    %87 = tpu.dynamic_rotate %86 by %c9_i32 dim 1 : vector<16x128xf32>, i32 -> vector<16x128xf32>
    %88 = vector.extract_strided_slice %2 {offsets = [0, 0], sizes = [1, 128], strides = [1, 1]} : vector<9x128xf32> to vector<1x128xf32>
    %89 = vector.broadcast %88 : vector<1x128xf32> to vector<16x128xf32>
    %90 = arith.mulf %87, %89 : vector<16x128xf32>
    %c8_i32 = arith.constant 8 : i32
    %91 = tpu.dynamic_rotate %86 by %c8_i32 dim 1 : vector<16x128xf32>, i32 -> vector<16x128xf32>
    %92 = vector.extract_strided_slice %2 {offsets = [1, 0], sizes = [1, 128], strides = [1, 1]} : vector<9x128xf32> to vector<1x128xf32>
    %93 = vector.broadcast %92 : vector<1x128xf32> to vector<16x128xf32>
    %94 = arith.mulf %91, %93 : vector<16x128xf32>
    %c7_i32 = arith.constant 7 : i32
    %95 = tpu.dynamic_rotate %86 by %c7_i32 dim 1 : vector<16x128xf32>, i32 -> vector<16x128xf32>
    %96 = vector.extract_strided_slice %2 {offsets = [2, 0], sizes = [1, 128], strides = [1, 1]} : vector<9x128xf32> to vector<1x128xf32>
    %97 = vector.broadcast %96 : vector<1x128xf32> to vector<16x128xf32>
    %98 = arith.mulf %95, %97 : vector<16x128xf32>
    %c1_i32_32 = arith.constant 1 : i32
    %99 = tpu.dynamic_rotate %86 by %c1_i32_32 dim 1 : vector<16x128xf32>, i32 -> vector<16x128xf32>
    %100 = vector.extract_strided_slice %2 {offsets = [3, 0], sizes = [1, 128], strides = [1, 1]} : vector<9x128xf32> to vector<1x128xf32>
    %101 = vector.broadcast %100 : vector<1x128xf32> to vector<16x128xf32>
    %102 = arith.mulf %99, %101 : vector<16x128xf32>
    %103 = vector.extract_strided_slice %2 {offsets = [4, 0], sizes = [1, 128], strides = [1, 1]} : vector<9x128xf32> to vector<1x128xf32>
    %104 = vector.broadcast %103 : vector<1x128xf32> to vector<16x128xf32>
    %105 = arith.mulf %86, %104 : vector<16x128xf32>
    %c127_i32_33 = arith.constant 127 : i32
    %106 = tpu.dynamic_rotate %86 by %c127_i32_33 dim 1 : vector<16x128xf32>, i32 -> vector<16x128xf32>
    %107 = vector.extract_strided_slice %2 {offsets = [5, 0], sizes = [1, 128], strides = [1, 1]} : vector<9x128xf32> to vector<1x128xf32>
    %108 = vector.broadcast %107 : vector<1x128xf32> to vector<16x128xf32>
    %109 = arith.mulf %106, %108 : vector<16x128xf32>
    %c121_i32 = arith.constant 121 : i32
    %110 = tpu.dynamic_rotate %86 by %c121_i32 dim 1 : vector<16x128xf32>, i32 -> vector<16x128xf32>
    %111 = vector.extract_strided_slice %2 {offsets = [6, 0], sizes = [1, 128], strides = [1, 1]} : vector<9x128xf32> to vector<1x128xf32>
    %112 = vector.broadcast %111 : vector<1x128xf32> to vector<16x128xf32>
    %113 = arith.mulf %110, %112 : vector<16x128xf32>
    %c120_i32_34 = arith.constant 120 : i32
    %114 = tpu.dynamic_rotate %86 by %c120_i32_34 dim 1 : vector<16x128xf32>, i32 -> vector<16x128xf32>
    %115 = vector.extract_strided_slice %2 {offsets = [7, 0], sizes = [1, 128], strides = [1, 1]} : vector<9x128xf32> to vector<1x128xf32>
    %116 = vector.broadcast %115 : vector<1x128xf32> to vector<16x128xf32>
    %117 = arith.mulf %114, %116 : vector<16x128xf32>
    %c119_i32_35 = arith.constant 119 : i32
    %118 = tpu.dynamic_rotate %86 by %c119_i32_35 dim 1 : vector<16x128xf32>, i32 -> vector<16x128xf32>
    %119 = vector.extract_strided_slice %2 {offsets = [8, 0], sizes = [1, 128], strides = [1, 1]} : vector<9x128xf32> to vector<1x128xf32>
    %120 = vector.broadcast %119 : vector<1x128xf32> to vector<16x128xf32>
    %121 = arith.mulf %118, %120 : vector<16x128xf32>
    %122 = tpu.concatenate %90, %94, %98, %102, %105, %109, %113, %117, %121 in 0 : vector<16x128xf32>, vector<16x128xf32>, vector<16x128xf32>, vector<16x128xf32>, vector<16x128xf32>, vector<16x128xf32>, vector<16x128xf32>, vector<16x128xf32>, vector<16x128xf32> -> vector<144x128xf32>
    %c0_36 = arith.constant 0 : index
    %c0_37 = arith.constant 0 : index
    %123 = vector.load %arg4[%c0_36, %c0_37] : memref<16x144xf32, #tpu.memory_space<vmem>>, vector<16x144xf32>
    %cst_38 = arith.constant dense<0.000000e+00> : vector<16x128xf32>
    %124 = tpu.matmul %123, %122, %cst_38 {dimension_numbers = #tpu.dot_dimension_numbers<[1], [0], [0], [1], [0, 0, 1, 1], [], []>, precision = #tpu.contract_precision<fp32>} : vector<16x144xf32>, vector<144x128xf32>, vector<16x128xf32> -> vector<16x128xf32>
    %cst_39 = arith.constant dense<0.000000e+00> : vector<16x32xf32>
    %125 = tpu.matmul %124, %4, %cst_39 {dimension_numbers = #tpu.dot_dimension_numbers<[1], [0], [0], [1], [0, 0, 1, 1], [], []>, precision = #tpu.contract_precision<fp32>} : vector<16x128xf32>, vector<128x32xf32>, vector<16x32xf32> -> vector<16x32xf32>
    %126 = vector.extract_strided_slice %5 {offsets = [0, 6], sizes = [16, 1], strides = [1, 1]} : vector<16x9xf32> to vector<16x1xf32>
    %127 = vector.extract_strided_slice %5 {offsets = [0, 7], sizes = [16, 1], strides = [1, 1]} : vector<16x9xf32> to vector<16x1xf32>
    %128 = vector.extract_strided_slice %5 {offsets = [0, 8], sizes = [16, 1], strides = [1, 1]} : vector<16x9xf32> to vector<16x1xf32>
    %129 = vector.broadcast %126 : vector<16x1xf32> to vector<16x32xf32>
    %130 = arith.addf %125, %129 : vector<16x32xf32>
    %cst_40 = arith.constant dense<0.000000e+00> : vector<16xf32>
    %131 = vector.multi_reduction <add>, %130, %cst_40 [1] : vector<16x32xf32> to vector<16xf32>
    %132 = vector.shape_cast %131 : vector<16xf32> to vector<16x1xf32>
    %133 = arith.mulf %130, %130 : vector<16x32xf32>
    %cst_41 = arith.constant dense<0.000000e+00> : vector<16xf32>
    %134 = vector.multi_reduction <add>, %133, %cst_41 [1] : vector<16x32xf32> to vector<16xf32>
    %135 = vector.shape_cast %134 : vector<16xf32> to vector<16x1xf32>
    %cst_42 = arith.constant 3.125000e-02 : f32
    %136 = vector.broadcast %cst_42 : f32 to vector<16x1xf32>
    %137 = arith.mulf %132, %136 : vector<16x1xf32>
    %cst_43 = arith.constant 3.125000e-02 : f32
    %138 = vector.broadcast %cst_43 : f32 to vector<16x1xf32>
    %139 = arith.mulf %135, %138 : vector<16x1xf32>
    %140 = arith.mulf %137, %137 : vector<16x1xf32>
    %141 = arith.subf %139, %140 : vector<16x1xf32>
    %142 = vector.broadcast %137 : vector<16x1xf32> to vector<16x32xf32>
    %143 = arith.subf %130, %142 : vector<16x32xf32>
    %144 = vector.broadcast %127 : vector<16x1xf32> to vector<16x32xf32>
    %145 = arith.mulf %144, %143 : vector<16x32xf32>
    %cst_44 = arith.constant 9.99999974E-6 : f32
    %146 = vector.broadcast %cst_44 : f32 to vector<16x1xf32>
    %147 = arith.addf %141, %146 : vector<16x1xf32>
    %148 = math.rsqrt %147 : vector<16x1xf32>
    %149 = vector.broadcast %148 : vector<16x1xf32> to vector<16x32xf32>
    %150 = arith.mulf %145, %149 : vector<16x32xf32>
    %151 = vector.broadcast %128 : vector<16x1xf32> to vector<16x32xf32>
    %152 = arith.addf %150, %151 : vector<16x32xf32>
    %cst_45 = arith.constant 0.000000e+00 : f32
    %153 = vector.broadcast %cst_45 : f32 to vector<16x32xf32>
    %154 = arith.maximumf %152, %153 : vector<16x32xf32>
    %155 = tpu.concatenate %55, %154 in 0 : vector<16x32xf32>, vector<16x32xf32> -> vector<32x32xf32>
    %c0_46 = arith.constant 0 : index
    %c0_47 = arith.constant 0 : index
    %156 = vector.load %arg5[%c0_46, %c0_47] : memref<32x32xf32, #tpu.memory_space<vmem>>, vector<32x32xf32>
    %cst_48 = arith.constant dense<0.000000e+00> : vector<32x32xf32>
    %157 = tpu.matmul %156, %155, %cst_48 {dimension_numbers = #tpu.dot_dimension_numbers<[1], [0], [0], [1], [0, 0, 1, 1], [], []>, precision = #tpu.contract_precision<fp32>} : vector<32x32xf32>, vector<32x32xf32>, vector<32x32xf32> -> vector<32x32xf32>
    %158 = vector.extract_strided_slice %6 {offsets = [0, 0], sizes = [32, 1], strides = [1, 1]} : vector<32x3xf32> to vector<32x1xf32>
    %159 = vector.extract_strided_slice %6 {offsets = [0, 1], sizes = [32, 1], strides = [1, 1]} : vector<32x3xf32> to vector<32x1xf32>
    %160 = vector.extract_strided_slice %6 {offsets = [0, 2], sizes = [32, 1], strides = [1, 1]} : vector<32x3xf32> to vector<32x1xf32>
    %161 = vector.broadcast %158 : vector<32x1xf32> to vector<32x32xf32>
    %162 = arith.addf %157, %161 : vector<32x32xf32>
    %cst_49 = arith.constant dense<0.000000e+00> : vector<32xf32>
    %163 = vector.multi_reduction <add>, %162, %cst_49 [1] : vector<32x32xf32> to vector<32xf32>
    %164 = vector.shape_cast %163 : vector<32xf32> to vector<32x1xf32>
    %165 = arith.mulf %162, %162 : vector<32x32xf32>
    %cst_50 = arith.constant dense<0.000000e+00> : vector<32xf32>
    %166 = vector.multi_reduction <add>, %165, %cst_50 [1] : vector<32x32xf32> to vector<32xf32>
    %167 = vector.shape_cast %166 : vector<32xf32> to vector<32x1xf32>
    %cst_51 = arith.constant 3.125000e-02 : f32
    %168 = vector.broadcast %cst_51 : f32 to vector<32x1xf32>
    %169 = arith.mulf %164, %168 : vector<32x1xf32>
    %cst_52 = arith.constant 3.125000e-02 : f32
    %170 = vector.broadcast %cst_52 : f32 to vector<32x1xf32>
    %171 = arith.mulf %167, %170 : vector<32x1xf32>
    %172 = arith.mulf %169, %169 : vector<32x1xf32>
    %173 = arith.subf %171, %172 : vector<32x1xf32>
    %174 = vector.broadcast %169 : vector<32x1xf32> to vector<32x32xf32>
    %175 = arith.subf %162, %174 : vector<32x32xf32>
    %176 = vector.broadcast %159 : vector<32x1xf32> to vector<32x32xf32>
    %177 = arith.mulf %176, %175 : vector<32x32xf32>
    %cst_53 = arith.constant 9.99999974E-6 : f32
    %178 = vector.broadcast %cst_53 : f32 to vector<32x1xf32>
    %179 = arith.addf %173, %178 : vector<32x1xf32>
    %180 = math.rsqrt %179 : vector<32x1xf32>
    %181 = vector.broadcast %180 : vector<32x1xf32> to vector<32x32xf32>
    %182 = arith.mulf %177, %181 : vector<32x32xf32>
    %183 = vector.broadcast %160 : vector<32x1xf32> to vector<32x32xf32>
    %184 = arith.addf %182, %183 : vector<32x32xf32>
    %cst_54 = arith.constant 0.000000e+00 : f32
    %185 = vector.broadcast %cst_54 : f32 to vector<32x32xf32>
    %186 = arith.maximumf %184, %185 : vector<32x32xf32>
    %c0_55 = arith.constant 0 : index
    %c0_56 = arith.constant 0 : index
    %187 = vector.load %arg12[%c0_55, %c0_56] : memref<32x32xf32, #tpu.memory_space<vmem>>, vector<32x32xf32>
    tpu.vector_store %arg12[%c0_55, %c0_56], %186 {strides = array<i32>} : memref<32x32xf32, #tpu.memory_space<vmem>>, vector<32x32xf32>,
    return
  }
  func.func @transform_0(%arg0: i32) -> (i32, i32) {
    %c0_i32 = arith.constant 0 : i32
    %c0_i32_0 = arith.constant 0 : i32
    %c0_i32_1 = arith.constant 0 : i32
    return %c0_i32, %c0_i32_0 : i32, i32
  }
  func.func @transform_1(%arg0: i32) -> (i32, i32) {
    %c0_i32 = arith.constant 0 : i32
    %c0_i32_0 = arith.constant 0 : i32
    %c0_i32_1 = arith.constant 0 : i32
    return %c0_i32, %c0_i32_0 : i32, i32
  }
  func.func @transform_2(%arg0: i32) -> (i32, i32) {
    %c0_i32 = arith.constant 0 : i32
    %c0_i32_0 = arith.constant 0 : i32
    %c0_i32_1 = arith.constant 0 : i32
    return %c0_i32, %c0_i32_0 : i32, i32
  }
  func.func @transform_3(%arg0: i32) -> (i32, i32) {
    %c0_i32 = arith.constant 0 : i32
    %c0_i32_0 = arith.constant 0 : i32
    %c0_i32_1 = arith.constant 0 : i32
    return %c0_i32, %c0_i32_0 : i32, i32
  }
  func.func @transform_4(%arg0: i32) -> (i32, i32) {
    %c0_i32 = arith.constant 0 : i32
    %c0_i32_0 = arith.constant 0 : i32
    %c0_i32_1 = arith.constant 0 : i32
    return %c0_i32, %c0_i32_0 : i32, i32
  }
  func.func @transform_5(%arg0: i32) -> (i32, i32) {
    %c0_i32 = arith.constant 0 : i32
    %c0_i32_0 = arith.constant 0 : i32
    %c0_i32_1 = arith.constant 0 : i32
    return %c0_i32, %c0_i32_0 : i32, i32
  }
  func.func @transform_6(%arg0: i32) -> (i32, i32) {
    %c0_i32 = arith.constant 0 : i32
    %c0_i32_0 = arith.constant 0 : i32
    %c0_i32_1 = arith.constant 0 : i32
    return %c0_i32, %c0_i32_0 : i32, i32
  }
  func.func @transform_7(%arg0: i32) -> (i32, i32) {
    %c0_i32 = arith.constant 0 : i32
    %c0_i32_0 = arith.constant 0 : i32
    %c0_i32_1 = arith.constant 0 : i32
    return %c0_i32, %c0_i32_0 : i32, i32
  }
  func.func @transform_8(%arg0: i32) -> (i32, i32) {
    %c0_i32 = arith.constant 0 : i32
    %c0_i32_0 = arith.constant 0 : i32
    %c0_i32_1 = arith.constant 0 : i32
    return %c0_i32, %c0_i32_0 : i32, i32
  }
  func.func @transform_9(%arg0: i32) -> (i32, i32) {
    %c0_i32 = arith.constant 0 : i32
    %c0_i32_0 = arith.constant 0 : i32
    %c0_i32_1 = arith.constant 0 : i32
    return %c0_i32, %c0_i32_0 : i32, i32
  }
  func.func @transform_10(%arg0: i32) -> (i32, i32) {
    %c0_i32 = arith.constant 0 : i32
    %c0_i32_0 = arith.constant 0 : i32
    %c0_i32_1 = arith.constant 0 : i32
    return %c0_i32, %c0_i32_0 : i32, i32
  }
  func.func @transform_11(%arg0: i32) -> (i32, i32) {
    %c0_i32 = arith.constant 0 : i32
    %c0_i32_0 = arith.constant 0 : i32
    %c0_i32_1 = arith.constant 0 : i32
    return %c0_i32, %c0_i32_0 : i32, i32
  }
}

</mosaic_0001>

<bundles_post_ra>
// kernel: tpu_custom_call.1
= control target key start
LH: loop header
LB: loop body
LE: loop exit
PB: predicated region body
PF: predicated region fallthrough
CT: control target
= control target key end

     0   :  { %16 = vsyncpa [#allocation3], 0  ;;  %s12882_s0 = inlined_call_operand.hbm [shape: f32[1,512], index: 0, kind: input, shape index: {}]   ;;  %s12883_s1 = inlined_call_operand.hbm [shape: f32[16,9], index: 1, kind: input, shape index: {}]   ;;  %s12884_s2 = inlined_call_operand.hbm [shape: f32[16,16], index: 2, kind: input, shape index: {}]   ;;  %s12885_s3 = inlined_call_operand.hbm [shape: f32[16,144], index: 3, kind: input, shape index: {}]   ;;  %s12886_s4 = inlined_call_operand.hbm [shape: f32[32,32], index: 4, kind: input, shape index: {}]   ;;  %s12887_s5 = inlined_call_operand.hbm [shape: f32[9,512], index: 5, kind: input, shape index: {}]   ;;  %s12888_s6 = inlined_call_operand.hbm [shape: f32[9,128], index: 6, kind: input, shape index: {}]   ;;  %s12889_s7 = inlined_call_operand.hbm [shape: f32[512,128], index: 7, kind: input, shape index: {}]   ;;  %s12890_s8 = inlined_call_operand.hbm [shape: f32[128,32], index: 8, kind: input, shape index: {}]   ;;  %s12891_s9 = inlined_call_operand.hbm [shape: f32[16,9], index: 9, kind: input, shape index: {}]   ;;  %s12892_s10 = inlined_call_operand.hbm [shape: f32[32,3], index: 10, kind: input, shape index: {}]   ;;  %s12893_s11 = inlined_call_operand.hbm [shape: f32[32,32], index: 11, kind: output, shape index: {}]  }
   0x1   :  { %17 = vsyncpa [#allocation6], 0 }
   0x2   :  { %18 = vsyncpa [#allocation9], 0 }
   0x3   :  { %19 = vsyncpa [#allocation12], 0 }
   0x4   :  { %20 = vsyncpa [#allocation15], 0 }
   0x5   :  { %21 = vsyncpa [#allocation18], 0 }
   0x6   :  { %22 = vsyncpa [#allocation4], 0  ;;  %s9969_s17 = smov [#allocation5]   ;;  %s9691_s21 = scalar_lea.hbm %s12883_s1, 256 }
   0x7   :  { %s38_s18 = sshll.u32 %s9969_s17, 4  ;;  %p9692_p0 = scmp.ne.s32.totalorder %s12883_s1, %s9691_s21  ;;  %s39_s18 = int_to_ptr.vmem [resolvable:$true] %s38_s18 }
   0x8   :  { %p9695_p1 = scmp.lt.u32.totalorder %s9691_s21, %s12883_s1 }
   0xa   :  { %p9697_p2 = pnand %p9695_p1, %p9692_p0 }
   0xc   :  { %9700 = shalt.err (!%p9697_p2)
}
   0xd   :  { %s9701_s26 = scalar_lea.vmem %s39_s18, 256  ;;  %p9706_p4 = scmp.lt.s32.totalorder %s39_s18, %s39_s18 }
   0xe   :  { %p9702_p3 = scmp.ne.s32.totalorder %s39_s18, %s9701_s26  ;;  %p9707_p5 = scmp.lt.s32.totalorder %s9701_s26, %s9701_s26 }
  0x10   :  { %p9708_p6 = por %p9707_p5, %p9706_p4 }
  0x12   :  { %p9709_p7 = pnand %p9708_p6, %p9702_p3 }
  0x14   :  { %9712 = shalt.err (!%p9709_p7)
}
  0x15   :  { %s9970_s27 = smov 128   ;;  %s9971_s28 = smov 8  }
  0x16   :  { %44 = dma.hbm_to_vmem [thread:$0]  %s12883_s1, 256, %s39_s18, [#allocation6], %s9970_s27, %s9970_s27, %s9971_s28  }
  0x17   :  { %s9972_s12 = smov [#allocation8]   ;;  %s9713_s16 = scalar_lea.hbm %s12885_s3, 512 }
  0x18   :  { %s62_s13 = sshll.u32 %s9972_s12, 4  ;;  %p9714_p8 = scmp.ne.s32.totalorder %s12885_s3, %s9713_s16  ;;  %s63_s13 = int_to_ptr.vmem [resolvable:$true] %s62_s13 }
  0x19   :  { %p9717_p9 = scmp.lt.u32.totalorder %s9713_s16, %s12885_s3 }
  0x1b   :  { %p9719_p10 = pnand %p9717_p9, %p9714_p8 }
  0x1d   :  { %9722 = shalt.err (!%p9719_p10)
}
  0x1e   :  { %s9723_s22 = scalar_lea.vmem %s63_s13, 512  ;;  %p9728_p12 = scmp.lt.s32.totalorder %s63_s13, %s63_s13 }
  0x1f   :  { %p9724_p11 = scmp.ne.s32.totalorder %s63_s13, %s9723_s22  ;;  %p9729_p13 = scmp.lt.s32.totalorder %s9723_s22, %s9723_s22 }
  0x21   :  { %p9730_p0 = por %p9729_p13, %p9728_p12 }
  0x23   :  { %p9731_p1 = pnand %p9730_p0, %p9724_p11 }
  0x25   :  { %9734 = shalt.err (!%p9731_p1)
}
  0x26   :  { %s9973_s1 = smov 256   ;;  %s9974_s18 = smov 16  }
  0x27   :  { %68 = dma.hbm_to_vmem [thread:$0]  %s12885_s3, 512, %s63_s13, [#allocation9], %s9973_s1, %s9973_s1, %s9974_s18  }
  0x28   :  { %s9975_s25 = smov [#allocation11]   ;;  %s9735_s12 = scalar_lea.hbm %s12887_s5, 1024 }
  0x29   :  { %s86_s26 = sshll.u32 %s9975_s25, 4  ;;  %p9736_p2 = scmp.ne.s32.totalorder %s12887_s5, %s9735_s12  ;;  %s87_s26 = int_to_ptr.vmem [resolvable:$true] %s86_s26 }
  0x2a   :  { %p9739_p3 = scmp.lt.u32.totalorder %s9735_s12, %s12887_s5 }
  0x2c   :  { %p9741_p4 = pnand %p9739_p3, %p9736_p2 }
  0x2e   :  { %9744 = shalt.err (!%p9741_p4)
}
  0x2f   :  { %s9745_s19 = scalar_lea.vmem %s87_s26, 1024  ;;  %p9750_p6 = scmp.lt.s32.totalorder %s87_s26, %s87_s26 }
  0x30   :  { %p9746_p5 = scmp.ne.s32.totalorder %s87_s26, %s9745_s19  ;;  %p9751_p7 = scmp.lt.s32.totalorder %s9745_s19, %s9745_s19 }
  0x32   :  { %p9752_p8 = por %p9751_p7, %p9750_p6 }
  0x34   :  { %p9753_p9 = pnand %p9752_p8, %p9746_p5 }
  0x36   :  { %9756 = shalt.err (!%p9753_p9)
}
  0x37   :  { %s9976_s3 = smov 512   ;;  %s9977_s13 = smov 32  }
  0x38   :  { %92 = dma.hbm_to_vmem [thread:$0]  %s12887_s5, 1024, %s87_s26, [#allocation12], %s9976_s3, %s9976_s3, %s9977_s13  }
  0x39   :  { %s9978_s22 = smov [#allocation14]   ;;  %s9979_s23 = smov [#allocation17]  }
  0x3a   :  { %s110_s1 = sshll.u32 %s9978_s22, 4  ;;  %s134_s24 = sshll.u32 %s9979_s23, 4  ;;  %s111_s1 = int_to_ptr.vmem [resolvable:$true] %s110_s1  ;;  %s135_s24 = int_to_ptr.vmem [resolvable:$true] %s134_s24 }
  0x3b   :  { %s9757_s30 = scalar_lea.hbm %s12889_s7, 8192 }
  0x3c   :  { %p9758_p10 = scmp.ne.s32.totalorder %s12889_s7, %s9757_s30  ;;  %p9761_p11 = scmp.lt.u32.totalorder %s9757_s30, %s12889_s7 }
  0x3e   :  { %p9763_p12 = pnand %p9761_p11, %p9758_p10 }
  0x40   :  { %9766 = shalt.err (!%p9763_p12)
}
  0x41   :  { %s9767_s5 = scalar_lea.vmem %s111_s1, 8192  ;;  %p9772_p0 = scmp.lt.s32.totalorder %s111_s1, %s111_s1 }
  0x42   :  { %p9768_p13 = scmp.ne.s32.totalorder %s111_s1, %s9767_s5  ;;  %p9773_p1 = scmp.lt.s32.totalorder %s9767_s5, %s9767_s5 }
  0x44   :  { %p9774_p2 = por %p9773_p1, %p9772_p0 }
  0x46   :  { %p9775_p3 = pnand %p9774_p2, %p9768_p13 }
  0x48   :  { %9778 = shalt.err (!%p9775_p3)
}
  0x49   :  { %116 = dma.hbm_to_vmem [thread:$0]  %s12889_s7, 8192, %s111_s1, [#allocation15], %s9970_s27, %s9970_s27, %s9971_s28  }
  0x4a   :  { %s9779_s13 = scalar_lea.hbm %s12891_s9, 256 }
  0x4b   :  { %p9780_p4 = scmp.ne.s32.totalorder %s12891_s9, %s9779_s13  ;;  %p9783_p5 = scmp.lt.u32.totalorder %s9779_s13, %s12891_s9 }
  0x4d   :  { %p9785_p6 = pnand %p9783_p5, %p9780_p4 }
  0x4f   :  { %9788 = shalt.err (!%p9785_p6)
}
  0x50   :  { %s9789_s25 = scalar_lea.vmem %s135_s24, 256  ;;  %p9794_p8 = scmp.lt.s32.totalorder %s135_s24, %s135_s24 }
  0x51   :  { %p9790_p7 = scmp.ne.s32.totalorder %s135_s24, %s9789_s25  ;;  %p9795_p9 = scmp.lt.s32.totalorder %s9789_s25, %s9789_s25 }
  0x53   :  { %p9796_p10 = por %p9795_p9, %p9794_p8 }
  0x55   :  { %p9797_p11 = pnand %p9796_p10, %p9790_p7 }
  0x57   :  { %9800 = shalt.err (!%p9797_p11)
}
  0x58   :  { %140 = dma.hbm_to_vmem [thread:$0]  %s12891_s9, 256, %s135_s24, [#allocation18], %s9970_s27, %s9970_s27, %s9971_s28  }
  0x59   :  { %s9980_s29 = smov [#allocation2]   ;;  %s9981_s12 = smov [#allocation7]  }
  0x5a   :  { %s29_s30 = sshll.u32 %s9980_s29, 4  ;;  %s50_s14 = sshll.u32 %s9981_s12, 4  ;;  %s30_s30 = int_to_ptr.vmem [resolvable:$true] %s29_s30  ;;  %s51_s14 = int_to_ptr.vmem [resolvable:$true] %s50_s14 }
  0x5b   :  { %s9801_s5 = scalar_lea.hbm %s12882_s0, 64 }
  0x5c   :  { %p9802_p12 = scmp.ne.s32.totalorder %s12882_s0, %s9801_s5  ;;  %p9805_p13 = scmp.lt.u32.totalorder %s9801_s5, %s12882_s0 }
  0x5e   :  { %p9807_p0 = pnand %p9805_p13, %p9802_p12 }
  0x60   :  { %9810 = shalt.err (!%p9807_p0)
}
  0x61   :  { %s9811_s9 = scalar_lea.vmem %s30_s30, 64  ;;  %p9816_p2 = scmp.lt.s32.totalorder %s30_s30, %s30_s30 }
  0x62   :  { %p9812_p1 = scmp.ne.s32.totalorder %s30_s30, %s9811_s9  ;;  %p9817_p3 = scmp.lt.s32.totalorder %s9811_s9, %s9811_s9 }
  0x64   :  { %p9818_p4 = por %p9817_p3, %p9816_p2 }
  0x66   :  { %p9819_p5 = pnand %p9818_p4, %p9812_p1 }
  0x68   :  { %9822 = shalt.err (!%p9819_p5)
}
  0x69   :  { %32 = dma.hbm_to_vmem [thread:$0]  %s12882_s0, 64, %s30_s30, [#allocation3]  }
  0x6a   :  { %s9823_s22 = scalar_lea.hbm %s12884_s2, 256 }
  0x6b   :  { %p9824_p6 = scmp.ne.s32.totalorder %s12884_s2, %s9823_s22  ;;  %p9827_p7 = scmp.lt.u32.totalorder %s9823_s22, %s12884_s2 }
  0x6d   :  { %p9829_p8 = pnand %p9827_p7, %p9824_p6 }
  0x6f   :  { %9832 = shalt.err (!%p9829_p8)
}
  0x70   :  { %s9833_s29 = scalar_lea.vmem %s51_s14, 256  ;;  %p9838_p10 = scmp.lt.s32.totalorder %s51_s14, %s51_s14 }
  0x71   :  { %p9834_p9 = scmp.ne.s32.totalorder %s51_s14, %s9833_s29  ;;  %p9839_p11 = scmp.lt.s32.totalorder %s9833_s29, %s9833_s29 }
  0x73   :  { %p9840_p12 = por %p9839_p11, %p9838_p10 }
  0x75   :  { %p9841_p13 = pnand %p9840_p12, %p9834_p9 }
  0x77   :  { %9844 = shalt.err (!%p9841_p13)
}
  0x78   :  { %56 = dma.hbm_to_vmem [thread:$0]  %s12884_s2, 256, %s51_s14, [#allocation6], %s9970_s27, %s9970_s27, %s9971_s28  }
  0x79   :  { %s9982_s12 = smov [#allocation10]   ;;  %s9983_s16 = smov [#allocation13]  }
  0x7a   :  { %s74_s15 = sshll.u32 %s9982_s12, 4  ;;  %s98_s5 = sshll.u32 %s9983_s16, 4  ;;  %s75_s15 = int_to_ptr.vmem [resolvable:$true] %s74_s15  ;;  %s99_s5 = int_to_ptr.vmem [resolvable:$true] %s98_s5 }
  0x7b   :  { %s9845_s19 = scalar_lea.hbm %s12886_s4, 512 }
  0x7c   :  { %p9846_p0 = scmp.ne.s32.totalorder %s12886_s4, %s9845_s19  ;;  %p9849_p1 = scmp.lt.u32.totalorder %s9845_s19, %s12886_s4 }
  0x7e   :  { %p9851_p2 = pnand %p9849_p1, %p9846_p0 }
  0x80   :  { %9854 = shalt.err (!%p9851_p2)
}
  0x81   :  { %s9855_s2 = scalar_lea.vmem %s75_s15, 512  ;;  %p9860_p4 = scmp.lt.s32.totalorder %s75_s15, %s75_s15 }
  0x82   :  { %p9856_p3 = scmp.ne.s32.totalorder %s75_s15, %s9855_s2  ;;  %p9861_p5 = scmp.lt.s32.totalorder %s9855_s2, %s9855_s2 }
  0x84   :  { %p9862_p6 = por %p9861_p5, %p9860_p4 }
  0x86   :  { %p9863_p7 = pnand %p9862_p6, %p9856_p3 }
  0x88   :  { %9866 = shalt.err (!%p9863_p7)
}
  0x89   :  { %80 = dma.hbm_to_vmem [thread:$0]  %s12886_s4, 512, %s75_s15, [#allocation9], %s9970_s27, %s9970_s27, %s9971_s28  }
  0x8a   :  { %s9867_s23 = scalar_lea.hbm %s12888_s6, 256 }
  0x8b   :  { %p9868_p8 = scmp.ne.s32.totalorder %s12888_s6, %s9867_s23  ;;  %p9871_p9 = scmp.lt.u32.totalorder %s9867_s23, %s12888_s6 }
  0x8d   :  { %p9873_p10 = pnand %p9871_p9, %p9868_p8 }
  0x8f   :  { %9876 = shalt.err (!%p9873_p10)
}
  0x90   :  { %s9877_s0 = scalar_lea.vmem %s99_s5, 256  ;;  %p9882_p12 = scmp.lt.s32.totalorder %s99_s5, %s99_s5 }
  0x91   :  { %p9878_p11 = scmp.ne.s32.totalorder %s99_s5, %s9877_s0  ;;  %p9883_p13 = scmp.lt.s32.totalorder %s9877_s0, %s9877_s0 }
  0x93   :  { %p9884_p0 = por %p9883_p13, %p9882_p12 }
  0x95   :  { %p9885_p1 = pnand %p9884_p0, %p9878_p11 }
  0x97   :  { %9888 = shalt.err (!%p9885_p1)
}
  0x98   :  { %104 = dma.hbm_to_vmem [thread:$0]  %s12888_s6, 256, %s99_s5, [#allocation12], %s9970_s27, %s9970_s27, %s9971_s28  }
  0x99   :  { %s9984_s12 = smov [#allocation16]   ;;  %s9985_s16 = smov [#allocation19]  }
  0x9a   :  { %s122_s15 = sshll.u32 %s9984_s12, 4  ;;  %s146_s26 = sshll.u32 %s9985_s16, 4  ;;  %s123_s15 = int_to_ptr.vmem [resolvable:$true] %s122_s15  ;;  %s147_s26 = int_to_ptr.vmem [resolvable:$true] %s146_s26 }
  0x9b   :  { %s9889_s3 = scalar_lea.hbm %s12890_s8, 2048 }
  0x9c   :  { %p9890_p2 = scmp.ne.s32.totalorder %s12890_s8, %s9889_s3  ;;  %p9893_p3 = scmp.lt.u32.totalorder %s9889_s3, %s12890_s8 }
  0x9e   :  { %p9895_p4 = pnand %p9893_p3, %p9890_p2 }
  0xa0   :  { %9898 = shalt.err (!%p9895_p4)
}
  0xa1   :  { %s9899_s6 = scalar_lea.vmem %s123_s15, 2048  ;;  %p9904_p6 = scmp.lt.s32.totalorder %s123_s15, %s123_s15 }
  0xa2   :  { %p9900_p5 = scmp.ne.s32.totalorder %s123_s15, %s9899_s6  ;;  %p9905_p7 = scmp.lt.s32.totalorder %s9899_s6, %s9899_s6 }
  0xa4   :  { %p9906_p8 = por %p9905_p7, %p9904_p6 }
  0xa6   :  { %p9907_p9 = pnand %p9906_p8, %p9900_p5 }
  0xa8   :  { %9910 = shalt.err (!%p9907_p9)
}
  0xa9   :  { %128 = dma.hbm_to_vmem [thread:$0]  %s12890_s8, 2048, %s123_s15, [#allocation15], %s9970_s27, %s9970_s27, %s9971_s28  }
  0xaa   :  { %s9911_s22 = scalar_lea.hbm %s12892_s10, 512 }
  0xab   :  { %p9912_p10 = scmp.ne.s32.totalorder %s12892_s10, %s9911_s22  ;;  %p9915_p11 = scmp.lt.u32.totalorder %s9911_s22, %s12892_s10 }
  0xad   :  { %p9917_p12 = pnand %p9915_p11, %p9912_p10 }
  0xaf   :  { %9920 = shalt.err (!%p9917_p12)
}
  0xb0   :  { %s9921_s29 = scalar_lea.vmem %s147_s26, 512  ;;  %p9926_p0 = scmp.lt.s32.totalorder %s147_s26, %s147_s26 }
  0xb1   :  { %p9922_p13 = scmp.ne.s32.totalorder %s147_s26, %s9921_s29  ;;  %p9927_p1 = scmp.lt.s32.totalorder %s9921_s29, %s9921_s29 }
  0xb3   :  { %p9928_p2 = por %p9927_p1, %p9926_p0 }
  0xb5   :  { %p9929_p3 = pnand %p9928_p2, %p9922_p13 }
  0xb7   :  { %9932 = shalt.err (!%p9929_p3)
}
  0xb8   :  { %152 = dma.hbm_to_vmem [thread:$0]  %s12892_s10, 512, %s147_s26, [#allocation18], %s9970_s27, %s9970_s27, %s9971_s28  }
  0xb9   :  { %9955 = dma.done.wait [#allocation3], 64  }
  0xba   :  { %9956 = vsyncadd [#allocation3], 4294967232 }
  0xbb   :  { %9957 = dma.done.wait [#allocation6], 512  }
  0xbc   :  { %9958 = vsyncadd [#allocation6], 4294966784 }
  0xbd   :  { %9959 = dma.done.wait [#allocation9], 1024  }
  0xbe   :  { %9960 = vsyncadd [#allocation9], 4294966272 }
  0xbf   :  { %9961 = dma.done.wait [#allocation12], 1280  }
  0xc0   :  { %9962 = vsyncadd [#allocation12], 4294966016 }
  0xc1   :  { %9963 = dma.done.wait [#allocation15], 10240  }
  0xc2   :  { %9964 = vsyncadd [#allocation15], 4294957056 }
  0xc3   :  { %9965 = dma.done.wait [#allocation18], 768  }
  0xc4   :  { %9966 = vsyncadd [#allocation18], 4294966528  ;;  %v284_v0 = vlaneseq  ;;  %v186_v5 = vld [vmem:[#allocation2] sm:$0xf]  ;;  %s9986_s10 = smov 15   ;;  %s9987_s4 = smov 17  }
  0xc5   :  { %s9988_s30 = smov 1   ;;  %s9989_s12 = smov 127   ;;  %v9993_v11 = vmov 0.0   ;;  %vm482_vm4 = vcmask 1040384   ;;  %vm487_vm6 = vcmask 1041408   ;;  %vm527_vm8 = vcmask 72704  }
  0xc6   :  { %v10227_v1 = vshrl.u32 %v284_v0, 7  ;;  %s9990_s15 = smov 113   ;;  %s9991_s16 = smov 112   ;;  %614 = vmatprep.mubr.f32.mxu1 %v9993_v11  ;;  %721 = vmatprep.mubr.f32.mxu0 %v9993_v11  ;;  %v10315_v22 = vand.u32 127, %v284_v0  ;;  %v525_v40 = vld [vmem:[#allocation5] sm:$0xff]  ;;  %vm492_vm9 = vcmask 1042432  }
  0xc7   :  { %s9992_s26 = smov 111   ;;  %v526_v44 = vld [vmem:[#allocation5 + $0x8] sm:$0xff]  ;;  %vm497_vm10 = vcmask 1043456   ;;  %v529_v51 = vsel %vm527_vm8, %v525_v40, 0  ;;  %vm502_vm12 = vcmask 1044480   ;;  %vm507_vm13 = vcmask 1045504  }
  0xc8   :  { %13098 = vst [vmem:[#allocation28_spill] sm:$0xff] %v10227_v1  ;;  %v12894_v2 = vsub.s32 3, %v10227_v1  ;;  %v12897_v3 = vsub.s32 0, %v10227_v1  ;;  %v12896_v4 = vsub.s32 1, %v10227_v1  ;;  %v12895_v9 = vsub.s32 2, %v10227_v1  ;;  %v187_v40 = vld [vmem:[#allocation11] sm:$0xff] }
  0xc9   :  { %vm327_vm0 = vcmp.lt.s32.totalorder %v10315_v22, 16  ;;  %vm314_vm1 = vcmp.lt.s32.totalorder %v10315_v22, 17  ;;  %vm353_vm2 = vcmp.lt.s32.totalorder %v10315_v22, 1  ;;  %vm340_vm3 = vcmp.lt.s32.totalorder %v10315_v22, 15  ;;  %s10002_s17 = smov 7   ;;  %s10003_s19 = smov 121  }
  0xca   :  { %v10234_v6 = vrot.slane %v186_v5, %v12894_v2  ;;  %v10238_v7 = vrot.slane %v186_v5, %v12897_v3  ;;  %v10246_v8 = vrot.slane %v186_v5, %v12896_v4  ;;  %v10271_v10 = vrot.slane %v186_v5, %v12895_v9  ;;  %v10767_v2 = vld [vmem:[#allocation14 + $0x48] sm:$0xff]  ;;  %v10770_v9 = vld [vmem:[#allocation14 + $0xd0] sm:$0xff]  ;;  %v10772_v4 = vld [vmem:[#allocation14 + $0xd8] sm:$0xff]  ;;  %s10004_s3 = smov 120   ;;  %s10005_s9 = smov 119  }
  0xcb   :  { %vm366_vm5 = vcmp.lt.s32.totalorder %v10315_v22, 127  ;;  %vm379_vm7 = vcmp.lt.s32.totalorder %v10315_v22, 113  ;;  %vm392_vm11 = vcmp.lt.s32.totalorder %v10315_v22, 112  ;;  %v532_v55 = vsel %vm527_vm8, %v526_v44, 0  ;;  %s10009_s24 = smov [#allocation20]  }
  0xcc   :  { %325 = vrot.lane.b32.xlu1 %v10234_v6, %s9974_s18  ;;  %319 = vrot.lane.b32.xlu0 %v10238_v7, %s9974_s18  ;;  %vm512_vm14 = vcmask 1046528   ;;  %v10386_v0 = vand.u32 4294901760, %v529_v51  ;;  %v10388_v5 = vand.u32 4294901760, %v532_v55  ;;  %vm405_vm15 = vcmp.lt.s32.totalorder %v10315_v22, 111  ;;  %s7129_s13 = sshll.u32 %s10009_s24, 4  ;;  %s7130_s13 = int_to_ptr.vmem [resolvable:$true] %s7129_s13 }
  0xcd   :  { %s9933_s2 = scalar_lea.vmem %s7130_s13, 512  ;;  %p9938_p5 = scmp.lt.s32.totalorder %s7130_s13, %s7130_s13 }
  0xce   :  { %p9934_p4 = scmp.ne.s32.totalorder %s7130_s13, %s9933_s2  ;;  %p9939_p6 = scmp.lt.s32.totalorder %s9933_s2, %s9933_s2 }
  0xd0   :  { %332 = vrot.lane.b32.xlu1 %v10238_v7, %s9986_s10  ;;  %321 = vrot.lane.b32.xlu0 %v10246_v8, %s9974_s18  ;;  %p9940_p7 = por %p9939_p6, %p9938_p5 }
  0xd2   :  { %p9941_p8 = pnand %p9940_p7, %p9934_p4 }
  0xd4   :  { %304 = vrot.lane.b32.xlu1 %v10238_v7, %s9987_s4  ;;  %334 = vrot.lane.b32.xlu0 %v10246_v8, %s9986_s10 }
  0xd8   :  { %338 = vrot.lane.b32.xlu1 %v10234_v6, %s9986_s10  ;;  %306 = vrot.lane.b32.xlu0 %v10246_v8, %s9987_s4 }
  0xdc   :  { %347 = vrot.lane.b32.xlu1 %v10246_v8, %s9988_s30  ;;  %345 = vrot.lane.b32.xlu0 %v10238_v7, %s9988_s30 }
  0xe0   :  { %351 = vrot.lane.b32.xlu1 %v10234_v6, %s9988_s30  ;;  %310 = vrot.lane.b32.xlu0 %v10234_v6, %s9987_s4 }
  0xe4   :  { %362 = vrot.lane.b32.xlu1 %v10271_v10, %s9989_s12  ;;  %360 = vrot.lane.b32.xlu0 %v10246_v8, %s9989_s12 }
  0xe8   :  { %373 = vrot.lane.b32.xlu1 %v10246_v8, %s9990_s15  ;;  %358 = vrot.lane.b32.xlu0 %v10238_v7, %s9989_s12 }
  0xec   :  { %371 = vrot.lane.b32.xlu1 %v10238_v7, %s9990_s15  ;;  %375 = vrot.lane.b32.xlu0 %v10271_v10, %s9990_s15 }
  0xf0   :  { %388 = vrot.lane.b32.xlu1 %v10271_v10, %s9991_s16  ;;  %386 = vrot.lane.b32.xlu0 %v10246_v8, %s9991_s16 }
  0xf4   :  { %399 = vrot.lane.b32.xlu1 %v10246_v8, %s9992_s26  ;;  %384 = vrot.lane.b32.xlu0 %v10238_v7, %s9991_s16 }
  0xf8   :  { %397 = vrot.lane.b32.xlu1 %v10238_v7, %s9992_s26  ;;  %401 = vrot.lane.b32.xlu0 %v10271_v10, %s9992_s26 }
  0xfc   :  { %336 = vrot.lane.b32.xlu1 %v10271_v10, %s9986_s10  ;;  %323 = vrot.lane.b32.xlu0 %v10271_v10, %s9974_s18  ;;  %s10000_s18 = smov 9  }
 0x100   :  { %349 = vrot.lane.b32.xlu1 %v10271_v10, %s9988_s30  ;;  %308 = vrot.lane.b32.xlu0 %v10271_v10, %s9987_s4 }
 0x104   :  { %377 = vrot.lane.b32.xlu1 %v10234_v6, %s9990_s15  ;;  %364 = vrot.lane.b32.xlu0 %v10234_v6, %s9989_s12 }
 0x108   :  { %403 = vrot.lane.b32.xlu1 %v10234_v6, %s9992_s26  ;;  %390 = vrot.lane.b32.xlu0 %v10234_v6, %s9991_s16 }
 0x13e   :  { %v10303_v12 = vpop.permute.xlu1 %325  ;;  %v320_v13 = vpop.permute.xlu0 %319 }
 0x13f   :  { %v331_v28 = vsel %vm327_vm0, %v10303_v12, %v320_v13 }
 0x140   :  { %v414_v36 = vrot.slane %v331_v28, 7 }
 0x142   :  { %v333_v14 = vpop.permute.xlu1 %332  ;;  %v10305_v15 = vpop.permute.xlu0 %321 }
 0x143   :  { %v330_v27 = vsel %vm327_vm0, %v320_v13, %v10305_v15 }
 0x144   :  { %v415_v31 = vrot.slane %v330_v27, 7 }
 0x146   :  { %v305_v16 = vpop.permute.xlu1 %304  ;;  %v10307_v17 = vpop.permute.xlu0 %334 }
 0x147   :  { %v343_v32 = vsel %vm340_vm3, %v333_v14, %v10307_v17 }
 0x148   :  { %v427_v41 = vrot.slane %v343_v32, 6 }
 0x14a   :  { %v10309_v18 = vpop.permute.xlu1 %338  ;;  %v10311_v19 = vpop.permute.xlu0 %306 }
 0x14b   :  { %v317_v29 = vsel %vm314_vm1, %v305_v16, %v10311_v19  ;;  %v344_v37 = vsel %vm340_vm3, %v10309_v18, %v333_v14 }
 0x14c   :  { %v484_v38 = vsel %vm482_vm4, %v317_v29, %v415_v31  ;;  %v426_v48 = vrot.slane %v344_v37, 6 }
 0x14d   :  { %v489_v49 = vsel %vm487_vm6, %v484_v38, %v427_v41  ;;  %v10407_v38 = vsub.f32 %v532_v55, %v10388_v5  ;;  %v192_v41 = vld [vmem:[#allocation11 + $0x28] sm:$0x1] }
 0x14e   :  { %v10313_v20 = vpop.permute.xlu1 %347  ;;  %v346_v21 = vpop.permute.xlu0 %345 }
 0x14f   :  { %v356_v30 = vsel %vm353_vm2, %v346_v21, %v10313_v20 }
 0x150   :  { %v439_v39 = vrot.slane %v356_v30, 5 }
 0x152   :  { %v10317_v23 = vpop.permute.xlu1 %351  ;;  %v10319_v24 = vpop.permute.xlu0 %310  ;;  %v494_v52 = vsel %vm492_vm9, %v489_v49, %v439_v39 }
 0x153   :  { %v318_v35 = vsel %vm314_vm1, %v10319_v24, %v305_v16  ;;  %v357_v42 = vsel %vm353_vm2, %v10317_v23, %v346_v21  ;;  %v499_v62 = vsel %vm497_vm10, %v494_v52, %v10246_v8  ;;  %v188_v21 = vld [vmem:[#allocation11 + $0x8] sm:$0xff] }
 0x154   :  { %v483_v45 = vsel %vm482_vm4, %v318_v35, %v414_v36  ;;  %v438_v53 = vrot.slane %v357_v42, 5  ;;  %v10402_v35 = vsub.f32 %v529_v51, %v10386_v0 }
 0x155   :  { %v488_v56 = vsel %vm487_vm6, %v483_v45, %v426_v48 }
 0x156   :  { %v10324_v25 = vpop.permute.xlu1 %362  ;;  %v361_v26 = vpop.permute.xlu0 %360  ;;  %v493_v13 = vsel %vm492_vm9, %v488_v56, %v438_v53 }
 0x157   :  { %v368_v43 = vsel %vm366_vm5, %v361_v26, %v10324_v25  ;;  %v498_v31 = vsel %vm497_vm10, %v493_v13, %v10238_v7  ;;  %v191_v7 = vld [vmem:[#allocation11 + $0x20] sm:$0x1] }
 0x158   :  { %v451_v54 = vrot.slane %v368_v43, 3 }
 0x15a   :  { %v374_v33 = vpop.permute.xlu1 %373  ;;  %v10343_v34 = vpop.permute.xlu0 %358  ;;  %v504_v14 = vsel %vm502_vm12, %v499_v62, %v451_v54  ;;  %v10425_v54 = vand.u32 4294901760, %v10407_v38 }
 0x15b   :  { %v369_v57 = vsel %vm366_vm5, %v10343_v34, %v361_v26 }
 0x15c   :  { %v450_v16 = vrot.slane %v369_v57, 3 }
 0x15e   :  { %v10360_v46 = vpop.permute.xlu1 %371  ;;  %v10362_v47 = vpop.permute.xlu0 %375  ;;  %v503_v36 = vsel %vm502_vm12, %v498_v31, %v450_v16 }
 0x15f   :  { %v381_v50 = vsel %vm379_vm7, %v374_v33, %v10362_v47  ;;  %v382_v59 = vsel %vm379_vm7, %v10360_v46, %v374_v33 }
 0x160   :  { %v463_v58 = vrot.slane %v381_v50, 2  ;;  %v462_v27 = vrot.slane %v382_v59, 2  ;;  %v10422_v50 = vand.u32 4294901760, %v10402_v35 }
 0x162   :  { %v10379_v60 = vpop.permute.xlu1 %388  ;;  %v387_v61 = vpop.permute.xlu0 %386  ;;  %v509_v28 = vsel %vm507_vm13, %v504_v14, %v463_v58  ;;  %v508_v39 = vsel %vm507_vm13, %v503_v36, %v462_v27 }
 0x163   :  { %v394_v63 = vsel %vm392_vm11, %v387_v61, %v10379_v60 }
 0x164   :  { %v475_v26 = vrot.slane %v394_v63, 1 }
 0x166   :  { %v514_v8 = vsel %vm512_vm14, %v509_v28, %v475_v26  ;;  %v400_v29 = vpop.permute.xlu1 %399  ;;  %v10394_v30 = vpop.permute.xlu0 %384  ;;  %v629_v26 = vsub.f32 %v10407_v38, %v10425_v54 }
 0x167   :  { %v518_v32 = vmul.f32 %v514_v8, %v188_v21  ;;  %v395_v33 = vsel %vm392_vm11, %v10394_v30, %v387_v61  ;;  %v618_v21 = vsub.f32 %v10402_v35, %v10422_v50 }
 0x168   :  { %v474_v37 = vrot.slane %v395_v33, 1 }
 0x169   :  { %v546_v42 = vand.u32 4294901760, %v518_v32 }
 0x16a   :  { %v513_v43 = vsel %vm512_vm14, %v508_v39, %v474_v37  ;;  %v10411_v44 = vpop.permute.xlu1 %397  ;;  %v10413_v45 = vpop.permute.xlu0 %401 }
 0x16b   :  { %v408_v48 = vsel %vm405_vm15, %v10411_v44, %v400_v29  ;;  %v407_v49 = vsel %vm405_vm15, %v400_v29, %v10413_v45  ;;  %v517_v51 = vmul.f32 %v513_v43, %v187_v40  ;;  %v10427_v55 = vsub.f32 %v518_v32, %v546_v42 }
 0x16c   :  { %v521_v52 = vmul.f32 %v408_v48, %v191_v7  ;;  %v522_v53 = vmul.f32 %v407_v49, %v192_v41 }
 0x16d   :  { %v548_v16 = vand.u32 4294901760, %v517_v51 }
 0x16e   :  { %v535_v56 = vsel %vm482_vm4, %v521_v52, 0  ;;  %v538_v57 = vsel %vm482_vm4, %v522_v53, 0  ;;  %v337_v58 = vpop.permute.xlu1 %336  ;;  %v324_v59 = vpop.permute.xlu0 %323  ;;  %v10475_v52 = vand.u32 4294901760, %v618_v21 }
 0x16f   :  { %v550_v61 = vand.u32 4294901760, %v538_v57  ;;  %v341_v62 = vsel %vm340_vm3, %v337_v58, %v10309_v18  ;;  %v342_v63 = vsel %vm340_vm3, %v10307_v17, %v337_v58  ;;  %v328_v13 = vsel %vm327_vm0, %v324_v59, %v10303_v12 }
 0x170   :  { %v329_v14 = vsel %vm327_vm0, %v10305_v15, %v324_v59  ;;  %v428_v18 = vrot.slane %v342_v63, 6  ;;  %v552_v28 = vand.u32 4294901760, %v535_v56  ;;  %v639_v17 = vand.u32 4294901760, %v10427_v55 }
 0x171   :  { %v10447_v27 = vpack.c.bf16 %v550_v61, %v546_v42  ;;  %v10450_v8 = vsub.f32 %v538_v57, %v550_v61  ;;  %v429_v12 = vrot.slane %v341_v62, 6  ;;  %v416_v29 = vrot.slane %v329_v14, 7 }
 0x172   :  { %v417_v31 = vrot.slane %v328_v13, 7  ;;  %v350_v32 = vpop.permute.xlu1 %349  ;;  %v309_v15 = vpop.permute.xlu0 %308  ;;  %v10469_v43 = vpack.c.bf16 %v552_v28, %v548_v16  ;;  %v10471_v48 = vsub.f32 %v517_v51, %v548_v16  ;;  %v640_v53 = vsub.f32 %v10427_v55, %v639_v17  ;;  %v193_v13 = vld [vmem:[#allocation11 + $0x30] sm:$0x1] }
 0x173   :  { %v354_v33 = vsel %vm353_vm2, %v350_v32, %v10317_v23  ;;  %v355_v36 = vsel %vm353_vm2, %v10313_v20, %v350_v32  ;;  %v315_v37 = vsel %vm314_vm1, %v309_v15, %v10319_v24  ;;  %v316_v39 = vsel %vm314_vm1, %v10311_v19, %v309_v15  ;;  %8438 = vmatprep.subr.bf16.mxu1 %v10447_v27 }
 0x174   :  { %v440_v40 = vrot.slane %v355_v36, 5  ;;  %v441_v7 = vrot.slane %v354_v33, 5  ;;  %v485_v41 = vsel %vm482_vm4, %v316_v39, %v416_v29  ;;  %v486_v23 = vsel %vm482_vm4, %v315_v37, %v417_v31  ;;  %8440 = vmatpush1.bf16.msra.mxu1 %v10469_v43 }
 0x175   :  { %v490_v42 = vsel %vm487_vm6, %v485_v41, %v428_v18  ;;  %v491_v20 = vsel %vm487_vm6, %v486_v23, %v429_v12  ;;  %v10473_v24 = vsub.f32 %v535_v56, %v552_v28  ;;  %v651_v57 = vand.u32 4294901760, %v10450_v8  ;;  %v194_v18 = vld [vmem:[#allocation11 + $0x38] sm:$0x1]  ;;  %v189_v23 = vld [vmem:[#allocation11 + $0x10] sm:$0xff] }
 0x176   :  { %v378_v49 = vpop.permute.xlu1 %377  ;;  %v365_v19 = vpop.permute.xlu0 %364  ;;  %v495_v58 = vsel %vm492_vm9, %v490_v42, %v440_v40  ;;  %v496_v59 = vsel %vm492_vm9, %v491_v20, %v441_v7  ;;  %v10496_v14 = vand.u32 4294901760, %v629_v26  ;;  %v641_v29 = vand.u32 4294901760, %v640_v53  ;;  %v190_v42 = vld [vmem:[#allocation11 + $0x18] sm:$0xff] }
 0x177   :  { %v380_v51 = vsel %vm379_vm7, %v10362_v47, %v378_v49  ;;  %v383_v56 = vsel %vm379_vm7, %v378_v49, %v10360_v46  ;;  %v367_v62 = vsel %vm366_vm5, %v10324_v25, %v365_v19  ;;  %v370_v63 = vsel %vm366_vm5, %v365_v19, %v10343_v34  ;;  %620 = vmatmul.mubr.f32.vlgmr.msra.gmra.mrb[0].mxu1 %v10475_v52 }
 0x178   :  { %v464_v61 = vrot.slane %v380_v51, 2  ;;  %v452_v16 = vrot.slane %v367_v62, 3  ;;  %v453_v21 = vrot.slane %v370_v63, 3  ;;  %v652_v47 = vsub.f32 %v10450_v8, %v651_v57  ;;  %625 = vmatprep.mubr.f32.mxu1 %v9993_v11 }
 0x179   :  { %v645_v46 = vand.u32 4294901760, %v10471_v48  ;;  %v465_v28 = vrot.slane %v383_v56, 2  ;;  %v500_v25 = vsel %vm497_vm10, %v495_v58, %v10271_v10  ;;  %v501_v12 = vsel %vm497_vm10, %v496_v59, %v10234_v6 }
 0x17a   :  { %v404_v34 = vpop.permute.xlu1 %403  ;;  %v391_v26 = vpop.permute.xlu0 %390  ;;  %v505_v31 = vsel %vm502_vm12, %v500_v25, %v452_v16  ;;  %v657_v10 = vand.u32 4294901760, %v10473_v24  ;;  %v506_v6 = vsel %vm502_vm12, %v501_v12, %v453_v21  ;;  %v653_v40 = vand.u32 4294901760, %v652_v47 }
 0x17b   :  { %v406_v32 = vsel %vm405_vm15, %v10413_v45, %v404_v34  ;;  %v409_v15 = vsel %vm405_vm15, %v404_v34, %v10411_v44  ;;  %v510_v37 = vsel %vm507_vm13, %v505_v31, %v464_v61  ;;  %v393_v39 = vsel %vm392_vm11, %v10379_v60, %v391_v26  ;;  %631 = vmatmul.mubr.f32.gmra.mrb[2].mxu1 %v10496_v14 }
 0x17c   :  { %v523_v33 = vmul.f32 %v406_v32, %v193_v13  ;;  %v524_v36 = vmul.f32 %v409_v15, %v194_v18  ;;  %v396_v45 = vsel %vm392_vm11, %v391_v26, %v10394_v30  ;;  %v646_v44 = vsub.f32 %v10471_v48, %v645_v46  ;;  %728 = vmatprep.mubr.f32.mxu1 %v9993_v11 }
 0x17d   :  { %v476_v20 = vrot.slane %v393_v39, 1  ;;  %v477_v49 = vrot.slane %v396_v45, 1  ;;  %v511_v22 = vsel %vm507_vm13, %v506_v6, %v465_v28  ;;  %v8441_v30 = vpack.c.bf16 %v653_v40, %v641_v29 }
 0x17e   :  { %v541_v7 = vsel %vm482_vm4, %v523_v33, 0  ;;  %v544_v41 = vsel %vm482_vm4, %v524_v36, 0  ;;  %v658_v59 = vsub.f32 %v10473_v24, %v657_v10  ;;  %v647_v63 = vand.u32 4294901760, %v646_v44 }
 0x17f   :  { %v1090_v60 = vand.u32 4294901760, %v544_v41  ;;  %v1092_v19 = vand.u32 4294901760, %v541_v7  ;;  %v515_v53 = vsel %vm512_vm14, %v510_v37, %v476_v20  ;;  %v516_v58 = vsel %vm512_vm14, %v511_v22, %v477_v49  ;;  %8442 = vmatprep.subr.bf16.mxu0 %v8441_v30  ;;  %9487 = vmatprep.subr.bf16.mxu1 %v8441_v30  ;;  %v10591_v20 = vld [vmem:[#allocation14 + $0x88] sm:$0xff]  ;;  %v10635_v22 = vld [vmem:[#allocation14 + $0x18] sm:$0xff] }
 0x180   :  { %v519_v61 = vmul.f32 %v515_v53, %v189_v23  ;;  %v520_v62 = vmul.f32 %v516_v58, %v190_v42  ;;  %v659_v13 = vand.u32 4294901760, %v658_v59  ;;  %v8445_v12 = vpack.c.bf16 %v10450_v8, %v10427_v55  ;;  %v10610_v49 = vld [vmem:[#allocation14 + $0x8] sm:$0xff] }
 0x181   :  { %v10537_v51 = vsub.f32 %v544_v41, %v1090_v60  ;;  %v10539_v56 = vsub.f32 %v541_v7, %v1092_v19  ;;  %v8447_v33 = vpack.c.bf16 %v10473_v24, %v10471_v48  ;;  %v8453_v42 = vpack.c.bf16 %v651_v57, %v639_v17 }
 0x182   :  { %v1088_v21 = vand.u32 4294901760, %v519_v61  ;;  %v1086_v18 = vand.u32 4294901760, %v520_v62  ;;  %v8443_v28 = vpack.c.bf16 %v659_v13, %v647_v63  ;;  %v1688_v8 = vand.u32 4294901760, %v10591_v20 }
 0x183   :  { %v1197_v16 = vand.u32 4294901760, %v10539_v56  ;;  %v1191_v47 = vand.u32 4294901760, %v10537_v51  ;;  %v8455_v57 = vpack.c.bf16 %v657_v10, %v645_v46  ;;  %v10625_v46 = vld [vmem:[#allocation14 + $0x90] sm:$0xff]  ;;  %v10627_v10 = vld [vmem:[#allocation14 + $0x98] sm:$0xff]  ;;  %v1646_v13 = vand.u32 4294901760, %v10635_v22 }
 0x184   :  { %v10543_v25 = vsub.f32 %v519_v61, %v1088_v21  ;;  %v10547_v34 = vpack.c.bf16 %v1090_v60, %v1086_v18  ;;  %v10549_v26 = vsub.f32 %v520_v62, %v1086_v18  ;;  %8444 = vmatpush1.bf16.msra.mxu0 %v8443_v28  ;;  %9488 = vmatpush1.bf16.msra.mxu1 %v8443_v28  ;;  %v1640_v60 = vand.u32 4294901760, %v10610_v49  ;;  %v10648_v61 = vld [vmem:[#allocation14 + $0xa0] sm:$0xff]  ;;  %v10650_v62 = vld [vmem:[#allocation14 + $0xa8] sm:$0xff] }
 0x185   :  { %v10551_v29 = vpack.c.bf16 %v1092_v19, %v1088_v21  ;;  %8446 = vmatprep.subr.bf16.mxu0 %v8445_v12  ;;  %v1192_v32 = vsub.f32 %v10537_v51, %v1191_v47  ;;  %v1198_v6 = vsub.f32 %v10539_v56, %v1197_v16  ;;  %v10622_v24 = vsub.f32 %v10591_v20, %v1688_v8  ;;  %v10633_v19 = vld [vmem:[#allocation14 + $0x10] sm:$0xff]  ;;  %v10667_v21 = vld [vmem:[#allocation14 + $0x20] sm:$0xff]  ;;  %v10682_v12 = vld [vmem:[#allocation14 + $0x28] sm:$0xff] }
 0x186   :  { %8462 = vmatprep.subr.bf16.mxu1 %v10547_v34  ;;  %v1179_v31 = vand.u32 4294901760, %v10549_v26  ;;  %v1185_v15 = vand.u32 4294901760, %v10543_v25  ;;  %v8469_v23 = vpack.c.bf16 %v10537_v51, %v10549_v26  ;;  %v8471_v55 = vpack.c.bf16 %v10539_v56, %v10543_v25 }
 0x187   :  { %723 = vmatmul.mubr.f32.vlgmr.msra.gmra.mrb[0].mxu0 %v10386_v0  ;;  %730 = vmatmul.mubr.f32.vlgmr.msra.gmra.mrb[2].mxu1 %v10388_v5  ;;  %v1193_v45 = vand.u32 4294901760, %v1192_v32  ;;  %v1199_v44 = vand.u32 4294901760, %v1198_v6  ;;  %v1691_v58 = vand.u32 4294901760, %v10625_v46  ;;  %v1694_v59 = vand.u32 4294901760, %v10627_v10 }
 0x188   :  { %v1180_v36 = vsub.f32 %v10549_v26, %v1179_v31  ;;  %v1186_v37 = vsub.f32 %v10543_v25, %v1185_v15  ;;  %8448 = vmatpush1.bf16.msra.mxu0 %v8447_v33  ;;  %808 = vmatprep.mubr.f32.mxu0 %v9993_v11  ;;  %v8477_v30 = vpack.c.bf16 %v1191_v47, %v1179_v31  ;;  %v1643_v63 = vand.u32 4294901760, %v10633_v19  ;;  %v10684_v26 = vld [vmem:[#allocation14 + $0xb0] sm:$0xff]  ;;  %v10729_v25 = vld [vmem:[#allocation14 + $0xc0] sm:$0xff] }
 0x189   :  { %8450 = vmatprep.subr.bf16.mxu0 %v10447_v27  ;;  %8464 = vmatpush1.bf16.msra.mxu1 %v10551_v29  ;;  %v10661_v51 = vsub.f32 %v10610_v49, %v1640_v60  ;;  %v10673_v18 = vsub.f32 %v10625_v46, %v1691_v58  ;;  %v10678_v47 = vsub.f32 %v10627_v10, %v1694_v59  ;;  %v1697_v28 = vand.u32 4294901760, %v10648_v61 }
 0x18a   :  { %v1181_v39 = vand.u32 4294901760, %v1180_v36  ;;  %v1187_v40 = vand.u32 4294901760, %v1186_v37  ;;  %1154 = vmatprep.mubr.f32.mxu1 %v9993_v11  ;;  %v10695_v32 = vsub.f32 %v10633_v19, %v1643_v63  ;;  %v10700_v6 = vsub.f32 %v10635_v22, %v1646_v13 }
 0x18b   :  { %v12905_v33 = vand.u32 4294901760, %v10667_v21  ;;  %v8479_v36 = vpack.c.bf16 %v1197_v16, %v1185_v15  ;;  %v12902_v37 = vand.u32 4294901760, %v10682_v12  ;;  %v10721_v56 = vsub.f32 %v10648_v61, %v1697_v28  ;;  %v10731_v15 = vld [vmem:[#allocation14 + $0xc8] sm:$0xff] }
 0x18c   :  { %v8465_v7 = vpack.c.bf16 %v1193_v45, %v1181_v39  ;;  %v8467_v41 = vpack.c.bf16 %v1199_v44, %v1187_v40  ;;  %1160 = vmatmul.mubr.f32.vlgmr.msra.gmra.mrb[4].mxu1 %v10475_v52  ;;  %v10589_v52 = vld [vmem:[#allocation14 + $0x80] sm:$0xff]  ;;  %v12901_v39 = vand.u32 4294901760, %v10684_v26  ;;  %v10711_v40 = vld [vmem:[#allocation14 + $0x30] sm:$0xff]  ;;  %v10713_v44 = vld [vmem:[#allocation14 + $0x38] sm:$0xff]  ;;  %v10874_v46 = vpack.c.bf16 %v1646_v13, %v1643_v63 }
 0x18d   :  { %1165 = vmatprep.mubr.f32.mxu1 %v9993_v11  ;;  %v1685_v17 = vand.u32 4294901760, %v10589_v52  ;;  %v13103_v22 = vand.u32 4294901760, %v10684_v26  ;;  %v13107_v61 = vand.u32 4294901760, %v10713_v44  ;;  %v13109_v63 = vand.u32 4294901760, %v10729_v25 }
 0x18e   :  { %8466 = vmatprep.subr.bf16.mxu1 %v8465_v7  ;;  %v8553_v7 = vpack.c.bf16 %v10678_v47, %v10673_v18  ;;  %v13110_v13 = vand.u32 4294901760, %v10731_v15  ;;  %vm4232_vm0 = vcmask 130048   ;;  %vm6313_vm1 = vcmask 261120  }
 0x18f   :  { %8468 = vmatpush1.bf16.msra.mxu1 %v8467_v41  ;;  %811 = vmatmul.mubr.f32.vlgmr.msra.gmra.mrb[0].mxu0 %v10402_v35  ;;  %v10617_v48 = vsub.f32 %v10589_v52, %v1685_v17  ;;  %v10740_v41 = vsub.f32 %v10667_v21, %v12905_v33 }
 0x190   :  { %8470 = vmatprep.subr.bf16.mxu1 %v8469_v23  ;;  %8452 = vmatpush1.bf16.msra.mxu0 %v10469_v43  ;;  %v12900_v23 = vand.u32 4294901760, %v10711_v40 }
 0x191   :  { %816 = vmatprep.mubr.f32.mxu0 %v9993_v11  ;;  %8454 = vmatprep.subr.bf16.mxu0 %v8453_v42  ;;  %v8549_v53 = vpack.c.bf16 %v10622_v24, %v10617_v48  ;;  %v12899_v42 = vand.u32 4294901760, %v10713_v44 }
 0x192   :  { %1171 = vmatmul.mubr.f32.gmra.mrb[6].mxu1 %v10496_v14  ;;  %v10608_v14 = vld [vmem:[#allocation14] sm:$0xff] }
 0x193   :  { %1261 = vmatprep.mubr.f32.mxu1 %v9993_v11  ;;  %819 = vmatmul.mubr.f32.gmra.mrb[2].mxu0 %v10407_v38  ;;  %v10789_v3 = vsub.f32 %v10713_v44, %v12899_v42  ;;  %v12907_v42 = vand.u32 4294901760, %v10770_v9  ;;  %v209_v44 = vld [vmem:[#allocation14 + $0x60] sm:$0xff] }
 0x194   :  { %893 = vmatprep.mubr.f32.mxu0 %v9993_v11 }
 0x196   :  { %1263 = vmatmul.mubr.f32.vlgmr.msra.gmra.mrb[4].mxu1 %v10386_v0 }
 0x197   :  { %8472 = vmatpush1.bf16.msra.mxu1 %v8471_v55  ;;  %1268 = vmatprep.mubr.f32.mxu1 %v9993_v11  ;;  %v10748_v55 = vsub.f32 %v10682_v12, %v12902_v37  ;;  %v10812_v37 = vld [vmem:[#allocation14 + $0x58] sm:$0xff] }
 0x198   :  { %897 = vmatmul.mubr.f32.vlgmr.msra.gmra.mrb[0].mxu0 %v10422_v50  ;;  %8474 = vmatprep.subr.bf16.mxu1 %v10547_v34 }
 0x199   :  { %8456 = vmatpush1.bf16.msra.mxu0 %v8455_v57  ;;  %902 = vmatprep.mubr.f32.mxu0 %v9993_v11 }
 0x19a   :  { %8458 = vmatprep.subr.bf16.mxu0 %v10447_v27  ;;  %1270 = vmatmul.mubr.f32.gmra.mrb[6].mxu1 %v10388_v5  ;;  %v1637_v27 = vand.u32 4294901760, %v10608_v14 }
 0x19b   :  { %1348 = vmatprep.mubr.f32.mxu1 %v9993_v11 }
 0x19c   :  { %906 = vmatmul.mubr.f32.gmra.mrb[2].mxu0 %v10425_v54 }
 0x19d   :  { %988 = vmatprep.mubr.f32.mxu0 %v9993_v11 }
 0x19e   :  { %1351 = vmatmul.mubr.f32.vlgmr.msra.gmra.mrb[4].mxu1 %v10402_v35  ;;  %v10656_v35 = vsub.f32 %v10608_v14, %v1637_v27 }
 0x19f   :  { %8476 = vmatpush1.bf16.msra.mxu1 %v10551_v29  ;;  %1356 = vmatprep.mubr.f32.mxu1 %v9993_v11 }
 0x1a0   :  { %990 = vmatmul.mubr.f32.vlgmr.msra.gmra.mrb[0].mxu0 %v10386_v0  ;;  %8478 = vmatprep.subr.bf16.mxu1 %v8477_v30  ;;  %v8551_v31 = vpack.c.bf16 %v10661_v51, %v10656_v35 }
 0x1a1   :  { %8460 = vmatpush1.bf16.msra.mxu0 %v10469_v43  ;;  %995 = vmatprep.mubr.f32.mxu0 %v9993_v11  ;;  %v12906_v43 = vand.u32 4294901760, %v10650_v62 }
 0x1a2   :  { %1359 = vmatmul.mubr.f32.gmra.mrb[6].mxu1 %v10407_v38  ;;  %8550 = vmatprep.subr.bf16.mxu0 %v8549_v53  ;;  %v10686_v38 = vld [vmem:[#allocation14 + $0xb8] sm:$0xff]  ;;  %v12904_v53 = vand.u32 4294901760, %v10729_v25 }
 0x1a3   :  { %1433 = vmatprep.mubr.f32.mxu1 %v9993_v11  ;;  %v12898_v45 = vand.u32 4294901760, %v10686_v38  ;;  %v10726_v16 = vsub.f32 %v10650_v62, %v12906_v43  ;;  %v12909_v43 = vand.u32 4294901760, %v10812_v37 }
 0x1a4   :  { %997 = vmatmul.mubr.f32.gmra.mrb[2].mxu0 %v10388_v5 }
 0x1a5   :  { %1071 = vmatprep.mubr.f32.mxu0 %v9993_v11  ;;  %v10758_v57 = vsub.f32 %v10686_v38, %v12898_v45  ;;  %v8557_v30 = vpack.c.bf16 %v10726_v16, %v10721_v56  ;;  %v8559_v45 = vpack.c.bf16 %v10748_v55, %v10740_v41  ;;  %v10863_v14 = vsub.f32 %v10812_v37, %v12909_v43 }
 0x1a6   :  { %1437 = vmatmul.mubr.f32.vlgmr.msra.gmra.mrb[4].mxu1 %v10422_v50  ;;  %v8555_v50 = vpack.c.bf16 %v10700_v6, %v10695_v32  ;;  %v13114_v43 = vand.u32 4294901760, %v10772_v4 }
 0x1a7   :  { %8480 = vmatpush1.bf16.msra.mxu1 %v8479_v36  ;;  %1442 = vmatprep.mubr.f32.mxu1 %v9993_v11  ;;  %v10765_v36 = vld [vmem:[#allocation14 + $0x40] sm:$0xff] }
 0x1a8   :  { %1073 = vmatmul.mubr.f32.vlgmr.msra.gmra.mrb[0].mxu0 %v10386_v0  ;;  %8482 = vmatprep.subr.bf16.mxu1 %v10547_v34  ;;  %v10753_v34 = vsub.f32 %v10684_v26, %v12901_v39  ;;  %v1661_v20 = vand.u32 4294901760, %v10765_v36  ;;  %v10810_v39 = vld [vmem:[#allocation14 + $0x50] sm:$0xff]  ;;  %v226_v26 = vld [vmem:[#allocation14 + $0xe8] sm:$0xff] }
 0x1a9   :  { %1078 = vmatprep.mubr.f32.mxu0 %v9993_v11  ;;  %8552 = vmatpush3.bf16.msra.mxu0 %v8551_v31  ;;  %v12903_v31 = vand.u32 4294901760, %v10731_v15  ;;  %v12910_v33 = vand.u32 4294901760, %v10810_v39 }
 0x1aa   :  { %1446 = vmatmul.mubr.f32.gmra.mrb[6].mxu1 %v10425_v54  ;;  %8554 = vmatprep.subr.bf16.mxu0 %v8553_v7  ;;  %v10779_v54 = vpack.c.bf16 %v1688_v8, %v1685_v17  ;;  %v10784_v7 = vsub.f32 %v10711_v40, %v12900_v23  ;;  %v8561_v52 = vpack.c.bf16 %v10758_v57, %v10753_v34  ;;  %v1664_v17 = vand.u32 4294901760, %v10767_v2 }
 0x1ab   :  { %1528 = vmatprep.mubr.f32.mxu1 %v9993_v11  ;;  %v10801_v8 = vsub.f32 %v10729_v25, %v12904_v53  ;;  %v12908_v23 = vand.u32 4294901760, %v10772_v4 }
 0x1ac   :  { %1080 = vmatmul.mubr.f32.gmra.mrb[2].mxu0 %v10388_v5  ;;  %v10823_v53 = vsub.f32 %v10767_v2, %v1664_v17 }
 0x1ad   :  { %8556 = vmatpush3.bf16.msra.mxu0 %v8555_v50  ;;  %v10806_v50 = vsub.f32 %v10731_v15, %v12903_v31  ;;  %v10820_v31 = vsub.f32 %v10765_v36, %v1661_v20  ;;  %v10838_v2 = vsub.f32 %v10772_v4, %v12908_v23  ;;  %v10845_v36 = vpack.c.bf16 %v1640_v60, %v1637_v27 }
 0x1ae   :  { %1530 = vmatmul.mubr.f32.vlgmr.msra.gmra.mrb[4].mxu1 %v10386_v0  ;;  %8558 = vmatprep.subr.bf16.mxu0 %v8557_v30  ;;  %v8563_v30 = vpack.c.bf16 %v10789_v3, %v10784_v7  ;;  %v10858_v23 = vsub.f32 %v10810_v39, %v12910_v33  ;;  %v13100_v27 = vand.u32 4294901760, %v10667_v21  ;;  %v13101_v60 = vand.u32 4294901760, %v10682_v12  ;;  %v225_v12 = vld [vmem:[#allocation14 + $0xe0] sm:$0xff] }
 0x1af   :  { %8484 = vmatpush1.bf16.msra.mxu1 %v10551_v29  ;;  %1535 = vmatprep.mubr.f32.mxu1 %v9993_v11  ;;  %v8565_v29 = vpack.c.bf16 %v10806_v50, %v10801_v8  ;;  %v10912_v21 = vpack.c.bf16 %v13110_v13, %v13109_v63  ;;  %v13113_v13 = vand.u32 4294901760, %v10770_v9 }
 0x1b0   :  { %8486 = vmatprep.subr.bf16.mxu1 %v10779_v54  ;;  %v10891_v19 = vpack.c.bf16 %v13101_v60, %v13100_v27  ;;  %v228_v27 = vld [vmem:[#allocation14 + $0xf8] sm:$0xff] }
 0x1b1   :  { %8560 = vmatpush3.bf16.msra.mxu0 %v8559_v45  ;;  %v10833_v45 = vsub.f32 %v10770_v9, %v12907_v42  ;;  %v8567_v42 = vpack.c.bf16 %v10823_v53, %v10820_v31  ;;  %13111 = vst [vmem:[#allocation32_spill] sm:$0xff] %v10912_v21  ;;  %v10923_v33 = vpack.c.bf16 %v13114_v43, %v13113_v13  ;;  %v1878_v43 = vand.u32 4294901760, %v10617_v48 }
 0x1b2   :  { %1537 = vmatmul.mubr.f32.gmra.mrb[6].mxu1 %v10388_v5  ;;  %8562 = vmatprep.subr.bf16.mxu0 %v8561_v52  ;;  %v10851_v52 = vpack.c.bf16 %v1694_v59, %v1691_v58  ;;  %13102 = vst [vmem:[#allocation29_spill] sm:$0xff] %v10891_v19  ;;  %v13104_v58 = vand.u32 4294901760, %v10686_v38  ;;  %v1721_v38 = vand.u32 4294901760, %v225_v12 }
 0x1b3   :  { %1611 = vmatprep.mubr.f32.mxu1 %v9993_v11  ;;  %v8569_v49 = vpack.c.bf16 %v10838_v2, %v10833_v45  ;;  %13115 = vst [vmem:[#allocation34_spill] sm:$0xff] %v10923_v33 }
 0x1b4   :  { %v10898_v59 = vpack.c.bf16 %v13104_v58, %v13103_v22  ;;  %v212_v58 = vld [vmem:[#allocation14 + $0x78] sm:$0xff] }
 0x1b5   :  { %8564 = vmatpush3.bf16.msra.mxu0 %v8563_v30  ;;  %v1673_v30 = vand.u32 4294901760, %v209_v44  ;;  %v1682_v63 = vand.u32 4294901760, %v212_v58 }
 0x1b6   :  { %1613 = vmatmul.mubr.f32.vlgmr.msra.gmra.mrb[4].mxu1 %v10386_v0  ;;  %8566 = vmatprep.subr.bf16.mxu0 %v8565_v29  ;;  %v13099_v0 = vand.u32 4294901760, %v10650_v62  ;;  %13105 = vst [vmem:[#allocation30_spill] sm:$0xff] %v10898_v59  ;;  %v1961_v29 = vsub.f32 %v225_v12, %v1721_v38 }
 0x1b7   :  { %1618 = vmatprep.mubr.f32.mxu1 %v9993_v11  ;;  %8488 = vmatpush3.bf16.msra.mxu1 %v10845_v36  ;;  %v8571_v11 = vpack.c.bf16 %v10863_v14, %v10858_v23 }
 0x1b8   :  { %8490 = vmatprep.subr.bf16.mxu1 %v10851_v52  ;;  %v10881_v10 = vpack.c.bf16 %v13099_v0, %v1697_v28  ;;  %v10916_v28 = vpack.c.bf16 %v1664_v17, %v1661_v20  ;;  %v1730_v20 = vand.u32 4294901760, %v228_v27  ;;  %v211_v17 = vld [vmem:[#allocation14 + $0x70] sm:$0xff] }
 0x1b9   :  { %8568 = vmatpush3.bf16.msra.mxu0 %v8567_v42  ;;  %v210_v42 = vld [vmem:[#allocation14 + $0x68] sm:$0xff] }
 0x1ba   :  { %1620 = vmatmul.mubr.f32.gmra.mrb[6].mxu1 %v10388_v5  ;;  %8570 = vmatprep.subr.bf16.mxu0 %v8569_v49  ;;  %v13106_v5 = vand.u32 4294901760, %v10711_v40  ;;  %13112 = vst [vmem:[#allocation33_spill] sm:$0xff] %v10916_v28  ;;  %v1724_v40 = vand.u32 4294901760, %v226_v26  ;;  %v1676_v25 = vand.u32 4294901760, %v210_v42  ;;  %v1849_v49 = vsub.f32 %v209_v44, %v1673_v30 }
 0x1bb   :  { %8492 = vmatpush3.bf16.msra.mxu1 %v10874_v46  ;;  %v13116_v44 = vand.u32 4294901760, %v10810_v39 }
 0x1bc   :  { %8494 = vmatprep.subr.bf16.mxu1 %v10881_v10  ;;  %v10905_v62 = vpack.c.bf16 %v13107_v61, %v13106_v5  ;;  %v1968_v15 = vsub.f32 %v226_v26, %v1724_v40  ;;  %v1856_v0 = vsub.f32 %v210_v42, %v1676_v25  ;;  %v1679_v61 = vand.u32 4294901760, %v211_v17 }
 0x1bd   :  { %8572 = vmatpush3.bf16.msra.mxu0 %v8571_v11  ;;  %v227_v11 = vld [vmem:[#allocation14 + $0xf0] sm:$0xff]  ;;  %v1982_v26 = vsub.f32 %v228_v27, %v1730_v20  ;;  %v13117_v42 = vand.u32 4294901760, %v10812_v37  ;;  %v10933_v4 = vpack.c.bf16 %v1724_v40, %v1721_v38  ;;  %v10937_v39 = vpack.c.bf16 %v1676_v25, %v1673_v30 }
 0x1be   :  { %13108 = vst [vmem:[#allocation31_spill] sm:$0xff] %v10905_v62  ;;  %v8573_v60 = vpack.c.bf16 %v1968_v15, %v1961_v29  ;;  %v1727_v22 = vand.u32 4294901760, %v227_v11  ;;  %v8575_v5 = vpack.c.bf16 %v1856_v0, %v1849_v49  ;;  %v1969_v13 = vand.u32 4294901760, %v1968_v15 }
 0x1bf   :  { %8496 = vmatpush3.bf16.msra.mxu1 %v10891_v19  ;;  %v10929_v1 = vpack.c.bf16 %v13117_v42, %v13116_v44  ;;  %13119 = vst [vmem:[#allocation36_spill] sm:$0xff] %v10933_v4  ;;  %13120 = vst [vmem:[#allocation37_spill] sm:$0xff] %v10937_v39  ;;  %v1850_v44 = vand.u32 4294901760, %v1849_v49  ;;  %v1857_v42 = vand.u32 4294901760, %v1856_v0 }
 0x1c0   :  { %8498 = vmatprep.subr.bf16.mxu1 %v10898_v59  ;;  %8574 = vmatprep.subr.bf16.mxu0 %v8573_v60  ;;  %v1975_v12 = vsub.f32 %v227_v11, %v1727_v22  ;;  %v1885_v11 = vand.u32 4294901760, %v10622_v24  ;;  %v10941_v27 = vpack.c.bf16 %v1730_v20, %v1727_v22 }
 0x1c1   :  { %8576 = vmatpush3.bf16.msra.mxu0 %v8575_v5  ;;  %13118 = vst [vmem:[#allocation35_spill] sm:$0xff] %v10929_v1  ;;  %v1962_v5 = vand.u32 4294901760, %v1961_v29  ;;  %v10951_v20 = vpack.c.bf16 %v1857_v42, %v1850_v44 }
 0x1c2   :  { %v8577_v60 = vpack.c.bf16 %v1982_v26, %v1975_v12  ;;  %v8613_v37 = vpack.c.bf16 %v1885_v11, %v1878_v43  ;;  %13121 = vst [vmem:[#allocation38_spill] sm:$0xff] %v10941_v27  ;;  %v1886_v38 = vsub.f32 %v10622_v24, %v1885_v11  ;;  %v1851_v11 = vsub.f32 %v1849_v49, %v1850_v44 }
 0x1c3   :  { %8500 = vmatpush3.bf16.msra.mxu1 %v10905_v62  ;;  %v10949_v22 = vpack.c.bf16 %v1969_v13, %v1962_v5 }
 0x1c4   :  { %8502 = vmatprep.subr.bf16.mxu1 %v10912_v21  ;;  %v1870_v21 = vsub.f32 %v212_v58, %v1682_v63  ;;  %8578 = vmatprep.subr.bf16.mxu0 %v8577_v60  ;;  %v10944_v58 = vpack.c.bf16 %v1682_v63, %v1679_v61  ;;  %v1887_v30 = vand.u32 4294901760, %v1886_v38  ;;  %v1963_v60 = vsub.f32 %v1961_v29, %v1962_v5 }
 0x1c5   :  { %v1858_v38 = vsub.f32 %v1856_v0, %v1857_v42 }
 0x1c6   :  { %13122 = vst [vmem:[#allocation39_spill] sm:$0xff] %v10944_v58  ;;  %v1871_v24 = vand.u32 4294901760, %v1870_v21 }
 0x1c7   :  { %8504 = vmatpush3.bf16.msra.mxu1 %v10916_v28  ;;  %v1863_v28 = vsub.f32 %v211_v17, %v1679_v61  ;;  %v1879_v17 = vsub.f32 %v10617_v48, %v1878_v43  ;;  %v1976_v48 = vand.u32 4294901760, %v1975_v12  ;;  %v1983_v61 = vand.u32 4294901760, %v1982_v26 }
 0x1c8   :  { %8506 = vmatprep.subr.bf16.mxu1 %v10923_v33  ;;  %v1970_v43 = vsub.f32 %v1968_v15, %v1969_v13  ;;  %v1872_v29 = vsub.f32 %v1870_v21, %v1871_v24 }
 0x1c9   :  { %v8579_v9 = vpack.c.bf16 %v1870_v21, %v1863_v28  ;;  %v1880_v40 = vand.u32 4294901760, %v1879_v17  ;;  %v1864_v63 = vand.u32 4294901760, %v1863_v28  ;;  %v1964_v17 = vand.u32 4294901760, %v1963_v60 }
 0x1ca   :  { %v1873_v15 = vand.u32 4294901760, %v1872_v29  ;;  %v1766_v21 = vand.u32 4294901760, %v10656_v35 }
 0x1cb   :  { %8508 = vmatpush3.bf16.msra.mxu1 %v10929_v1  ;;  %8580 = vmatpush3.bf16.msra.mxu0 %v8579_v9  ;;  %v8517_v25 = vpack.c.bf16 %v1887_v30, %v1880_v40  ;;  %v10953_v9 = vpack.c.bf16 %v1983_v61, %v1976_v48  ;;  %v1971_v40 = vand.u32 4294901760, %v1970_v43  ;;  %v1852_v30 = vand.u32 4294901760, %v1851_v11 }
 0x1cc   :  { %8510 = vmatprep.subr.bf16.mxu1 %v10933_v4  ;;  %8614 = vmatprep.subr.bf16.mxu0 %v8613_v37  ;;  %v10955_v37 = vpack.c.bf16 %v1871_v24, %v1864_v63  ;;  %v1865_v4 = vsub.f32 %v1863_v28, %v1864_v63  ;;  %v277_v28 = vld [vmem:[#allocation17] sm:$0xff]  ;;  %v1906_v11 = vand.u32 4294901760, %v10721_v56 }
 0x1ce   :  { %v1866_v62 = vand.u32 4294901760, %v1865_v4 }
 0x1cf   :  { %8512 = vmatpush3.bf16.msra.mxu1 %v10937_v39  ;;  %v1984_v39 = vsub.f32 %v1982_v26, %v1983_v61  ;;  %v278_v26 = vld [vmem:[#allocation17 + $0x8] sm:$0xff]  ;;  %v1787_v61 = vand.u32 4294901760, %v10700_v6 }
 0x1d0   :  { %8514 = vmatprep.subr.bf16.mxu1 %v10941_v27  ;;  %v10957_v27 = vpack.c.bf16 %v1971_v40, %v1964_v17  ;;  %v10963_v13 = vpack.c.bf16 %v1873_v15, %v1866_v62  ;;  %v1767_v62 = vsub.f32 %v10656_v35, %v1766_v21  ;;  %v1913_v17 = vand.u32 4294901760, %v10726_v16 }
 0x1d1   :  { %v1985_v5 = vand.u32 4294901760, %v1984_v39  ;;  %v1892_v39 = vand.u32 4294901760, %v10673_v18  ;;  %v1801_v35 = vand.u32 4294901760, %v10748_v55 }
 0x1d2   :  { %v1768_v63 = vand.u32 4294901760, %v1767_v62  ;;  %v8621_v19 = vpack.c.bf16 %v1913_v17, %v1906_v11 }
 0x1d3   :  { %8516 = vmatpush3.bf16.msra.mxu1 %v10944_v58  ;;  %v1977_v58 = vsub.f32 %v1975_v12, %v1976_v48  ;;  %v12931_v12 = vmov 0   ;;  %v1780_v48 = vand.u32 4294901760, %v10695_v32 }
 0x1d4   :  { %8518 = vmatprep.subr.bf16.mxu1 %v8517_v25  ;;  %v1859_v25 = vand.u32 4294901760, %v1858_v38  ;;  %9648 = vset.pattern.permute.xlu0 %v12931_v12  ;;  %v1794_v38 = vand.u32 4294901760, %v10740_v41 }
 0x1d5   :  { %v1978_v33 = vand.u32 4294901760, %v1977_v58  ;;  %9649 = vset.pattern.permute.xlu1 %v12931_v12  ;;  %1628 = vperm.xlu0 %9648, %v277_v28   ;;  %v1899_v58 = vand.u32 4294901760, %v10678_v47  ;;  %v10982_v15 = vsub.f32 %v10695_v32, %v1780_v48  ;;  %v8619_v62 = vpack.c.bf16 %v1787_v61, %v1780_v48 }
 0x1d6   :  { %v10959_v1 = vpack.c.bf16 %v1859_v25, %v1852_v30  ;;  %1633 = vperm.xlu1 %9649, %v278_v26   ;;  %v1893_v30 = vsub.f32 %v10673_v18, %v1892_v39  ;;  %v1788_v18 = vsub.f32 %v10700_v6, %v1787_v61  ;;  %v1920_v48 = vand.u32 4294901760, %v10753_v34 }
 0x1d7   :  { %v10961_v49 = vpack.c.bf16 %v1985_v5, %v1978_v33  ;;  %v1773_v33 = vand.u32 4294901760, %v10661_v51  ;;  %v1900_v25 = vsub.f32 %v10678_v47, %v1899_v58  ;;  %v8617_v26 = vpack.c.bf16 %v1899_v58, %v1892_v39 }
 0x1d8   :  { %v1894_v32 = vand.u32 4294901760, %v1893_v30  ;;  %v1782_v58 = vand.u32 4294901760, %v10982_v15  ;;  %v1927_v6 = vand.u32 4294901760, %v10758_v57  ;;  %v1907_v61 = vsub.f32 %v10721_v56, %v1906_v11 }
 0x1d9   :  { %v1774_v4 = vsub.f32 %v10661_v51, %v1773_v33  ;;  %v8615_v5 = vpack.c.bf16 %v1773_v33, %v1766_v21  ;;  %v1901_v33 = vand.u32 4294901760, %v1900_v25  ;;  %v1914_v56 = vsub.f32 %v10726_v16, %v1913_v17 }
 0x1da   :  { %v1795_v11 = vsub.f32 %v10740_v41, %v1794_v38  ;;  %v1815_v15 = vand.u32 4294901760, %v10789_v3  ;;  %v1908_v16 = vand.u32 4294901760, %v1907_v61 }
 0x1db   :  { %v1775_v24 = vand.u32 4294901760, %v1774_v4 }
 0x1dd   :  { %v8519_v4 = vpack.c.bf16 %v1775_v24, %v1768_v63 }
 0x24a   :  { %v621_v0 = vpop.f32.mrb[0].mxu1 }
 0x24b   :  { %v623_v44 = vpop.f32.mrb[1].mxu1 }
 0x25a   :  { %v731_v42 = vpop.f32.mrb[2].mxu1 }
 0x25b   :  { %v733_v60 = vpop.f32.mrb[3].mxu1 }
 0x27b   :  { %v1074_v43 = vpop.f32.mrb[0].mxu0 }
 0x27c   :  { %v9489_v51 = vadd.f32 %v1074_v43, %v621_v0  ;;  %v1076_v40 = vpop.f32.mrb[1].mxu0  ;;  %v10988_v0 = vpack.c.bf16 %v1801_v35, %v1794_v38  ;;  %v1921_v38 = vsub.f32 %v10753_v34, %v1920_v48  ;;  %v1934_v34 = vand.u32 4294901760, %v10801_v8 }
 0x27d   :  { %v9490_v29 = vadd.f32 %v1076_v40, %v623_v44 }
 0x27e   :  { %v10984_v28 = vand.u32 4294901760, %v9489_v51 }
 0x27f   :  { %v10986_v12 = vand.u32 4294901760, %v9490_v29  ;;  %v1081_v59 = vpop.f32.mrb[2].mxu0 }
 0x280   :  { %13123 = vst [vmem:[#allocation40_spill] sm:$0xff] %v10984_v28  ;;  %v10992_v47 = vsub.f32 %v9489_v51, %v10984_v28  ;;  %v9491_v44 = vadd.f32 %v1081_v59, %v731_v42  ;;  %v1083_v21 = vpop.f32.mrb[3].mxu0  ;;  %v1789_v51 = vand.u32 4294901760, %v1788_v18  ;;  %v1802_v18 = vsub.f32 %v10748_v55, %v1801_v35 }
 0x281   :  { %v10995_v43 = vsub.f32 %v9490_v29, %v10986_v12  ;;  %v9492_v39 = vadd.f32 %v1083_v21, %v733_v60  ;;  %v1808_v60 = vand.u32 4294901760, %v10784_v7  ;;  %v1915_v35 = vand.u32 4294901760, %v1914_v56 }
 0x282   :  { %v12936_v63 = vand.u32 4294901760, %v10992_v47  ;;  %v11000_v24 = vand.u32 4294901760, %v9491_v44 }
 0x283   :  { %v11004_v59 = vand.u32 4294901760, %v9492_v39  ;;  %2132 = vmatprep.mubr.f32.mxu0 %v10995_v43  ;;  %v1734_v42 = vand.u32 4294901760, %v10995_v43  ;;  %v1809_v61 = vsub.f32 %v10784_v7, %v1808_v60 }
 0x284   :  { %13124 = vst [vmem:[#allocation41_spill] sm:$0xff] %v11000_v24  ;;  %v1741_v40 = vsub.f32 %v10992_v47, %v12936_v63  ;;  %v11013_v30 = vsub.f32 %v9491_v44, %v11000_v24  ;;  %2135 = vmatmul.mubr.f32.vlgmr.msra.gmra.mrb[4].mxu0 %v10992_v47  ;;  %v8521_v44 = vpack.c.bf16 %v1901_v33, %v1894_v32  ;;  %v1803_v33 = vand.u32 4294901760, %v1802_v18 }
 0x285   :  { %13125 = vst [vmem:[#allocation42_spill] sm:$0xff] %v11004_v59  ;;  %v11019_v25 = vsub.f32 %v9492_v39, %v11004_v59  ;;  %8616 = vmatpush3.bf16.msra.mxu0 %v8615_v5  ;;  %v1735_v29 = vsub.f32 %v10995_v43, %v1734_v42  ;;  %v8625_v63 = vpack.c.bf16 %v1927_v6, %v1920_v48  ;;  %v11263_v43 = vld [vmem:[#allocation14 + $0x1f0] sm:$0xff] }
 0x286   :  { %8618 = vmatprep.subr.bf16.mxu0 %v8617_v26  ;;  %v12937_v21 = vand.u32 4294901760, %v11013_v30  ;;  %v1928_v5 = vsub.f32 %v10758_v57, %v1927_v6  ;;  %v1742_v39 = vand.u32 4294901760, %v1741_v40  ;;  %v1796_v26 = vand.u32 4294901760, %v1795_v11 }
 0x287   :  { %2141 = vmatprep.mubr.f32.mxu0 %v11019_v25  ;;  %v1736_v41 = vand.u32 4294901760, %v1735_v29  ;;  %v12938_v17 = vand.u32 4294901760, %v11019_v25  ;;  %v1941_v57 = vand.u32 4294901760, %v10806_v50  ;;  %v8523_v6 = vpack.c.bf16 %v1789_v51, %v1782_v58 }
 0x288   :  { %2144 = vmatmul.mubr.f32.gmra.mrb[6].mxu0 %v11013_v30  ;;  %v1756_v55 = vsub.f32 %v11013_v30, %v12937_v21  ;;  %v8627_v11 = vpack.c.bf16 %v1815_v15, %v1808_v60  ;;  %v1922_v29 = vand.u32 4294901760, %v1921_v38  ;;  %v1929_v18 = vand.u32 4294901760, %v1928_v5 }
 0x289   :  { %8620 = vmatpush3.bf16.msra.mxu0 %v8619_v62  ;;  %1737 = vmatprep.mubr.f32.mxu1 %v1736_v41  ;;  %v1750_v32 = vsub.f32 %v11019_v25, %v12938_v17  ;;  %v11040_v48 = vpop.f32.mrb[4].mxu1  ;;  %v1816_v62 = vsub.f32 %v10789_v3, %v1815_v15  ;;  %v8525_v21 = vpack.c.bf16 %v1915_v35, %v1908_v16  ;;  %v1822_v58 = vand.u32 4294901760, %v10820_v31 }
 0x28a   :  { %2429 = vmatprep.mubr.f32.mxu0 %v10986_v12  ;;  %1743 = vmatmul.mubr.f32.vlgmr.msra.gmra.mrb[8].mxu1 %v1742_v39  ;;  %v11045_v40 = vpop.f32.mrb[5].mxu1  ;;  %v1757_v41 = vand.u32 4294901760, %v1756_v55  ;;  %v1935_v17 = vsub.f32 %v10801_v8, %v1934_v34  ;;  %v1942_v39 = vsub.f32 %v10806_v50, %v1941_v57  ;;  %v8527_v7 = vpack.c.bf16 %v1803_v33, %v1796_v26 }
 0x28b   :  { %8520 = vmatpush3.bf16.msra.mxu1 %v8519_v4  ;;  %8622 = vmatprep.subr.bf16.mxu0 %v8621_v19  ;;  %v1751_v56 = vand.u32 4294901760, %v1750_v32  ;;  %v8629_v3 = vpack.c.bf16 %v1941_v57, %v1934_v34  ;;  %v1829_v19 = vand.u32 4294901760, %v10823_v53  ;;  %v1810_v51 = vand.u32 4294901760, %v1809_v61 }
 0x28c   :  { %8522 = vmatprep.subr.bf16.mxu1 %v8521_v44  ;;  %v1817_v60 = vand.u32 4294901760, %v1816_v62  ;;  %v1948_v15 = vand.u32 4294901760, %v10833_v45  ;;  %v1955_v8 = vand.u32 4294901760, %v10838_v2  ;;  %v1823_v44 = vsub.f32 %v10820_v31, %v1822_v58 }
 0x28d   :  { %8624 = vmatpush3.bf16.msra.mxu0 %v10988_v0  ;;  %1752 = vmatprep.mubr.f32.mxu1 %v1751_v56  ;;  %v11052_v4 = vpop.f32.mrb[6].mxu1  ;;  %v8529_v0 = vpack.c.bf16 %v1929_v18, %v1922_v29  ;;  %v1830_v16 = vsub.f32 %v10823_v53, %v1829_v19  ;;  %v1936_v38 = vand.u32 4294901760, %v1935_v17  ;;  %v1943_v5 = vand.u32 4294901760, %v1942_v39  ;;  %v11070_v29 = vld [vmem:[#allocation14 + $0x180] sm:$0xff]  ;;  %v11072_v18 = vld [vmem:[#allocation14 + $0x188] sm:$0xff] }
 0x28e   :  { %1758 = vmatmul.mubr.f32.gmra.mrb[10].mxu1 %v1757_v41  ;;  %8626 = vmatprep.subr.bf16.mxu0 %v8625_v63  ;;  %v11056_v50 = vpop.f32.mrb[7].mxu1  ;;  %v1949_v63 = vsub.f32 %v10833_v45, %v1948_v15  ;;  %v1956_v55 = vsub.f32 %v10838_v2, %v1955_v8  ;;  %v8631_v35 = vpack.c.bf16 %v1829_v19, %v1822_v58  ;;  %v1836_v26 = vand.u32 4294901760, %v10858_v23  ;;  %v11085_v19 = vld [vmem:[#allocation14 + $0x190] sm:$0xff] }
 0x28f   :  { %8524 = vmatpush3.bf16.msra.mxu1 %v8523_v6  ;;  %1988 = vmatprep.mubr.f32.mxu1 %v10986_v12  ;;  %v1843_v32 = vand.u32 4294901760, %v10863_v14  ;;  %v8531_v33 = vpack.c.bf16 %v1817_v60, %v1810_v51  ;;  %v8633_v34 = vpack.c.bf16 %v1955_v8, %v1948_v15  ;;  %v1824_v31 = vand.u32 4294901760, %v1823_v44  ;;  %v11087_v51 = vld [vmem:[#allocation14 + $0x198] sm:$0xff]  ;;  %v11102_v44 = vld [vmem:[#allocation14 + $0x110] sm:$0xff] }
 0x290   :  { %8526 = vmatprep.subr.bf16.mxu1 %v8525_v21  ;;  %v1831_v57 = vand.u32 4294901760, %v1830_v16  ;;  %v1837_v53 = vsub.f32 %v10858_v23, %v1836_v26  ;;  %v8533_v45 = vpack.c.bf16 %v1943_v5, %v1936_v38  ;;  %v1950_v17 = vand.u32 4294901760, %v1949_v63  ;;  %v11106_v16 = vld [vmem:[#allocation14 + $0x1a0] sm:$0xff]  ;;  %v11108_v38 = vld [vmem:[#allocation14 + $0x1a8] sm:$0xff] }
 0x291   :  { %8628 = vmatpush3.bf16.msra.mxu0 %v8627_v11  ;;  %v1844_v21 = vsub.f32 %v10863_v14, %v1843_v32  ;;  %v1957_v2 = vand.u32 4294901760, %v1956_v55  ;;  %v8635_v6 = vpack.c.bf16 %v1843_v32, %v1836_v26  ;;  %v11068_v61 = vand.u32 4294901760, %v11045_v40  ;;  %v11132_v26 = vld [vmem:[#allocation14 + $0x120] sm:$0xff]  ;;  %v11134_v32 = vld [vmem:[#allocation14 + $0x128] sm:$0xff] }
 0x292   :  { %8630 = vmatprep.subr.bf16.mxu0 %v8629_v3  ;;  %v8535_v62 = vpack.c.bf16 %v1831_v57, %v1824_v31  ;;  %v1838_v56 = vand.u32 4294901760, %v1837_v53  ;;  %v12959_v41 = vand.u32 4294901760, %v11070_v29  ;;  %v12956_v39 = vand.u32 4294901760, %v11072_v18  ;;  %v11083_v3 = vld [vmem:[#allocation14 + $0x108] sm:$0xff] }
 0x293   :  { %8528 = vmatpush3.bf16.msra.mxu1 %v8527_v7  ;;  %13126 = vst [vmem:[#allocation43_spill] sm:$0xff] %v11068_v61  ;;  %v1845_v11 = vand.u32 4294901760, %v1844_v21  ;;  %v8537_v23 = vpack.c.bf16 %v1957_v2, %v1950_v17  ;;  %v11076_v14 = vsub.f32 %v11045_v40, %v11068_v61  ;;  %v11081_v7 = vld [vmem:[#allocation14 + $0x100] sm:$0xff]  ;;  %v12951_v8 = vand.u32 4294901760, %v11085_v19  ;;  %v11162_v17 = vld [vmem:[#allocation14 + $0x130] sm:$0xff]  ;;  %v11164_v2 = vld [vmem:[#allocation14 + $0x138] sm:$0xff] }
 0x294   :  { %8530 = vmatprep.subr.bf16.mxu1 %v8529_v0  ;;  %v12955_v40 = vand.u32 4294901760, %v11081_v7  ;;  %v11098_v15 = vpack.c.bf16 %v12956_v39, %v12959_v41  ;;  %v12950_v0 = vand.u32 4294901760, %v11087_v51  ;;  %v12947_v5 = vand.u32 4294901760, %v11102_v44  ;;  %v11260_v41 = vld [vmem:[#allocation14 + $0x168] sm:$0xff]  ;;  %v13174_v61 = vld [vmem:[#allocation36_spill] sm:$0xff] }
 0x295   :  { %8632 = vmatpush3.bf16.msra.mxu0 %v8631_v35  ;;  %v8539_v58 = vpack.c.bf16 %v1845_v11, %v1838_v56  ;;  %v12939_v60 = vand.u32 4294901760, %v11076_v14  ;;  %v12944_v35 = vand.u32 4294901760, %v11108_v38  ;;  %v12940_v57 = vand.u32 4294901760, %v11134_v32 }
 0x296   :  { %8634 = vmatprep.subr.bf16.mxu0 %v8633_v34  ;;  %13127 = vst [vmem:[#allocation44_spill] sm:$0xff] %v11098_v15  ;;  %v11139_v34 = vld [vmem:[#allocation14 + $0x1b8] sm:$0xff]  ;;  %v12949_v11 = vand.u32 4294901760, %v11162_v17 }
 0x297   :  { %8532 = vmatpush3.bf16.msra.mxu1 %v8531_v33  ;;  %v2653_v55 = vsub.f32 %v11076_v14, %v12939_v60  ;;  %v11137_v33 = vld [vmem:[#allocation14 + $0x1b0] sm:$0xff]  ;;  %v11192_v60 = vld [vmem:[#allocation14 + $0x140] sm:$0xff] }
 0x298   :  { %8534 = vmatprep.subr.bf16.mxu1 %v8533_v45  ;;  %v12943_v21 = vand.u32 4294901760, %v11137_v33  ;;  %v12942_v45 = vand.u32 4294901760, %v11139_v34 }
 0x299   :  { %8636 = vmatpush3.bf16.msra.mxu0 %v8635_v6  ;;  %v2654_v53 = vand.u32 4294901760, %v2653_v55  ;;  %v11167_v6 = vld [vmem:[#allocation14 + $0x1c0] sm:$0xff] }
 0x29a   :  { %8638 = vmatprep.subr.bf16.mxu0 %v10949_v22  ;;  %v12954_v22 = vand.u32 4294901760, %v11083_v3 }
 0x29b   :  { %8536 = vmatpush3.bf16.msra.mxu1 %v8535_v62  ;;  %v11169_v62 = vld [vmem:[#allocation14 + $0x1c8] sm:$0xff] }
 0x29c   :  { %8538 = vmatprep.subr.bf16.mxu1 %v8537_v23  ;;  %v11188_v23 = vpack.c.bf16 %v12942_v45, %v12943_v21  ;;  %v12952_v55 = vand.u32 4294901760, %v11169_v62  ;;  %v12958_v21 = vand.u32 4294901760, %v11192_v60 }
 0x29d   :  { %8640 = vmatpush3.bf16.msra.mxu0 %v10951_v20  ;;  %v11104_v20 = vld [vmem:[#allocation14 + $0x118] sm:$0xff] }
 0x29e   :  { %8642 = vmatprep.subr.bf16.mxu0 %v10953_v9  ;;  %v11116_v9 = vpack.c.bf16 %v12954_v22, %v12955_v40  ;;  %v12946_v63 = vand.u32 4294901760, %v11104_v20  ;;  %13133 = vst [vmem:[#allocation50_spill] sm:$0xff] %v11188_v23  ;;  %v11247_v22 = vand.u32 4294901760, %v11056_v50 }
 0x29f   :  { %8540 = vmatpush3.bf16.msra.mxu1 %v8539_v58  ;;  %v12953_v58 = vand.u32 4294901760, %v11167_v6 }
 0x2a0   :  { %8542 = vmatprep.subr.bf16.mxu1 %v10957_v27  ;;  %13128 = vst [vmem:[#allocation45_spill] sm:$0xff] %v11116_v9  ;;  %v11128_v27 = vpack.c.bf16 %v12950_v0, %v12951_v8  ;;  %v11149_v31 = vpack.c.bf16 %v12946_v63, %v12947_v5  ;;  %v11229_v0 = vld [vmem:[#allocation14 + $0x1e0] sm:$0xff]  ;;  %v11231_v8 = vld [vmem:[#allocation14 + $0x1e8] sm:$0xff]  ;;  %13138 = vst [vmem:[#allocation55_spill] sm:$0xff] %v11247_v22 }
 0x2a1   :  { %8644 = vmatpush3.bf16.msra.mxu0 %v10955_v37  ;;  %v12945_v37 = vand.u32 4294901760, %v11106_v16 }
 0x2a2   :  { %8678 = vmatprep.subr.bf16.mxu0 %v11098_v15  ;;  %13129 = vst [vmem:[#allocation46_spill] sm:$0xff] %v11128_v27  ;;  %13130 = vst [vmem:[#allocation47_spill] sm:$0xff] %v11149_v31  ;;  %v13152_v15 = vld [vmem:[#allocation32_spill] sm:$0xff] }
 0x2a3   :  { %8544 = vmatpush3.bf16.msra.mxu1 %v10959_v1  ;;  %v12941_v1 = vand.u32 4294901760, %v11132_v26 }
 0x2a4   :  { %2431 = vmatmul.mubr.f32.vlgmr.msra.gmra.mrb[8].mxu0 %v10984_v28  ;;  %8546 = vmatprep.subr.bf16.mxu1 %v10961_v49  ;;  %v11158_v49 = vpack.c.bf16 %v12944_v35, %v12945_v37  ;;  %v11218_v37 = vpack.c.bf16 %v12952_v55, %v12953_v58  ;;  %v11235_v55 = vand.u32 4294901760, %v11040_v48 }
 0x2a5   :  { %2436 = vmatprep.mubr.f32.mxu0 %v11004_v59  ;;  %8680 = vmatpush3.bf16.msra.mxu0 %v11116_v9  ;;  %v11178_v56 = vpack.c.bf16 %v12940_v57, %v12941_v1  ;;  %v11194_v57 = vld [vmem:[#allocation14 + $0x148] sm:$0xff]  ;;  %v11200_v1 = vld [vmem:[#allocation14 + $0x1d8] sm:$0xff] }
 0x2a6   :  { %8682 = vmatprep.subr.bf16.mxu0 %v11128_v27  ;;  %13131 = vst [vmem:[#allocation48_spill] sm:$0xff] %v11158_v49  ;;  %v12957_v35 = vand.u32 4294901760, %v11194_v57  ;;  %13135 = vst [vmem:[#allocation52_spill] sm:$0xff] %v11218_v37  ;;  %v12964_v5 = vand.u32 4294901760, %v11200_v1 }
 0x2a7   :  { %8548 = vmatpush3.bf16.msra.mxu1 %v10963_v13  ;;  %13132 = vst [vmem:[#allocation49_spill] sm:$0xff] %v11178_v56  ;;  %v12948_v13 = vand.u32 4294901760, %v11164_v2  ;;  %13136 = vst [vmem:[#allocation53_spill] sm:$0xff] %v11235_v55 }
 0x2a8   :  { %2438 = vmatmul.mubr.f32.gmra.mrb[10].mxu0 %v11000_v24  ;;  %8582 = vmatprep.subr.bf16.mxu1 %v10779_v54  ;;  %v11242_v58 = vpack.c.bf16 %v12957_v35, %v12958_v21  ;;  %v11258_v21 = vld [vmem:[#allocation14 + $0x160] sm:$0xff] }
 0x2a9   :  { %8684 = vmatpush3.bf16.msra.mxu0 %v11149_v31  ;;  %2655 = vmatprep.mubr.f32.mxu0 %v2654_v53  ;;  %v11198_v53 = vld [vmem:[#allocation14 + $0x1d0] sm:$0xff]  ;;  %v11208_v45 = vpack.c.bf16 %v12948_v13, %v12949_v11  ;;  %v11224_v11 = vld [vmem:[#allocation14 + $0x158] sm:$0xff]  ;;  %v11286_v31 = vsub.f32 %v11056_v50, %v11247_v22 }
 0x2aa   :  { %1990 = vmatmul.mubr.f32.vlgmr.msra.gmra.mrb[12].mxu1 %v10984_v28  ;;  %8686 = vmatprep.subr.bf16.mxu0 %v11158_v49  ;;  %v12965_v63 = vand.u32 4294901760, %v11198_v53  ;;  %v11222_v13 = vld [vmem:[#allocation14 + $0x150] sm:$0xff]  ;;  %13137 = vst [vmem:[#allocation54_spill] sm:$0xff] %v11242_v58  ;;  %v13145_v39 = vand.u32 4294901760, %v11224_v11  ;;  %v13151_v49 = vld [vmem:[#allocation31_spill] sm:$0xff]  ;;  %v13162_v22 = vld [vmem:[#allocation33_spill] sm:$0xff] }
 0x2ab   :  { %1995 = vmatprep.mubr.f32.mxu1 %v11004_v59  ;;  %8584 = vmatpush3.bf16.msra.mxu1 %v10845_v36  ;;  %13134 = vst [vmem:[#allocation51_spill] sm:$0xff] %v11208_v45  ;;  %v13144_v35 = vand.u32 4294901760, %v11222_v13  ;;  %13147 = vst [vmem:[#allocation58_spill] sm:$0xff] %v11286_v31 }
 0x2ac   :  { %8586 = vmatprep.subr.bf16.mxu1 %v10851_v52  ;;  %v11254_v40 = vpack.c.bf16 %v12964_v5, %v12965_v63  ;;  %v11270_v5 = vsub.f32 %v11040_v48, %v11235_v55  ;;  %v11273_v63 = vand.u32 4294901760, %v11052_v4  ;;  %v13148_v48 = vand.u32 4294901760, %v11229_v0 }
 0x2ad   :  { %8688 = vmatpush3.bf16.msra.mxu0 %v11178_v56  ;;  %v11299_v56 = vld [vmem:[#allocation14 + $0x178] sm:$0xff]  ;;  %v13157_v55 = vand.u32 4294901760, %v11070_v29 }
 0x2ae   :  { %1997 = vmatmul.mubr.f32.gmra.mrb[14].mxu1 %v11000_v24  ;;  %8690 = vmatprep.subr.bf16.mxu0 %v11188_v23  ;;  %13139 = vst [vmem:[#allocation56_spill] sm:$0xff] %v11254_v40  ;;  %v11280_v23 = vpack.c.bf16 %v13145_v39, %v13144_v35  ;;  %v11297_v35 = vld [vmem:[#allocation14 + $0x170] sm:$0xff]  ;;  %v13163_v50 = vand.u32 4294901760, %v11270_v5 }
 0x2af   :  { %8588 = vmatpush3.bf16.msra.mxu1 %v10874_v46  ;;  %2248 = vmatprep.mubr.f32.mxu1 %v1734_v42  ;;  %v13140_v42 = vld [vmem:[#allocation29_spill] sm:$0xff]  ;;  %v11321_v24 = vsub.f32 %v11070_v29, %v13157_v55  ;;  %v13164_v55 = vld [vmem:[#allocation34_spill] sm:$0xff] }
 0x2b0   :  { %8590 = vmatprep.subr.bf16.mxu1 %v10881_v10  ;;  %13142 = vst [vmem:[#allocation29_spill] sm:$0xff] %v11270_v5  ;;  %13146 = vst [vmem:[#allocation57_spill] sm:$0xff] %v11280_v23  ;;  %v2659_v29 = vsub.f32 %v11270_v5, %v13163_v50  ;;  %v13168_v50 = vand.u32 4294901760, %v11299_v56  ;;  %v13178_v5 = vand.u32 4294901760, %v11106_v16 }
 0x2b1   :  { %8692 = vmatpush3.bf16.msra.mxu0 %v11208_v45  ;;  %v11265_v45 = vld [vmem:[#allocation14 + $0x1f8] sm:$0xff] }
 0x2b2   :  { %8694 = vmatprep.subr.bf16.mxu0 %v11218_v37  ;;  %v13141_v37 = vld [vmem:[#allocation30_spill] sm:$0xff] }
 0x2b3   :  { %8592 = vmatpush3.bf16.msra.mxu1 %v13140_v42  ;;  %13143 = vst [vmem:[#allocation30_spill] sm:$0xff] %v11273_v63 }
 0x2b4   :  { %8594 = vmatprep.subr.bf16.mxu1 %v13141_v37 }
 0x2b5   :  { %8696 = vmatpush3.bf16.msra.mxu0 %v11242_v58  ;;  %v13149_v58 = vand.u32 4294901760, %v11231_v8 }
 0x2b6   :  { %8698 = vmatprep.subr.bf16.mxu0 %v11254_v40  ;;  %v11306_v40 = vsub.f32 %v11052_v4, %v11273_v63  ;;  %v13158_v4 = vand.u32 4294901760, %v11072_v18  ;;  %v13170_v63 = vand.u32 4294901760, %v11286_v31 }
 0x2b7   :  { %v11293_v27 = vpack.c.bf16 %v13149_v58, %v13148_v48  ;;  %8596 = vmatpush3.bf16.msra.mxu1 %v13151_v49  ;;  %v13154_v58 = vand.u32 4294901760, %v11258_v21  ;;  %v13155_v48 = vand.u32 4294901760, %v11260_v41 }
 0x2b8   :  { %8598 = vmatprep.subr.bf16.mxu1 %v13152_v15  ;;  %13153 = vst [vmem:[#allocation31_spill] sm:$0xff] %v11306_v40  ;;  %v2668_v28 = vsub.f32 %v11286_v31, %v13170_v63  ;;  %v13175_v63 = vand.u32 4294901760, %v11306_v40 }
 0x2b9   :  { %13150 = vst [vmem:[#allocation59_spill] sm:$0xff] %v11293_v27  ;;  %8700 = vmatpush3.bf16.msra.mxu0 %v11280_v23  ;;  %v11313_v39 = vpack.c.bf16 %v13155_v48, %v13154_v58  ;;  %v11326_v23 = vsub.f32 %v11072_v18, %v13158_v4  ;;  %v13159_v58 = vand.u32 4294901760, %v11263_v43  ;;  %v13160_v48 = vand.u32 4294901760, %v11265_v45 }
 0x2ba   :  { %8702 = vmatprep.subr.bf16.mxu0 %v11293_v27  ;;  %v13165_v18 = vand.u32 4294901760, %v11081_v7  ;;  %v13166_v27 = vand.u32 4294901760, %v11083_v3 }
 0x2bb   :  { %13156 = vst [vmem:[#allocation32_spill] sm:$0xff] %v11313_v39  ;;  %v11333_v9 = vpack.c.bf16 %v13160_v48, %v13159_v58  ;;  %8600 = vmatpush3.bf16.msra.mxu1 %v13162_v22  ;;  %v13167_v48 = vand.u32 4294901760, %v11297_v35 }
 0x2bc   :  { %8602 = vmatprep.subr.bf16.mxu1 %v13164_v55  ;;  %v11344_v4 = vsub.f32 %v11081_v7, %v13165_v18  ;;  %v11349_v58 = vsub.f32 %v11083_v3, %v13166_v27  ;;  %v13171_v7 = vand.u32 4294901760, %v11085_v19  ;;  %v13172_v3 = vand.u32 4294901760, %v11087_v51 }
 0x2bd   :  { %13161 = vst [vmem:[#allocation60_spill] sm:$0xff] %v11333_v9  ;;  %8704 = vmatpush3.bf16.msra.mxu0 %v11313_v39  ;;  %v11356_v59 = vpack.c.bf16 %v13168_v50, %v13167_v48  ;;  %v8741_v48 = vpack.c.bf16 %v11326_v23, %v11321_v24  ;;  %v13173_v50 = vld [vmem:[#allocation35_spill] sm:$0xff]  ;;  %v2660_v39 = vand.u32 4294901760, %v2659_v29 }
 0x2be   :  { %v11364_v18 = vsub.f32 %v11085_v19, %v13171_v7  ;;  %v11369_v27 = vsub.f32 %v11087_v51, %v13172_v3  ;;  %8706 = vmatprep.subr.bf16.mxu0 %v11333_v9  ;;  %v2674_v19 = vsub.f32 %v11306_v40, %v13175_v63  ;;  %v13176_v7 = vand.u32 4294901760, %v11102_v44 }
 0x2bf   :  { %13169 = vst [vmem:[#allocation33_spill] sm:$0xff] %v11356_v59  ;;  %8604 = vmatpush3.bf16.msra.mxu1 %v13173_v50  ;;  %v13177_v51 = vand.u32 4294901760, %v11104_v20  ;;  %v8743_v29 = vpack.c.bf16 %v11349_v58, %v11344_v4  ;;  %v2669_v9 = vand.u32 4294901760, %v2668_v28  ;;  %v11395_v63 = vsub.f32 %v11106_v16, %v13178_v5 }
 0x2c0   :  { %8606 = vmatprep.subr.bf16.mxu1 %v13174_v61  ;;  %v11382_v31 = vsub.f32 %v11102_v44, %v13176_v7  ;;  %v13179_v40 = vand.u32 4294901760, %v11108_v38  ;;  %v13180_v7 = vld [vmem:[#allocation37_spill] sm:$0xff]  ;;  %v2675_v28 = vand.u32 4294901760, %v2674_v19  ;;  %v13183_v5 = vand.u32 4294901760, %v11134_v32 }
 0x2c1   :  { %v11387_v3 = vsub.f32 %v11104_v20, %v13177_v51  ;;  %8708 = vmatpush3.bf16.msra.mxu0 %v11356_v59  ;;  %v8745_v20 = vpack.c.bf16 %v11369_v27, %v11364_v18  ;;  %v13181_v51 = vld [vmem:[#allocation38_spill] sm:$0xff]  ;;  %v13182_v59 = vand.u32 4294901760, %v11132_v26  ;;  %v13185_v19 = vand.u32 4294901760, %v11139_v34 }
 0x2c2   :  { %v11400_v44 = vsub.f32 %v11108_v38, %v13179_v40  ;;  %8742 = vmatprep.subr.bf16.mxu0 %v8741_v48  ;;  %v11414_v40 = vsub.f32 %v11134_v32, %v13183_v5  ;;  %v13186_v32 = vld [vmem:[#allocation39_spill] sm:$0xff] }
 0x2c3   :  { %8608 = vmatpush3.bf16.msra.mxu1 %v13180_v7  ;;  %v11409_v16 = vsub.f32 %v11132_v26, %v13182_v59  ;;  %v8747_v38 = vpack.c.bf16 %v11387_v3, %v11382_v31  ;;  %v11426_v59 = vsub.f32 %v11139_v34, %v13185_v19 }
 0x2c4   :  { %2661 = vmatmul.mubr.f32.vlgmr.msra.gmra.mrb[12].mxu0 %v2660_v39  ;;  %8610 = vmatprep.subr.bf16.mxu1 %v13181_v51  ;;  %v13184_v39 = vand.u32 4294901760, %v11137_v33  ;;  %v8749_v26 = vpack.c.bf16 %v11400_v44, %v11395_v63 }
 0x2c5   :  { %8744 = vmatpush3.bf16.msra.mxu0 %v8743_v29  ;;  %2670 = vmatprep.mubr.f32.mxu0 %v2669_v9  ;;  %v13187_v9 = vand.u32 4294901760, %v11162_v17  ;;  %v8751_v34 = vpack.c.bf16 %v11414_v40, %v11409_v16 }
 0x2c6   :  { %v11421_v48 = vsub.f32 %v11137_v33, %v13184_v39  ;;  %8746 = vmatprep.subr.bf16.mxu0 %v8745_v20  ;;  %v13188_v33 = vand.u32 4294901760, %v11164_v2  ;;  %v13189_v20 = vand.u32 4294901760, %v11167_v6  ;;  %v13191_v39 = vand.u32 4294901760, %v10992_v47 }
 0x2c7   :  { %8612 = vmatpush3.bf16.msra.mxu1 %v13186_v32  ;;  %v11435_v29 = vsub.f32 %v11162_v17, %v13187_v9 }
 0x2c8   :  { %8646 = vmatprep.subr.bf16.mxu1 %v10779_v54  ;;  %2676 = vmatmul.mubr.f32.gmra.mrb[14].mxu0 %v2675_v28  ;;  %v11440_v5 = vsub.f32 %v11164_v2, %v13188_v33  ;;  %v11448_v54 = vsub.f32 %v11167_v6, %v13189_v20  ;;  %v13190_v28 = vand.u32 4294901760, %v11169_v62  ;;  %v8753_v2 = vpack.c.bf16 %v11426_v59, %v11421_v48 }
 0x2c9   :  { %8748 = vmatpush3.bf16.msra.mxu0 %v8747_v38  ;;  %3050 = vmatprep.mubr.f32.mxu0 %v11076_v14  ;;  %v13192_v38 = vand.u32 4294901760, %v11019_v25  ;;  %v13193_v6 = vand.u32 4294901760, %v11192_v60  ;;  %v13195_v25 = vand.u32 4294901760, %v11198_v53 }
 0x2ca   :  { %v11453_v17 = vsub.f32 %v11169_v62, %v13190_v28  ;;  %2252 = vmatmul.mubr.f32.vlgmr.msra.gmra.mrb[16].mxu1 %v13191_v39  ;;  %8750 = vmatprep.subr.bf16.mxu0 %v8749_v26  ;;  %v13194_v62 = vand.u32 4294901760, %v11194_v57  ;;  %v8755_v26 = vpack.c.bf16 %v11440_v5, %v11435_v29 }
 0x2cb   :  { %2259 = vmatprep.mubr.f32.mxu1 %v13192_v38  ;;  %8648 = vmatpush3.bf16.msra.mxu1 %v10845_v36  ;;  %v11466_v19 = vsub.f32 %v11192_v60, %v13193_v6  ;;  %v11478_v36 = vsub.f32 %v11198_v53, %v13195_v25  ;;  %v13197_v60 = vand.u32 4294901760, %v11013_v30  ;;  %v13198_v53 = vand.u32 4294901760, %v11222_v13 }
 0x2cc   :  { %8650 = vmatprep.subr.bf16.mxu1 %v10851_v52  ;;  %v11471_v47 = vsub.f32 %v11194_v57, %v13194_v62  ;;  %v13196_v52 = vand.u32 4294901760, %v11200_v1  ;;  %v8757_v57 = vpack.c.bf16 %v11453_v17, %v11448_v54  ;;  %v2691_v25 = vand.u32 4294901760, %v11349_v58 }
 0x2cd   :  { %8752 = vmatpush3.bf16.msra.mxu0 %v8751_v34  ;;  %v11495_v33 = vsub.f32 %v11222_v13, %v13198_v53 }
 0x2ce   :  { %v11483_v9 = vsub.f32 %v11200_v1, %v13196_v52  ;;  %2263 = vmatmul.mubr.f32.gmra.mrb[18].mxu1 %v13197_v60  ;;  %8754 = vmatprep.subr.bf16.mxu0 %v8753_v2  ;;  %v13199_v1 = vand.u32 4294901760, %v11224_v11  ;;  %v8759_v34 = vpack.c.bf16 %v11471_v47, %v11466_v19  ;;  %v13204_v2 = vand.u32 4294901760, %v11263_v43 }
 0x2cf   :  { %8652 = vmatpush3.bf16.msra.mxu1 %v10874_v46  ;;  %2540 = vmatprep.mubr.f32.mxu1 %v10986_v12  ;;  %v13200_v46 = vand.u32 4294901760, %v11229_v0  ;;  %v2692_v53 = vsub.f32 %v11349_v58, %v2691_v25 }
 0x2d0   :  { %8654 = vmatprep.subr.bf16.mxu1 %v10881_v10  ;;  %v11500_v30 = vsub.f32 %v11224_v11, %v13199_v1  ;;  %v13201_v10 = vand.u32 4294901760, %v11231_v8  ;;  %v8761_v13 = vpack.c.bf16 %v11483_v9, %v11478_v36  ;;  %v13202_v11 = vand.u32 4294901760, %v11258_v21 }
 0x2d1   :  { %8756 = vmatpush3.bf16.msra.mxu0 %v8755_v26  ;;  %v11507_v12 = vsub.f32 %v11229_v0, %v13200_v46  ;;  %v13203_v0 = vand.u32 4294901760, %v11260_v41  ;;  %v2796_v26 = vand.u32 4294901760, %v11321_v24  ;;  %v2810_v1 = vand.u32 4294901760, %v11364_v18 }
 0x2d2   :  { %v11512_v20 = vsub.f32 %v11231_v8, %v13201_v10  ;;  %8758 = vmatprep.subr.bf16.mxu0 %v8757_v57  ;;  %v11521_v28 = vsub.f32 %v11258_v21, %v13202_v11  ;;  %v8763_v8 = vpack.c.bf16 %v11500_v30, %v11495_v33  ;;  %v2693_v11 = vand.u32 4294901760, %v2692_v53  ;;  %v13210_v53 = vld [vmem:[#allocation31_spill] sm:$0xff] }
 0x2d3   :  { %8656 = vmatpush3.bf16.msra.mxu1 %v13140_v42  ;;  %v11526_v39 = vsub.f32 %v11260_v41, %v13203_v0  ;;  %v11533_v42 = vsub.f32 %v11263_v43, %v13204_v2  ;;  %v13206_v41 = vand.u32 4294901760, %v11297_v35  ;;  %v13207_v43 = vand.u32 4294901760, %v11299_v56 }
 0x2d4   :  { %8658 = vmatprep.subr.bf16.mxu1 %v13141_v37  ;;  %v13205_v37 = vand.u32 4294901760, %v11265_v45  ;;  %v8765_v21 = vpack.c.bf16 %v11512_v20, %v11507_v12  ;;  %v2824_v0 = vand.u32 4294901760, %v11395_v63 }
 0x2d5   :  { %8760 = vmatpush3.bf16.msra.mxu0 %v8759_v34  ;;  %v11546_v6 = vsub.f32 %v11297_v35, %v13206_v41  ;;  %v11552_v62 = vsub.f32 %v11299_v56, %v13207_v43  ;;  %v2797_v56 = vsub.f32 %v11321_v24, %v2796_v26  ;;  %v2817_v34 = vand.u32 4294901760, %v11369_v27  ;;  %v13208_v41 = vld [vmem:[#allocation29_spill] sm:$0xff] }
 0x2d6   :  { %v11538_v38 = vsub.f32 %v11265_v45, %v13205_v37  ;;  %8762 = vmatprep.subr.bf16.mxu0 %v8761_v13  ;;  %v8767_v45 = vpack.c.bf16 %v11526_v39, %v11521_v28  ;;  %v2698_v24 = vand.u32 4294901760, %v11382_v31  ;;  %v2712_v43 = vand.u32 4294901760, %v11409_v16 }
 0x2d7   :  { %8660 = vmatpush3.bf16.msra.mxu1 %v13151_v49  ;;  %v2803_v49 = vand.u32 4294901760, %v11326_v23  ;;  %v8771_v60 = vpack.c.bf16 %v11552_v62, %v11546_v6  ;;  %v2818_v58 = vsub.f32 %v11369_v27, %v2817_v34 }
 0x2d8   :  { %8662 = vmatprep.subr.bf16.mxu1 %v13152_v15  ;;  %v8769_v35 = vpack.c.bf16 %v11538_v38, %v11533_v42  ;;  %v2684_v15 = vand.u32 4294901760, %v11344_v4  ;;  %v2699_v2 = vsub.f32 %v11382_v31, %v2698_v24 }
 0x2d9   :  { %8764 = vmatpush3.bf16.msra.mxu0 %v8763_v8  ;;  %v2804_v52 = vsub.f32 %v11326_v23, %v2803_v49  ;;  %v2705_v23 = vand.u32 4294901760, %v11387_v3  ;;  %v8809_v8 = vpack.c.bf16 %v2817_v34, %v2810_v1  ;;  %v2819_v31 = vand.u32 4294901760, %v2818_v58  ;;  %v13213_v58 = vld [vmem:[#allocation42_spill] sm:$0xff] }
 0x2da   :  { %8766 = vmatprep.subr.bf16.mxu0 %v8765_v21  ;;  %v2685_v57 = vsub.f32 %v11344_v4, %v2684_v15  ;;  %v8807_v10 = vpack.c.bf16 %v2691_v25, %v2684_v15  ;;  %v2811_v4 = vsub.f32 %v11364_v18, %v2810_v1  ;;  %v2825_v18 = vsub.f32 %v11395_v63, %v2824_v0 }
 0x2db   :  { %8664 = vmatpush3.bf16.msra.mxu1 %v13162_v22  ;;  %v8805_v22 = vpack.c.bf16 %v2803_v49, %v2796_v26  ;;  %v2805_v46 = vand.u32 4294901760, %v2804_v52  ;;  %v2706_v37 = vsub.f32 %v11387_v3, %v2705_v23  ;;  %v13209_v49 = vld [vmem:[#allocation58_spill] sm:$0xff]  ;;  %v2845_v63 = vand.u32 4294901760, %v11426_v59 }
 0x2dc   :  { %8666 = vmatprep.subr.bf16.mxu1 %v13164_v55  ;;  %v2798_v55 = vand.u32 4294901760, %v2797_v56  ;;  %v2686_v13 = vand.u32 4294901760, %v2685_v57  ;;  %v2812_v26 = vand.u32 4294901760, %v2811_v4  ;;  %v2726_v56 = vand.u32 4294901760, %v11435_v29 }
 0x2dd   :  { %8768 = vmatpush3.bf16.msra.mxu0 %v8767_v45  ;;  %v2719_v45 = vand.u32 4294901760, %v11414_v40  ;;  %v2707_v15 = vand.u32 4294901760, %v2706_v37  ;;  %v2733_v52 = vand.u32 4294901760, %v11440_v5  ;;  %v2846_v34 = vsub.f32 %v11426_v59, %v2845_v63 }
 0x2de   :  { %8770 = vmatprep.subr.bf16.mxu0 %v8769_v35  ;;  %v8709_v21 = vpack.c.bf16 %v2805_v46, %v2798_v55  ;;  %v8711_v3 = vpack.c.bf16 %v2693_v11, %v2686_v13  ;;  %v2838_v35 = vand.u32 4294901760, %v11421_v48  ;;  %v13212_v55 = vld [vmem:[#allocation40_spill] sm:$0xff]  ;;  %v2727_v4 = vsub.f32 %v11435_v29, %v2726_v56 }
 0x2df   :  { %8668 = vmatpush3.bf16.msra.mxu1 %v13173_v50  ;;  %v2831_v50 = vand.u32 4294901760, %v11400_v44  ;;  %v2720_v25 = vsub.f32 %v11414_v40, %v2719_v45  ;;  %v8815_v40 = vpack.c.bf16 %v2719_v45, %v2712_v43  ;;  %v8819_v13 = vpack.c.bf16 %v2733_v52, %v2726_v56 }
 0x2e0   :  { %8670 = vmatprep.subr.bf16.mxu1 %v13174_v61  ;;  %v8811_v61 = vpack.c.bf16 %v2705_v23, %v2698_v24  ;;  %v2839_v1 = vsub.f32 %v11421_v48, %v2838_v35  ;;  %v8817_v24 = vpack.c.bf16 %v2845_v63, %v2838_v35  ;;  %v2859_v23 = vand.u32 4294901760, %v11453_v17 }
 0x2e1   :  { %8772 = vmatpush3.bf16.msra.mxu0 %v8771_v60  ;;  %v2832_v27 = vsub.f32 %v11400_v44, %v2831_v50  ;;  %v2700_v44 = vand.u32 4294901760, %v2699_v2  ;;  %v2826_v60 = vand.u32 4294901760, %v2825_v18  ;;  %v2734_v48 = vsub.f32 %v11440_v5, %v2733_v52  ;;  %v13214_v18 = vld [vmem:[#allocation41_spill] sm:$0xff] }
 0x2e2   :  { %8806 = vmatprep.subr.bf16.mxu0 %v8805_v22  ;;  %v8713_v22 = vpack.c.bf16 %v2819_v31, %v2812_v26  ;;  %v2860_v37 = vsub.f32 %v11453_v17, %v2859_v23  ;;  %v2747_v29 = vand.u32 4294901760, %v11471_v47  ;;  %v2866_v5 = vand.u32 4294901760, %v11478_v36 }
 0x2e3   :  { %8672 = vmatpush3.bf16.msra.mxu1 %v13180_v7  ;;  %v8813_v7 = vpack.c.bf16 %v2831_v50, %v2824_v0  ;;  %v2833_v57 = vand.u32 4294901760, %v2832_v27  ;;  %v8715_v59 = vpack.c.bf16 %v2707_v15, %v2700_v44  ;;  %v2740_v0 = vand.u32 4294901760, %v11466_v19 }
 0x2e4   :  { %3053 = vmatmul.mubr.f32.vlgmr.msra.gmra.mrb[16].mxu0 %v13208_v41  ;;  %8674 = vmatprep.subr.bf16.mxu1 %v13181_v51  ;;  %v2713_v51 = vsub.f32 %v11409_v16, %v2712_v43  ;;  %v13211_v16 = vld [vmem:[#allocation43_spill] sm:$0xff]  ;;  %v2840_v50 = vand.u32 4294901760, %v2839_v1  ;;  %v2728_v43 = vand.u32 4294901760, %v2727_v4  ;;  %v2735_v45 = vand.u32 4294901760, %v2734_v48 }
 0x2e5   :  { %3059 = vmatprep.mubr.f32.mxu0 %v13209_v49  ;;  %8808 = vmatpush3.bf16.msra.mxu0 %v8807_v10  ;;  %v2721_v10 = vand.u32 4294901760, %v2720_v25  ;;  %v8717_v11 = vpack.c.bf16 %v2833_v57, %v2826_v60  ;;  %v2741_v26 = vsub.f32 %v11466_v19, %v2740_v0  ;;  %v2748_v17 = vsub.f32 %v11471_v47, %v2747_v29 }
 0x2e6   :  { %8810 = vmatprep.subr.bf16.mxu0 %v8809_v8  ;;  %v2714_v46 = vand.u32 4294901760, %v2713_v51  ;;  %v2847_v8 = vand.u32 4294901760, %v2846_v34  ;;  %v2867_v31 = vsub.f32 %v11478_v36, %v2866_v5  ;;  %v2761_v35 = vand.u32 4294901760, %v11500_v30 }
 0x2e7   :  { %8676 = vmatpush3.bf16.msra.mxu1 %v13186_v32  ;;  %v2852_v32 = vand.u32 4294901760, %v11448_v54  ;;  %v2861_v44 = vand.u32 4294901760, %v2860_v37  ;;  %v8823_v15 = vpack.c.bf16 %v2747_v29, %v2740_v0  ;;  %v2880_v19 = vand.u32 4294901760, %v11507_v12 }
 0x2e8   :  { %3062 = vmatmul.mubr.f32.gmra.mrb[18].mxu0 %v13210_v53  ;;  %8710 = vmatprep.subr.bf16.mxu1 %v8709_v21  ;;  %v2873_v21 = vand.u32 4294901760, %v11483_v9  ;;  %v8719_v27 = vpack.c.bf16 %v2721_v10, %v2714_v46  ;;  %v2887_v51 = vand.u32 4294901760, %v11512_v20  ;;  %v8723_v25 = vpack.c.bf16 %v2735_v45, %v2728_v43 }
 0x2e9   :  { %8812 = vmatpush3.bf16.msra.mxu0 %v8811_v61  ;;  %3347 = vmatprep.mubr.f32.mxu0 %v13211_v16  ;;  %v2853_v2 = vsub.f32 %v11448_v54, %v2852_v32  ;;  %v8821_v61 = vpack.c.bf16 %v2859_v23, %v2852_v32  ;;  %v2754_v54 = vand.u32 4294901760, %v11495_v33  ;;  %v2762_v36 = vsub.f32 %v11500_v30, %v2761_v35 }
 0x2ea   :  { %2542 = vmatmul.mubr.f32.vlgmr.msra.gmra.mrb[20].mxu1 %v13212_v55  ;;  %8814 = vmatprep.subr.bf16.mxu0 %v8813_v7  ;;  %v8721_v7 = vpack.c.bf16 %v2847_v8, %v2840_v50  ;;  %v8825_v56 = vpack.c.bf16 %v2873_v21, %v2866_v5  ;;  %v2749_v52 = vand.u32 4294901760, %v2748_v17  ;;  %v2868_v60 = vand.u32 4294901760, %v2867_v31  ;;  %v13219_v17 = vld [vmem:[#allocation45_spill] sm:$0xff]  ;;  %v13220_v31 = vld [vmem:[#allocation46_spill] sm:$0xff] }
 0x2eb   :  { %2547 = vmatprep.mubr.f32.mxu1 %v13213_v58  ;;  %8712 = vmatpush3.bf16.msra.mxu1 %v8711_v3  ;;  %v2874_v3 = vsub.f32 %v11483_v9, %v2873_v21  ;;  %v2854_v63 = vand.u32 4294901760, %v2853_v2  ;;  %v2755_v47 = vsub.f32 %v11495_v33, %v2754_v54  ;;  %v2742_v9 = vand.u32 4294901760, %v2741_v26  ;;  %v13215_v26 = vld [vmem:[#allocation53_spill] sm:$0xff] }
 0x2ec   :  { %8714 = vmatprep.subr.bf16.mxu1 %v8713_v22  ;;  %v2881_v1 = vsub.f32 %v11507_v12, %v2880_v19  ;;  %v2888_v34 = vsub.f32 %v11512_v20, %v2887_v51  ;;  %v2768_v32 = vand.u32 4294901760, %v11521_v28  ;;  %v2775_v33 = vand.u32 4294901760, %v11526_v39 }
 0x2ed   :  { %8816 = vmatpush3.bf16.msra.mxu0 %v8815_v40  ;;  %v2875_v57 = vand.u32 4294901760, %v2874_v3  ;;  %v8725_v22 = vpack.c.bf16 %v2861_v44, %v2854_v63  ;;  %v8827_v40 = vpack.c.bf16 %v2761_v35, %v2754_v54  ;;  %v2756_v30 = vand.u32 4294901760, %v2755_v47  ;;  %v13218_v54 = vld [vmem:[#allocation44_spill] sm:$0xff]  ;;  %v13221_v3 = vld [vmem:[#allocation47_spill] sm:$0xff]  ;;  %v13224_v63 = vld [vmem:[#allocation49_spill] sm:$0xff] }
 0x2ee   :  { %2549 = vmatmul.mubr.f32.gmra.mrb[22].mxu1 %v13214_v18  ;;  %8818 = vmatprep.subr.bf16.mxu0 %v8817_v24  ;;  %v8829_v24 = vpack.c.bf16 %v2887_v51, %v2880_v19  ;;  %v2763_v23 = vand.u32 4294901760, %v2762_v36  ;;  %v2894_v55 = vand.u32 4294901760, %v11533_v42  ;;  %v2901_v46 = vand.u32 4294901760, %v11538_v38  ;;  %v13223_v35 = vld [vmem:[#allocation48_spill] sm:$0xff]  ;;  %v13225_v44 = vld [vmem:[#allocation50_spill] sm:$0xff]  ;;  %v13231_v47 = vld [vmem:[#allocation59_spill] sm:$0xff] }
 0x2ef   :  { %8716 = vmatpush3.bf16.msra.mxu1 %v8715_v59  ;;  %2906 = vmatprep.mubr.f32.mxu1 %v13211_v16  ;;  %v8727_v10 = vpack.c.bf16 %v2749_v52, %v2742_v9  ;;  %v8729_v4 = vpack.c.bf16 %v2875_v57, %v2868_v60  ;;  %v2769_v12 = vsub.f32 %v11521_v28, %v2768_v32  ;;  %v2882_v48 = vand.u32 4294901760, %v2881_v1  ;;  %v13227_v19 = vld [vmem:[#allocation52_spill] sm:$0xff]  ;;  %v13228_v51 = vld [vmem:[#allocation54_spill] sm:$0xff]  ;;  %v13234_v9 = vld [vmem:[#allocation33_spill] sm:$0xff] }
 0x2f0   :  { %8718 = vmatprep.subr.bf16.mxu1 %v8717_v11  ;;  %v2776_v20 = vsub.f32 %v11526_v39, %v2775_v33  ;;  %v2889_v58 = vand.u32 4294901760, %v2888_v34  ;;  %v2895_v59 = vsub.f32 %v11533_v42, %v2894_v55  ;;  %v8831_v11 = vpack.c.bf16 %v2775_v33, %v2768_v32  ;;  %v13233_v36 = vld [vmem:[#allocation60_spill] sm:$0xff] }
 0x2f1   :  { %8820 = vmatpush3.bf16.msra.mxu0 %v8819_v13  ;;  %v2902_v13 = vsub.f32 %v11538_v38, %v2901_v46  ;;  %v2782_v0 = vand.u32 4294901760, %v11546_v6  ;;  %v2789_v50 = vand.u32 4294901760, %v11552_v62  ;;  %v8731_v8 = vpack.c.bf16 %v2763_v23, %v2756_v30 }
 0x2f2   :  { %8822 = vmatprep.subr.bf16.mxu0 %v8821_v61  ;;  %v8833_v2 = vpack.c.bf16 %v2901_v46, %v2894_v55  ;;  %v2770_v28 = vand.u32 4294901760, %v2769_v12  ;;  %v2777_v37 = vand.u32 4294901760, %v2776_v20  ;;  %v8733_v42 = vpack.c.bf16 %v2889_v58, %v2882_v48 }
 0x2f3   :  { %8720 = vmatpush3.bf16.msra.mxu1 %v8719_v27  ;;  %v2783_v39 = vsub.f32 %v11546_v6, %v2782_v0  ;;  %v2790_v61 = vsub.f32 %v11552_v62, %v2789_v50  ;;  %v2896_v29 = vand.u32 4294901760, %v2895_v59  ;;  %v2903_v38 = vand.u32 4294901760, %v2902_v13  ;;  %v13216_v6 = vld [vmem:[#allocation55_spill] sm:$0xff]  ;;  %v13217_v62 = vld [vmem:[#allocation30_spill] sm:$0xff] }
 0x2f4   :  { %8722 = vmatprep.subr.bf16.mxu1 %v8721_v7  ;;  %v8835_v5 = vpack.c.bf16 %v2789_v50, %v2782_v0  ;;  %v8735_v21 = vpack.c.bf16 %v2777_v37, %v2770_v28  ;;  %v13222_v7 = vand.u32 4294901760, %v11076_v14  ;;  %v13232_v14 = vld [vmem:[#allocation32_spill] sm:$0xff]  ;;  %v13235_v52 = vand.u32 4294901760, %v13208_v41 }
 0x2f5   :  { %8824 = vmatpush3.bf16.msra.mxu0 %v8823_v15  ;;  %v2784_v18 = vand.u32 4294901760, %v2783_v39  ;;  %v2791_v27 = vand.u32 4294901760, %v2790_v61  ;;  %v8737_v43 = vpack.c.bf16 %v2903_v38, %v2896_v29  ;;  %v13226_v15 = vld [vmem:[#allocation51_spill] sm:$0xff]  ;;  %v13236_v60 = vand.u32 4294901760, %v13209_v49 }
 0x2f6   :  { %8826 = vmatprep.subr.bf16.mxu0 %v8825_v56  ;;  %v13230_v56 = vld [vmem:[#allocation57_spill] sm:$0xff]  ;;  %v13237_v57 = vand.u32 4294901760, %v13210_v53 }
 0x2f7   :  { %8724 = vmatpush3.bf16.msra.mxu1 %v8723_v25  ;;  %v8739_v45 = vpack.c.bf16 %v2791_v27, %v2784_v18  ;;  %v13229_v25 = vld [vmem:[#allocation56_spill] sm:$0xff] }
 0x2f8   :  { %8726 = vmatprep.subr.bf16.mxu1 %v8725_v22 }
 0x2f9   :  { %8828 = vmatpush3.bf16.msra.mxu0 %v8827_v40 }
 0x2fa   :  { %8830 = vmatprep.subr.bf16.mxu0 %v8829_v24 }
 0x2fb   :  { %8728 = vmatpush3.bf16.msra.mxu1 %v8727_v10 }
 0x2fc   :  { %8730 = vmatprep.subr.bf16.mxu1 %v8729_v4  ;;  %v1629_v4 = vpop.permute.xlu0 %1628 }
 0x2fd   :  { %8832 = vmatpush3.bf16.msra.mxu0 %v8831_v11  ;;  %v1634_v11 = vpop.permute.xlu1 %1633 }
 0x2fe   :  { %8834 = vmatprep.subr.bf16.mxu0 %v8833_v2 }
 0x2ff   :  { %8732 = vmatpush3.bf16.msra.mxu1 %v8731_v8 }
 0x300   :  { %8734 = vmatprep.subr.bf16.mxu1 %v8733_v42 }
 0x301   :  { %8836 = vmatpush3.bf16.msra.mxu0 %v8835_v5 }
 0x303   :  { %8736 = vmatpush3.bf16.msra.mxu1 %v8735_v21 }
 0x304   :  { %3349 = vmatmul.mubr.f32.vlgmr.msra.gmra.mrb[20].mxu0 %v13215_v26  ;;  %8738 = vmatprep.subr.bf16.mxu1 %v8737_v43 }
 0x305   :  { %3354 = vmatprep.mubr.f32.mxu0 %v13216_v6 }
 0x307   :  { %8740 = vmatpush3.bf16.msra.mxu1 %v8739_v45 }
 0x308   :  { %3356 = vmatmul.mubr.f32.gmra.mrb[22].mxu0 %v13217_v62  ;;  %8774 = vmatprep.subr.bf16.mxu1 %v13218_v54 }
 0x30a   :  { %2908 = vmatmul.mubr.f32.vlgmr.msra.gmra.mrb[24].mxu1 %v13215_v26 }
 0x30b   :  { %2913 = vmatprep.mubr.f32.mxu1 %v13216_v6  ;;  %8776 = vmatpush3.bf16.msra.mxu1 %v13219_v17 }
 0x30c   :  { %8778 = vmatprep.subr.bf16.mxu1 %v13220_v31 }
 0x30e   :  { %2915 = vmatmul.mubr.f32.gmra.mrb[26].mxu1 %v13217_v62 }
 0x30f   :  { %8780 = vmatpush3.bf16.msra.mxu1 %v13221_v3  ;;  %3166 = vmatprep.mubr.f32.mxu1 %v13222_v7  ;;  %v13013_v7 = vmov 1  }
 0x310   :  { %8782 = vmatprep.subr.bf16.mxu1 %v13223_v35  ;;  %9651 = vset.pattern.permute.xlu1 %v13013_v7 }
 0x311   :  { %9650 = vset.pattern.permute.xlu0 %v13013_v7 }
 0x313   :  { %8784 = vmatpush3.bf16.msra.mxu1 %v13224_v63 }
 0x314   :  { %8786 = vmatprep.subr.bf16.mxu1 %v13225_v44 }
 0x317   :  { %8788 = vmatpush3.bf16.msra.mxu1 %v13226_v15 }
 0x318   :  { %8790 = vmatprep.subr.bf16.mxu1 %v13227_v19 }
 0x31b   :  { %8792 = vmatpush3.bf16.msra.mxu1 %v13228_v51 }
 0x31c   :  { %8794 = vmatprep.subr.bf16.mxu1 %v13229_v25 }
 0x31f   :  { %8796 = vmatpush3.bf16.msra.mxu1 %v13230_v56 }
 0x320   :  { %8798 = vmatprep.subr.bf16.mxu1 %v13231_v47 }
 0x323   :  { %8800 = vmatpush3.bf16.msra.mxu1 %v13232_v14 }
 0x324   :  { %8802 = vmatprep.subr.bf16.mxu1 %v13233_v36 }
 0x327   :  { %8804 = vmatpush3.bf16.msra.mxu1 %v13234_v9 }
 0x328   :  { %8838 = vmatprep.subr.bf16.mxu1 %v13218_v54 }
 0x32a   :  { %3170 = vmatmul.mubr.f32.vlgmr.msra.gmra.mrb[28].mxu1 %v13235_v52 }
 0x32b   :  { %3177 = vmatprep.mubr.f32.mxu1 %v13236_v60  ;;  %8840 = vmatpush3.bf16.msra.mxu1 %v13219_v17 }
 0x32c   :  { %8842 = vmatprep.subr.bf16.mxu1 %v13220_v31 }
 0x32e   :  { %3181 = vmatmul.mubr.f32.gmra.mrb[30].mxu1 %v13237_v57 }
 0x32f   :  { %8844 = vmatpush3.bf16.msra.mxu1 %v13221_v3  ;;  %3458 = vmatprep.mubr.f32.mxu1 %v13211_v16 }
 0x330   :  { %8846 = vmatprep.subr.bf16.mxu1 %v13223_v35 }
 0x333   :  { %8848 = vmatpush3.bf16.msra.mxu1 %v13224_v63 }
 0x334   :  { %8850 = vmatprep.subr.bf16.mxu1 %v13225_v44 }
 0x337   :  { %8852 = vmatpush3.bf16.msra.mxu1 %v13226_v15 }
 0x338   :  { %8854 = vmatprep.subr.bf16.mxu1 %v13227_v19 }
 0x33b   :  { %8856 = vmatpush3.bf16.msra.mxu1 %v13228_v51 }
 0x33c   :  { %8858 = vmatprep.subr.bf16.mxu1 %v13229_v25 }
 0x33f   :  { %8860 = vmatpush3.bf16.msra.mxu1 %v13230_v56 }
 0x340   :  { %8862 = vmatprep.subr.bf16.mxu1 %v13231_v47 }
 0x343   :  { %8864 = vmatpush3.bf16.msra.mxu1 %v13232_v14 }
 0x344   :  { %8866 = vmatprep.subr.bf16.mxu1 %v13233_v36 }
 0x347   :  { %8868 = vmatpush3.bf16.msra.mxu1 %v13234_v9 }
 0x34a   :  { %3460 = vmatmul.mubr.f32.vlgmr.msra.gmra.mrb[32].mxu1 %v13215_v26 }
 0x34b   :  { %3465 = vmatprep.mubr.f32.mxu1 %v13216_v6 }
 0x34e   :  { %3467 = vmatmul.mubr.f32.gmra.mrb[34].mxu1 %v13217_v62 }
 0x357   :  { %v7255_v41 = vpop.f32.mrb[4].mxu0 }
 0x358   :  { %v7256_v49 = vpop.f32.mrb[5].mxu0 }
 0x359   :  { %v7257_v53 = vadd.f32 %v7256_v49, %v7255_v41 }
 0x35b   :  { %v7258_v16 = vpop.f32.mrb[6].mxu0 }
 0x35c   :  { %v7259_v22 = vpop.f32.mrb[7].mxu0 }
 0x35d   :  { %v7260_v1 = vadd.f32 %v7259_v22, %v7258_v16  ;;  %v7179_v34 = vpop.f32.mrb[8].mxu1 }
 0x35e   :  { %v7180_v40 = vpop.f32.mrb[9].mxu1 }
 0x35f   :  { %v7181_v24 = vadd.f32 %v7180_v40, %v7179_v34 }
 0x361   :  { %v7182_v32 = vpop.f32.mrb[10].mxu1  ;;  %v1745_v59 = vadd.f32 %v7181_v24, %v1629_v4 }
 0x362   :  { %v7183_v33 = vpop.f32.mrb[11].mxu1 }
 0x363   :  { %v7184_v30 = vadd.f32 %v7183_v33, %v7182_v32 }
 0x365   :  { %v1760_v2 = vadd.f32 %v7184_v30, %v1634_v11 }
 0x377   :  { %v7331_v23 = vpop.f32.mrb[8].mxu0 }
 0x378   :  { %v7332_v55 = vpop.f32.mrb[9].mxu0 }
 0x379   :  { %v7333_v46 = vadd.f32 %v7332_v55, %v7331_v23 }
 0x37b   :  { %v7334_v10 = vpop.f32.mrb[10].mxu0 }
 0x37c   :  { %v7335_v12 = vpop.f32.mrb[11].mxu0 }
 0x37d   :  { %v7336_v20 = vadd.f32 %v7335_v12, %v7334_v10  ;;  %v7217_v48 = vpop.f32.mrb[12].mxu1 }
 0x37e   :  { %v7218_v58 = vpop.f32.mrb[13].mxu1 }
 0x37f   :  { %v7219_v13 = vadd.f32 %v7218_v58, %v7217_v48 }
 0x381   :  { %v1992_v0 = vadd.f32 %v7219_v13, %v1745_v59  ;;  %v7220_v50 = vpop.f32.mrb[14].mxu1 }
 0x382   :  { %v7221_v8 = vpop.f32.mrb[15].mxu1 }
 0x383   :  { %v7222_v28 = vadd.f32 %v7221_v8, %v7220_v50  ;;  %v2137_v37 = vadd.f32 %v7257_v53, %v1992_v0 }
 0x385   :  { %v1999_v39 = vadd.f32 %v7222_v28, %v1760_v2 }
 0x387   :  { %v2146_v61 = vadd.f32 %v7260_v1, %v1999_v39 }
 0x397   :  { %v7407_v42 = vpop.f32.mrb[12].mxu0 }
 0x398   :  { %v7408_v29 = vpop.f32.mrb[13].mxu0 }
 0x399   :  { %v7409_v38 = vadd.f32 %v7408_v29, %v7407_v42 }
 0x39b   :  { %v7410_v5 = vpop.f32.mrb[14].mxu0 }
 0x39c   :  { %v7411_v21 = vpop.f32.mrb[15].mxu0 }
 0x39d   :  { %v7293_v18 = vpop.f32.mrb[16].mxu1  ;;  %v7412_v27 = vadd.f32 %v7411_v21, %v7410_v5  ;;  %v11694_v21 = vld [vmem:[#allocation17 + $0x8] sm:$0xff] }
 0x39e   :  { %v7294_v43 = vpop.f32.mrb[17].mxu1 }
 0x39f   :  { %v7295_v45 = vadd.f32 %v7294_v43, %v7293_v18  ;;  %v13011_v18 = vmov 2  }
 0x3a1   :  { %v2254_v26 = vadd.f32 %v7295_v45, %v2137_v37  ;;  %v7296_v6 = vpop.f32.mrb[18].mxu1  ;;  %v4222_v45 = vld [vmem:[#allocation7] sm:$0xff] }
 0x3a2   :  { %v7297_v62 = vpop.f32.mrb[19].mxu1 }
 0x3a3   :  { %v7298_v54 = vadd.f32 %v7297_v62, %v7296_v6  ;;  %v2433_v17 = vadd.f32 %v7333_v46, %v2254_v26  ;;  %v4234_v26 = vsel %vm4232_vm0, %v4222_v45, 0 }
 0x3a4   :  { %v11706_v6 = vand.u32 4294901760, %v4234_v26 }
 0x3a5   :  { %v2265_v31 = vadd.f32 %v7298_v54, %v2146_v61 }
 0x3a6   :  { %v11709_v62 = vsub.f32 %v4234_v26, %v11706_v6 }
 0x3a7   :  { %v2440_v3 = vadd.f32 %v7336_v20, %v2265_v31 }
 0x3a8   :  { %v4308_v54 = vand.u32 4294901760, %v11709_v62 }
 0x3b7   :  { %v7483_v35 = vpop.f32.mrb[16].mxu0 }
 0x3b8   :  { %v7484_v63 = vpop.f32.mrb[17].mxu0 }
 0x3b9   :  { %v7485_v44 = vadd.f32 %v7484_v63, %v7483_v35  ;;  %v9998_v35 = vmov 4   ;;  %v9999_v63 = vmov 5  }
 0x3bb   :  { %v7486_v15 = vpop.f32.mrb[18].mxu0 }
 0x3bc   :  { %v7487_v19 = vpop.f32.mrb[19].mxu0 }
 0x3bd   :  { %v7488_v51 = vadd.f32 %v7487_v19, %v7486_v15  ;;  %v7369_v25 = vpop.f32.mrb[20].mxu1 }
 0x3be   :  { %v7370_v56 = vpop.f32.mrb[21].mxu1 }
 0x3bf   :  { %v7371_v47 = vadd.f32 %v7370_v56, %v7369_v25 }
 0x3c1   :  { %v2544_v14 = vadd.f32 %v7371_v47, %v2433_v17  ;;  %v7372_v36 = vpop.f32.mrb[22].mxu1  ;;  %v4309_v17 = vsub.f32 %v11709_v62, %v4308_v54 }
 0x3c2   :  { %v7373_v9 = vpop.f32.mrb[23].mxu1 }
 0x3c3   :  { %v7374_v52 = vadd.f32 %v7373_v9, %v7372_v36  ;;  %v2663_v60 = vadd.f32 %v7409_v38, %v2544_v14  ;;  %v4310_v31 = vand.u32 4294901760, %v4309_v17 }
 0x3c5   :  { %v2551_v57 = vadd.f32 %v7374_v52, %v2440_v3  ;;  %8105 = vmatprep.mubr.f32.mxu1 %v4310_v31  ;;  %v9997_v3 = vmov 3  }
 0x3c7   :  { %v2678_v41 = vadd.f32 %v7412_v27, %v2551_v57  ;;  %v11698_v27 = vld [vmem:[#allocation17] sm:$0xff] }
 0x3d7   :  { %v7559_v49 = vpop.f32.mrb[20].mxu0 }
 0x3d8   :  { %v7560_v53 = vpop.f32.mrb[21].mxu0 }
 0x3d9   :  { %v7561_v16 = vadd.f32 %v7560_v53, %v7559_v49 }
 0x3db   :  { %v7562_v22 = vpop.f32.mrb[22].mxu0 }
 0x3dc   :  { %v7563_v1 = vpop.f32.mrb[23].mxu0 }
 0x3dd   :  { %v7564_v34 = vadd.f32 %v7563_v1, %v7562_v22  ;;  %v7445_v40 = vpop.f32.mrb[24].mxu1 }
 0x3de   :  { %v7446_v24 = vpop.f32.mrb[25].mxu1 }
 0x3df   :  { %v7447_v32 = vadd.f32 %v7446_v24, %v7445_v40  ;;  %v4223_v24 = vld [vmem:[#allocation7 + $0x8] sm:$0xff] }
 0x3e1   :  { %v2910_v33 = vadd.f32 %v7447_v32, %v2663_v60  ;;  %v7448_v30 = vpop.f32.mrb[26].mxu1 }
 0x3e2   :  { %v7449_v23 = vpop.f32.mrb[27].mxu1 }
 0x3e3   :  { %v7450_v55 = vadd.f32 %v7449_v23, %v7448_v30  ;;  %v3055_v46 = vadd.f32 %v7485_v44, %v2910_v33  ;;  %v4237_v33 = vsel %vm4232_vm0, %v4223_v24, 0 }
 0x3e5   :  { %v2917_v10 = vadd.f32 %v7450_v55, %v2678_v41  ;;  %v4316_v55 = vand.u32 4294901760, %v4237_v33 }
 0x3e7   :  { %v3064_v4 = vadd.f32 %v7488_v51, %v2917_v10 }
 0x3fd   :  { %v7521_v12 = vpop.f32.mrb[28].mxu1 }
 0x3fe   :  { %v7522_v20 = vpop.f32.mrb[29].mxu1 }
 0x3ff   :  { %v7523_v48 = vadd.f32 %v7522_v20, %v7521_v12 }
 0x401   :  { %v3172_v58 = vadd.f32 %v7523_v48, %v3055_v46  ;;  %v7524_v59 = vpop.f32.mrb[30].mxu1 }
 0x402   :  { %v7525_v13 = vpop.f32.mrb[31].mxu1 }
 0x403   :  { %v7526_v11 = vadd.f32 %v7525_v13, %v7524_v59  ;;  %v3351_v0 = vadd.f32 %v7561_v16, %v3172_v58 }
 0x405   :  { %v3183_v50 = vadd.f32 %v7526_v11, %v3064_v4  ;;  %v4317_v4 = vsub.f32 %v4237_v33, %v4316_v55 }
 0x407   :  { %v3358_v8 = vadd.f32 %v7564_v34, %v3183_v50  ;;  %v4318_v59 = vand.u32 4294901760, %v4317_v4 }
 0x409   :  { %v4319_v50 = vsub.f32 %v4317_v4, %v4318_v59 }
 0x41d   :  { %v7597_v2 = vpop.f32.mrb[32].mxu1 }
 0x41e   :  { %v7598_v28 = vpop.f32.mrb[33].mxu1 }
 0x41f   :  { %v7599_v37 = vadd.f32 %v7598_v28, %v7597_v2 }
 0x421   :  { %v3462_v39 = vadd.f32 %v7599_v37, %v3351_v0  ;;  %v7600_v61 = vpop.f32.mrb[34].mxu1  ;;  %v4320_v37 = vand.u32 4294901760, %v4319_v50 }
 0x422   :  { %v7601_v42 = vpop.f32.mrb[35].mxu1 }
 0x423   :  { %v7602_v29 = vadd.f32 %v7601_v42, %v7600_v61  ;;  %3472 = vadd.xlane.f32.xlu1 %v3462_v39  ;;  %v3476_v38 = vmul.f32 %v3462_v39, %v3462_v39 }
 0x425   :  { %v11691_v5 = vadd.f32 %v7602_v29, %v3358_v8  ;;  %3478 = vadd.xlane.f32.xlu0 %v3476_v38 }
 0x427   :  { %v3477_v43 = vmul.f32 %v11691_v5, %v11691_v5 }
 0x429   :  { %3474 = vadd.xlane.f32.xlu0 %v11691_v5 }
 0x434   :  { %3497 = vperm.xlu1 %9651, %v11694_v21  }
 0x438   :  { %9652 = vset.pattern.permute.xlu1 %v13011_v18 }
 0x439   :  { %3509 = vperm.xlu1 %9652, %v11698_v27  }
 0x43f   :  { %3493 = vperm.xlu0 %9650, %v11698_v27  }
 0x443   :  { %9654 = vset.pattern.permute.xlu0 %v9998_v35 }
 0x45d   :  { %3480 = vadd.xlane.f32.xlu1 %v3477_v43 }
 0x46e   :  { %3513 = vperm.xlu1 %9652, %v11694_v21  }
 0x472   :  { %9653 = vset.pattern.permute.xlu1 %v9997_v3 }
 0x473   :  { %4225 = vperm.xlu1 %9653, %v11698_v27  }
 0x477   :  { %4229 = vperm.xlu1 %9653, %v11694_v21  }
 0x47b   :  { %9655 = vset.pattern.permute.xlu1 %v9998_v35 }
 0x47c   :  { %4766 = vperm.xlu1 %9655, %v11694_v21  }
 0x480   :  { %9656 = vset.pattern.permute.xlu1 %v9999_v63 }
 0x481   :  { %4778 = vperm.xlu1 %9656, %v11698_v27  }
 0x4b0   :  { %v3473_v44 = vpop.xlane.xlu1 %3472 }
 0x4b1   :  { %v3482_v15 = vmul.f32 0.0078125, %v3473_v44 }
 0x4b2   :  { %v3479_v19 = vpop.xlane.xlu0 %3478 }
 0x4b3   :  { %v3486_v51 = vmul.f32 %v3482_v15, %v3482_v15  ;;  %v3484_v25 = vmul.f32 0.0078125, %v3479_v19  ;;  %v3490_v57 = vsub.f32 %v3462_v39, %v3482_v15 }
 0x4b4   :  { %v3498_v14 = vpop.permute.xlu1 %3497 }
 0x4b5   :  { %v3488_v56 = vsub.f32 %v3484_v25, %v3486_v51 }
 0x4b6   :  { %v3475_v36 = vpop.xlane.xlu0 %3474 }
 0x4b7   :  { %v3502_v47 = vadd.f32 1e-05, %v3488_v56  ;;  %v3483_v52 = vmul.f32 0.0078125, %v3475_v36 }
 0x4b8   :  { %v3510_v9 = vpop.permute.xlu1 %3509 }
 0x4b9   :  { %9667 = vrsqrt.f32 %v3502_v47  ;;  %v3487_v53 = vmul.f32 %v3483_v52, %v3483_v52  ;;  %v3491_v30 = vsub.f32 %v11691_v5, %v3483_v52 }
 0x4bb   :  { %v3501_v46 = vmul.f32 %v3498_v14, %v3491_v30 }
 0x4be   :  { %v3494_v60 = vpop.permute.xlu0 %3493 }
 0x4bf   :  { %v3500_v22 = vmul.f32 %v3494_v60, %v3490_v57 }
 0x4c3   :  { %v9668_v49 = vpop.eup %9667 }
 0x4c4   :  { %v3506_v34 = vmul.f32 %v9668_v49, %v3500_v22 }
 0x4c6   :  { %v3516_v32 = vadd.f32 %v3510_v9, %v3506_v34  ;;  %v11738_v34 = vld [vmem:[#allocation13] sm:$0xff] }
 0x4c8   :  { %v11721_v23 = vmax.f32 %v3516_v32, 0.0 }
 0x4ca   :  { %v4240_v10 = vand.u32 4294901760, %v11721_v23 }
 0x4cc   :  { %v4328_v13 = vsub.f32 %v11721_v23, %v4240_v10 }
 0x4ce   :  { %v4329_v8 = vand.u32 4294901760, %v4328_v13 }
 0x4d0   :  { %v4330_v39 = vsub.f32 %v4328_v13, %v4329_v8 }
 0x4d2   :  { %v4331_v29 = vand.u32 4294901760, %v4330_v39 }
 0x4ea   :  { %v3481_v41 = vpop.xlane.xlu1 %3480 }
 0x4eb   :  { %v3485_v16 = vmul.f32 0.0078125, %v3481_v41 }
 0x4ed   :  { %v3489_v1 = vsub.f32 %v3485_v16, %v3487_v53  ;;  %v13238_v53 = vld [vmem:[#allocation28_spill] sm:$0xff] }
 0x4ee   :  { %v3514_v48 = vpop.permute.xlu1 %3513  ;;  %v4831_v16 = vsub.s32 4, %v13238_v53 }
 0x4ef   :  { %v3503_v40 = vadd.f32 1e-05, %v3489_v1 }
 0x4f1   :  { %9669 = vrsqrt.f32 %v3503_v40 }
 0x4f2   :  { %v4226_v26 = vpop.permute.xlu1 %4225 }
 0x4f6   :  { %v4230_v17 = vpop.permute.xlu1 %4229 }
 0x4fb   :  { %v9670_v12 = vpop.eup %9669  ;;  %v4767_v44 = vpop.permute.xlu1 %4766 }
 0x4fc   :  { %v3507_v20 = vmul.f32 %v9670_v12, %v3501_v46 }
 0x4fe   :  { %v3517_v58 = vadd.f32 %v3514_v48, %v3507_v20  ;;  %v13032_v48 = vmov 0.0|0.0  }
 0x500   :  { %v11725_v11 = vmax.f32 %v3517_v58, 0.0  ;;  %v4779_v15 = vpop.permute.xlu1 %4778 }
 0x502   :  { %v4243_v0 = vand.u32 4294901760, %v11725_v11 }
 0x504   :  { %v9061_v2 = vpack.c.bf16 %v4243_v0, %v4240_v10  ;;  %v4335_v28 = vsub.f32 %v11725_v11, %v4243_v0 }
 0x506   :  { %9062 = vmatprep.subr.bf16.mxu1 %v9061_v2  ;;  %v4336_v61 = vand.u32 4294901760, %v4335_v28  ;;  %v9069_v43 = vpack.c.bf16 %v4335_v28, %v4328_v13 }
 0x507   :  { %9064 = vmatpush3.bf16.msra.mxu1 %v9061_v2 }
 0x508   :  { %v4337_v42 = vsub.f32 %v4335_v28, %v4336_v61  ;;  %v9077_v45 = vpack.c.bf16 %v4336_v61, %v4329_v8  ;;  %v13268_v61 = vsub.s32 2, %v13238_v53 }
 0x50a   :  { %8106 = vmatmul.mubr.f32.vlgmr.msra.gmra.mrb[36].mxu1 %v4320_v37  ;;  %v4338_v38 = vand.u32 4294901760, %v4337_v42  ;;  %v11762_v42 = vld [vmem:[#allocation16] sm:$0xff] }
 0x50b   :  { %8112 = vmatprep.mubr.f32.mxu1 %v11706_v6 }
 0x50c   :  { %v9065_v5 = vpack.c.bf16 %v4338_v38, %v4331_v29  ;;  %v11764_v29 = vld [vmem:[#allocation16 + $0x8] sm:$0xff] }
 0x50e   :  { %9066 = vmatprep.subr.bf16.mxu1 %v9065_v5 }
 0x50f   :  { %9068 = vmatpush3.bf16.msra.mxu1 %v9065_v5 }
 0x510   :  { %9070 = vmatprep.subr.bf16.mxu1 %v9069_v43 }
 0x512   :  { %8113 = vmatmul.mubr.f32.vlgmr.msra.gmra.mrb[36].mxu1 %v4316_v55 }
 0x513   :  { %9072 = vmatpush3.bf16.msra.mxu1 %v9069_v43  ;;  %8119 = vmatprep.mubr.f32.mxu1 %v11709_v62  ;;  %v3539_v43 = vand.u32 4294901760, %v11762_v42 }
 0x514   :  { %9074 = vmatprep.subr.bf16.mxu1 %v9061_v2 }
 0x51a   :  { %8120 = vmatmul.mubr.f32.vlgmr.msra.gmra.mrb[36].mxu1 %v4317_v4 }
 0x51b   :  { %9076 = vmatpush3.bf16.msra.mxu1 %v9061_v2  ;;  %8126 = vmatprep.mubr.f32.mxu1 %v4308_v54 }
 0x51c   :  { %9078 = vmatprep.subr.bf16.mxu1 %v9077_v45 }
 0x522   :  { %8127 = vmatmul.mubr.f32.vlgmr.msra.gmra.mrb[36].mxu1 %v4318_v59 }
 0x523   :  { %9080 = vmatpush3.bf16.msra.mxu1 %v9077_v45  ;;  %8133 = vmatprep.mubr.f32.mxu1 %v11706_v6  ;;  %v3542_v45 = vand.u32 4294901760, %v11764_v29 }
 0x524   :  { %9082 = vmatprep.subr.bf16.mxu1 %v9061_v2 }
 0x52a   :  { %8134 = vmatmul.mubr.f32.vlgmr.msra.gmra.mrb[36].mxu1 %v4316_v55 }
 0x52b   :  { %9084 = vmatpush3.bf16.msra.mxu1 %v9061_v2  ;;  %8140 = vmatprep.mubr.f32.mxu1 %v11706_v6 }
 0x52c   :  { %9085 = vmatprep.subr.bf16.mxu1 %v13032_v48  ;;  %v4816_v48 = vrot.slane %v11738_v34, %v13268_v61 }
 0x532   :  { %8141 = vmatmul.mubr.f32.vlgmr.msra.gmra.mrb[36].mxu1 %v4316_v55  ;;  %v4832_v55 = vrot.slane %v11738_v34, %v4831_v16 }
 0x605   :  { %v8142_v31 = vpop.f32.mrb[36].mxu1 }
 0x606   :  { %v9493_v3 = vadd.f32 %v8142_v31, %v4230_v17  ;;  %v4731_v35 = vpop.f32.mrb[37].mxu1  ;;  %v11775_v31 = vpack.c.bf16 %v3542_v45, %v3539_v43 }
 0x607   :  { %v9494_v63 = vadd.f32 %v4731_v35, %v4226_v26  ;;  %v11781_v35 = vld [vmem:[#allocation16 + $0x18] sm:$0xff] }
 0x608   :  { %4743 = vadd.xlane.f32.xlu0 %v9493_v3  ;;  %v4746_v62 = vmul.f32 %v9493_v3, %v9493_v3  ;;  %13241 = vst [vmem:[#allocation36_spill] sm:$0xff] %v11775_v31  ;;  %8870 = vmatprep.subr.bf16.mxu0 %v11775_v31 }
 0x609   :  { %4741 = vadd.xlane.f32.xlu1 %v9494_v63  ;;  %v4745_v54 = vmul.f32 %v9494_v63, %v9494_v63  ;;  %8872 = vmatpush3.bf16.msra.mxu0 %v11775_v31 }
 0x60d   :  { %4749 = vadd.xlane.f32.xlu1 %v4746_v62 }
 0x611   :  { %4747 = vadd.xlane.f32.xlu1 %v4745_v54  ;;  %v3548_v54 = vand.u32 4294901760, %v11781_v35 }
 0x61e   :  { %4762 = vperm.xlu0 %9654, %v11698_v27  }
 0x622   :  { %4782 = vperm.xlu1 %9656, %v11694_v21  }
 0x695   :  { %v4744_v6 = vpop.xlane.xlu0 %4743 }
 0x696   :  { %v4742_v19 = vpop.xlane.xlu1 %4741  ;;  %v4752_v51 = vmul.f32 0.0078125, %v4744_v6  ;;  %v11800_v6 = vld [vmem:[#allocation16 + $0x28] sm:$0xff] }
 0x697   :  { %v4751_v47 = vmul.f32 0.0078125, %v4742_v19 }
 0x698   :  { %v4756_v56 = vmul.f32 %v4752_v51, %v4752_v51  ;;  %v4760_v27 = vsub.f32 %v9493_v3, %v4752_v51  ;;  %v11779_v3 = vld [vmem:[#allocation16 + $0x10] sm:$0xff]  ;;  %v3554_v51 = vand.u32 4294901760, %v11800_v6 }
 0x699   :  { %v4755_v52 = vmul.f32 %v4751_v47, %v4751_v47  ;;  %v4759_v40 = vsub.f32 %v9494_v63, %v4751_v47  ;;  %v3545_v62 = vand.u32 4294901760, %v11779_v3  ;;  %v11817_v47 = vld [vmem:[#allocation16 + $0x38] sm:$0xff] }
 0x69a   :  { %v4750_v25 = vpop.xlane.xlu1 %4749  ;;  %v4770_v21 = vmul.f32 %v4767_v44, %v4760_v27 }
 0x69b   :  { %v4754_v14 = vmul.f32 0.0078125, %v4750_v25  ;;  %v11793_v44 = vpack.c.bf16 %v3548_v54, %v3545_v62 }
 0x69d   :  { %v4758_v36 = vsub.f32 %v4754_v14, %v4756_v56  ;;  %v4763_v1 = vpop.permute.xlu0 %4762  ;;  %13242 = vst [vmem:[#allocation37_spill] sm:$0xff] %v11793_v44  ;;  %8874 = vmatprep.subr.bf16.mxu0 %v11793_v44  ;;  %v11815_v56 = vld [vmem:[#allocation16 + $0x30] sm:$0xff] }
 0x69e   :  { %v4748_v9 = vpop.xlane.xlu1 %4747  ;;  %v4769_v33 = vmul.f32 %v4763_v1, %v4759_v40  ;;  %8876 = vmatpush3.bf16.msra.mxu0 %v11793_v44  ;;  %v3557_v14 = vand.u32 4294901760, %v11815_v56  ;;  %v11858_v40 = vld [vmem:[#allocation16 + $0x50] sm:$0xff] }
 0x69f   :  { %v4772_v60 = vadd.f32 1e-05, %v4758_v36  ;;  %v4753_v57 = vmul.f32 0.0078125, %v4748_v9  ;;  %v3560_v36 = vand.u32 4294901760, %v11817_v47  ;;  %v4876_v9 = vld [vmem:[#allocation8 + $0x8] sm:$0xff] }
 0x6a1   :  { %9671 = vrsqrt.f32 %v4772_v60  ;;  %v4757_v41 = vsub.f32 %v4753_v57, %v4755_v52  ;;  %v4880_v52 = vsel %vm4232_vm0, %v4876_v9, 0  ;;  %v11828_v60 = vpack.c.bf16 %v3560_v36, %v3557_v14 }
 0x6a2   :  { %v4783_v32 = vpop.permute.xlu1 %4782  ;;  %v11830_v57 = vand.u32 4294901760, %v4880_v52 }
 0x6a3   :  { %v4771_v49 = vadd.f32 1e-05, %v4757_v41  ;;  %13244 = vst [vmem:[#allocation39_spill] sm:$0xff] %v11828_v60  ;;  %v11836_v41 = vld [vmem:[#allocation16 + $0x40] sm:$0xff] }
 0x6a4   :  { %v3563_v27 = vand.u32 4294901760, %v11836_v41  ;;  %v11844_v16 = vsub.f32 %v4880_v52, %v11830_v57 }
 0x6a5   :  { %9673 = vrsqrt.f32 %v4771_v49  ;;  %v11838_v49 = vld [vmem:[#allocation16 + $0x48] sm:$0xff] }
 0x6a6   :  { %v13031_v1 = vand.u32 4294901760, %v11844_v16 }
 0x6ab   :  { %v9672_v22 = vpop.eup %9671 }
 0x6ac   :  { %v4776_v24 = vmul.f32 %v9672_v22, %v4770_v21  ;;  %v3566_v21 = vand.u32 4294901760, %v11838_v49 }
 0x6ae   :  { %v4786_v30 = vadd.f32 %v4783_v32, %v4776_v24  ;;  %v11851_v22 = vpack.c.bf16 %v3566_v21, %v3563_v27  ;;  %v11860_v24 = vld [vmem:[#allocation16 + $0x58] sm:$0xff]  ;;  %v3569_v32 = vand.u32 4294901760, %v11858_v40 }
 0x6af   :  { %v9674_v46 = vpop.eup %9673 }
 0x6b0   :  { %v4775_v10 = vmul.f32 %v9674_v46, %v4769_v33  ;;  %v11741_v4 = vmax.f32 %v4786_v30, 0.0  ;;  %13245 = vst [vmem:[#allocation29_spill] sm:$0xff] %v11851_v22  ;;  %v3572_v33 = vand.u32 4294901760, %v11860_v24  ;;  %v4970_v30 = vsub.f32 %v11844_v16, %v13031_v1 }
 0x6b2   :  { %v4785_v12 = vadd.f32 %v4779_v15, %v4775_v10  ;;  %4791 = vrot.lane.b32.xlu1 %v11741_v4, %s10000_s18  ;;  %v4834_v20 = vmul.f32 %v4832_v55, %v11741_v4  ;;  %v11798_v15 = vld [vmem:[#allocation16 + $0x20] sm:$0xff]  ;;  %v4971_v46 = vand.u32 4294901760, %v4970_v30 }
 0x6b3   :  { %v3551_v19 = vand.u32 4294901760, %v11798_v15  ;;  %v11879_v10 = vld [vmem:[#allocation16 + $0x60] sm:$0xff] }
 0x6b4   :  { %v4787_v58 = vmax.f32 %v4785_v12, 0.0  ;;  %v4913_v59 = vand.u32 4294901760, %v4834_v20  ;;  %v11881_v12 = vld [vmem:[#allocation16 + $0x68] sm:$0xff]  ;;  %4972 = vmatprep.mubr.f32.mxu1 %v4971_v46 }
 0x6b5   :  { %v11810_v25 = vpack.c.bf16 %v3554_v51, %v3551_v19 }
 0x6b6   :  { %4809 = vrot.lane.b32.xlu0 %v4787_v58, %s10002_s17  ;;  %4801 = vrot.lane.b32.xlu1 %v11741_v4, %s9971_s28  ;;  %v4833_v13 = vmul.f32 %v4832_v55, %v4787_v58  ;;  %v11748_v0 = vsub.f32 %v4834_v20, %v4913_v59  ;;  %v11873_v55 = vpack.c.bf16 %v3572_v33, %v3569_v32  ;;  %v3575_v20 = vand.u32 4294901760, %v11879_v10 }
 0x6b7   :  { %13243 = vst [vmem:[#allocation38_spill] sm:$0xff] %v11810_v25  ;;  %8878 = vmatprep.subr.bf16.mxu0 %v11810_v25 }
 0x6b8   :  { %v4910_v50 = vand.u32 4294901760, %v4833_v13  ;;  %v5064_v8 = vand.u32 4294901760, %v11748_v0  ;;  %8880 = vmatpush3.bf16.msra.mxu0 %v11810_v25  ;;  %13246 = vst [vmem:[#allocation58_spill] sm:$0xff] %v11873_v55  ;;  %v4877_v25 = vld [vmem:[#allocation8 + $0x10] sm:$0xff] }
 0x6b9   :  { %8882 = vmatprep.subr.bf16.mxu0 %v11828_v60 }
 0x6ba   :  { %4819 = vrot.lane.b32.xlu0 %v4787_v58, %s9988_s30  ;;  %4789 = vrot.lane.b32.xlu1 %v4787_v58, %s10000_s18  ;;  %v11752_v2 = vpack.c.bf16 %v4913_v59, %v4910_v50  ;;  %v11754_v28 = vsub.f32 %v4833_v13, %v4910_v50  ;;  %v5065_v39 = vsub.f32 %v11748_v0, %v5064_v8  ;;  %v11905_v50 = vld [vmem:[#allocation16 + $0x70] sm:$0xff] }
 0x6bb   :  { %v11901_v13 = vsub.f32 %v11764_v29, %v3542_v45 }
 0x6bc   :  { %13239 = vst [vmem:[#allocation34_spill] sm:$0xff] %v11752_v2  ;;  %v5057_v37 = vand.u32 4294901760, %v11754_v28  ;;  %v5066_v17 = vand.u32 4294901760, %v5065_v39  ;;  %8884 = vmatpush3.bf16.msra.mxu0 %v11828_v60 }
 0x6bd   :  { %8886 = vmatprep.subr.bf16.mxu0 %v11851_v22  ;;  %13249 = vst [vmem:[#allocation40_spill] sm:$0xff] %v11901_v13 }
 0x6be   :  { %4835 = vrot.lane.b32.xlu0 %v4787_v58, %s9989_s12  ;;  %4799 = vrot.lane.b32.xlu1 %v4787_v58, %s9971_s28  ;;  %v5058_v38 = vsub.f32 %v11754_v28, %v5057_v37  ;;  %v11767_v5 = vpack.c.bf16 %v5064_v8, %v5057_v37  ;;  %v11907_v8 = vld [vmem:[#allocation16 + $0x78] sm:$0xff]  ;;  %v3581_v37 = vand.u32 4294901760, %v11905_v50 }
 0x6bf   :  { %v3584_v39 = vand.u32 4294901760, %v11907_v8 }
 0x6c0   :  { %13240 = vst [vmem:[#allocation35_spill] sm:$0xff] %v11767_v5  ;;  %v5059_v26 = vand.u32 4294901760, %v5058_v38  ;;  %8888 = vmatpush3.bf16.msra.mxu0 %v11851_v22  ;;  %v13029_v38 = vand.u32 4294901760, %v11901_v13  ;;  %v4841_v5 = vsub.s32 5, %v13238_v53 }
 0x6c1   :  { %8890 = vmatprep.subr.bf16.mxu0 %v11873_v55  ;;  %v11919_v29 = vpack.c.bf16 %v3584_v39, %v3581_v37 }
 0x6c2   :  { %4845 = vrot.lane.b32.xlu0 %v4787_v58, %s10003_s19  ;;  %4811 = vrot.lane.b32.xlu1 %v11741_v4, %s10002_s17  ;;  %v11783_v63 = vpack.c.bf16 %v5066_v17, %v5059_v26  ;;  %v3650_v45 = vsub.f32 %v11901_v13, %v13029_v38  ;;  %v11930_v26 = vsub.f32 %v11779_v3, %v3545_v62 }
 0x6c3   :  { %13250 = vst [vmem:[#allocation42_spill] sm:$0xff] %v11919_v29  ;;  %v11937_v17 = vsub.f32 %v11781_v35, %v3548_v54  ;;  %v11951_v35 = vsub.f32 %v11798_v15, %v3551_v19  ;;  %v11956_v54 = vsub.f32 %v11800_v6, %v3554_v51 }
 0x6c4   :  { %8892 = vmatpush3.bf16.msra.mxu0 %v11873_v55  ;;  %13251 = vst [vmem:[#allocation41_spill] sm:$0xff] %v11930_v26  ;;  %v3651_v52 = vand.u32 4294901760, %v3650_v45  ;;  %v13017_v30 = vand.u32 4294901760, %v11930_v26  ;;  %v4875_v55 = vld [vmem:[#allocation8] sm:$0xff] }
 0x6c5   :  { %13252 = vst [vmem:[#allocation53_spill] sm:$0xff] %v11937_v17  ;;  %v13016_v46 = vand.u32 4294901760, %v11937_v17  ;;  %13253 = vst [vmem:[#allocation55_spill] sm:$0xff] %v11951_v35  ;;  %v13028_v15 = vand.u32 4294901760, %v11956_v54 }
 0x6c6   :  { %4855 = vrot.lane.b32.xlu0 %v4787_v58, %s10004_s3  ;;  %4821 = vrot.lane.b32.xlu1 %v11741_v4, %s9988_s30  ;;  %v3657_v62 = vsub.f32 %v11930_v26, %v13017_v30  ;;  %13254 = vst [vmem:[#allocation30_spill] sm:$0xff] %v11956_v54 }
 0x6c7   :  { %v3678_v51 = vsub.f32 %v11956_v54, %v13028_v15 }
 0x6c8   :  { %v3658_v45 = vand.u32 4294901760, %v3657_v62  ;;  %v11980_v62 = vsub.f32 %v11817_v47, %v3560_v36  ;;  %v11997_v47 = vsub.f32 %v11836_v41, %v3563_v27  ;;  %v12002_v36 = vsub.f32 %v11838_v49, %v3566_v21 }
 0x6c9   :  { %v3679_v7 = vand.u32 4294901760, %v3678_v51  ;;  %v12014_v41 = vsub.f32 %v11858_v40, %v3569_v32  ;;  %v12019_v49 = vsub.f32 %v11860_v24, %v3572_v33  ;;  %v12035_v24 = vsub.f32 %v11879_v10, %v3575_v20 }
 0x6ca   :  { %4865 = vrot.lane.b32.xlu0 %v4787_v58, %s10005_s9  ;;  %4837 = vrot.lane.b32.xlu1 %v11741_v4, %s9989_s12  ;;  %v3578_v58 = vand.u32 4294901760, %v11881_v12  ;;  %13256 = vst [vmem:[#allocation45_spill] sm:$0xff] %v11980_v62  ;;  %13257 = vst [vmem:[#allocation46_spill] sm:$0xff] %v11997_v47 }
 0x6cb   :  { %13258 = vst [vmem:[#allocation47_spill] sm:$0xff] %v12002_v36  ;;  %13259 = vst [vmem:[#allocation48_spill] sm:$0xff] %v12014_v41 }
 0x6cc   :  { %v11891_v59 = vpack.c.bf16 %v3578_v58, %v3575_v20  ;;  %13260 = vst [vmem:[#allocation49_spill] sm:$0xff] %v12019_v49  ;;  %13261 = vst [vmem:[#allocation50_spill] sm:$0xff] %v12035_v24  ;;  %v12040_v33 = vsub.f32 %v11881_v12, %v3578_v58  ;;  %v12057_v12 = vsub.f32 %v11905_v50, %v3581_v37 }
 0x6cd   :  { %v12062_v58 = vsub.f32 %v11907_v8, %v3584_v39 }
 0x6ce   :  { %3520 = vrot.lane.b32.xlu0 %v11721_v23, %s9989_s12  ;;  %4847 = vrot.lane.b32.xlu1 %v11741_v4, %s10003_s19  ;;  %13247 = vst [vmem:[#allocation31_spill] sm:$0xff] %v11891_v59  ;;  %13262 = vst [vmem:[#allocation51_spill] sm:$0xff] %v12040_v33 }
 0x6cf   :  { %8894 = vmatprep.subr.bf16.mxu0 %v11891_v59  ;;  %13263 = vst [vmem:[#allocation52_spill] sm:$0xff] %v12057_v12  ;;  %13264 = vst [vmem:[#allocation54_spill] sm:$0xff] %v12062_v58 }
 0x6d0   :  { %8896 = vmatpush3.bf16.msra.mxu0 %v11891_v59 }
 0x6d1   :  { %8898 = vmatprep.subr.bf16.mxu0 %v11919_v29 }
 0x6d2   :  { %3530 = vrot.lane.b32.xlu0 %v11721_v23, %s10005_s9  ;;  %4857 = vrot.lane.b32.xlu1 %v11741_v4, %s10004_s3 }
 0x6d4   :  { %8900 = vmatpush3.bf16.msra.mxu0 %v11919_v29 }
 0x6d6   :  { %3528 = vrot.lane.b32.xlu0 %v11725_v11, %s10004_s3  ;;  %4867 = vrot.lane.b32.xlu1 %v11741_v4, %s10005_s9  ;;  %v11896_v4 = vsub.f32 %v11762_v42, %v3539_v43 }
 0x6d8   :  { %13248 = vst [vmem:[#allocation43_spill] sm:$0xff] %v11896_v4  ;;  %v13030_v42 = vand.u32 4294901760, %v11896_v4  ;;  %v12078_v39 = vpack.c.bf16 %v11901_v13, %v11896_v4 }
 0x6da   :  { %3526 = vrot.lane.b32.xlu1 %v11721_v23, %s10004_s3  ;;  %v3643_v43 = vsub.f32 %v11896_v4, %v13030_v42 }
 0x6dc   :  { %v3644_v9 = vand.u32 4294901760, %v3643_v43  ;;  %v3664_v43 = vsub.f32 %v11937_v17, %v13016_v46  ;;  %v13026_v46 = vand.u32 4294901760, %v11980_v62 }
 0x6de   :  { %3522 = vrot.lane.b32.xlu1 %v11725_v11, %s9989_s12  ;;  %v11943_v3 = vpack.c.bf16 %v3651_v52, %v3644_v9  ;;  %v13015_v9 = vand.u32 4294901760, %v11951_v35  ;;  %v3665_v19 = vand.u32 4294901760, %v3664_v43  ;;  %v11975_v52 = vsub.f32 %v11815_v56, %v3557_v14 }
 0x6df   :  { %v3692_v14 = vsub.f32 %v11980_v62, %v13026_v46 }
 0x6e0   :  { %8902 = vmatprep.subr.bf16.mxu0 %v11943_v3  ;;  %v3671_v6 = vsub.f32 %v11951_v35, %v13015_v9  ;;  %13255 = vst [vmem:[#allocation44_spill] sm:$0xff] %v11975_v52  ;;  %v11982_v18 = vpack.c.bf16 %v3665_v19, %v3658_v45  ;;  %v13027_v9 = vand.u32 4294901760, %v11975_v52  ;;  %v13020_v19 = vand.u32 4294901760, %v11997_v47 }
 0x6e1   :  { %v3693_v45 = vand.u32 4294901760, %v3692_v14  ;;  %v13025_v14 = vand.u32 4294901760, %v12019_v49 }
 0x6e2   :  { %3532 = vrot.lane.b32.xlu1 %v11725_v11, %s10005_s9  ;;  %v3672_v43 = vand.u32 4294901760, %v3671_v6  ;;  %v3685_v56 = vsub.f32 %v11975_v52, %v13027_v9  ;;  %v13019_v6 = vand.u32 4294901760, %v12002_v36  ;;  %v13267_v9 = vsub.s32 1, %v13238_v53 }
 0x6e3   :  { %v3720_v32 = vsub.f32 %v12019_v49, %v13025_v14 }
 0x6e4   :  { %v11986_v30 = vpack.c.bf16 %v3679_v7, %v3672_v43  ;;  %v3686_v7 = vand.u32 4294901760, %v3685_v56  ;;  %v3699_v43 = vsub.f32 %v11997_v47, %v13020_v19  ;;  %v3706_v27 = vsub.f32 %v12002_v36, %v13019_v6 }
 0x6e5   :  { %v13018_v56 = vand.u32 4294901760, %v12014_v41  ;;  %v13021_v6 = vand.u32 4294901760, %v12040_v33  ;;  %v4806_v15 = vrot.slane %v11738_v34, %v13267_v9  ;;  %v13269_v9 = vsub.s32 3, %v13238_v53 }
 0x6e6   :  { %v12006_v51 = vpack.c.bf16 %v3693_v45, %v3686_v7  ;;  %v3700_v21 = vand.u32 4294901760, %v3699_v43  ;;  %v3707_v7 = vand.u32 4294901760, %v3706_v27  ;;  %v3721_v27 = vand.u32 4294901760, %v3720_v32 }
 0x6e7   :  { %v3713_v40 = vsub.f32 %v12014_v41, %v13018_v56  ;;  %v13024_v56 = vand.u32 4294901760, %v12035_v24  ;;  %v3734_v20 = vsub.f32 %v12040_v33, %v13021_v6  ;;  %v13022_v32 = vand.u32 4294901760, %v12062_v58 }
 0x6e8   :  { %v12042_v45 = vpack.c.bf16 %v3707_v7, %v3700_v21 }
 0x6e9   :  { %v3714_v43 = vand.u32 4294901760, %v3713_v40  ;;  %v3727_v10 = vsub.f32 %v12035_v24, %v13024_v56  ;;  %v3735_v7 = vand.u32 4294901760, %v3734_v20  ;;  %v13023_v40 = vand.u32 4294901760, %v12057_v12 }
 0x6ea   :  { %v3748_v50 = vsub.f32 %v12062_v58, %v13022_v32  ;;  %v12086_v20 = vpack.c.bf16 %v11956_v54, %v11951_v35 }
 0x6eb   :  { %v12046_v19 = vpack.c.bf16 %v3721_v27, %v3714_v43  ;;  %v3728_v21 = vand.u32 4294901760, %v3727_v10  ;;  %v3741_v27 = vsub.f32 %v12057_v12, %v13023_v40  ;;  %v12082_v10 = vpack.c.bf16 %v11937_v17, %v11930_v26 }
 0x6ec   :  { %v3749_v6 = vand.u32 4294901760, %v3748_v50  ;;  %v12106_v50 = vpack.c.bf16 %v12062_v58, %v12057_v12 }
 0x6ed   :  { %v12066_v43 = vpack.c.bf16 %v3735_v7, %v3728_v21  ;;  %v3742_v37 = vand.u32 4294901760, %v3741_v27  ;;  %v12090_v21 = vpack.c.bf16 %v11980_v62, %v11975_v52  ;;  %v12098_v7 = vpack.c.bf16 %v12019_v49, %v12014_v41 }
 0x6ee   :  { %v12102_v27 = vpack.c.bf16 %v12040_v33, %v12035_v24  ;;  %13265 = vst [vmem:[#allocation56_spill] sm:$0xff] %v12106_v50 }
 0x6ef   :  { %v12074_v8 = vpack.c.bf16 %v3749_v6, %v3742_v37  ;;  %v12094_v6 = vpack.c.bf16 %v12002_v36, %v11997_v47  ;;  %v13266_v37 = vsub.s32 0, %v13238_v53  ;;  %v4826_v36 = vrot.slane %v11738_v34, %v13269_v9 }
 0x6f1   :  { %v4796_v32 = vrot.slane %v11738_v34, %v13266_v37 }
 0x724   :  { %v4792_v40 = vpop.permute.xlu1 %4791 }
 0x725   :  { %v4798_v56 = vmul.f32 %v4796_v32, %v4792_v40 }
 0x727   :  { %v4889_v38 = vand.u32 4294901760, %v4798_v56 }
 0x728   :  { %v4810_v14 = vpop.permute.xlu0 %4809  ;;  %v4802_v46 = vpop.permute.xlu1 %4801 }
 0x729   :  { %v4808_v58 = vmul.f32 %v4806_v15, %v4802_v46  ;;  %v12118_v37 = vsub.f32 %v4798_v56, %v4889_v38  ;;  %v4817_v49 = vmul.f32 %v4816_v48, %v4810_v14  ;;  %v4851_v46 = vsub.s32 6, %v13238_v53 }
 0x72b   :  { %v4895_v41 = vand.u32 4294901760, %v4808_v58  ;;  %v13049_v56 = vand.u32 4294901760, %v12118_v37  ;;  %v4898_v35 = vand.u32 4294901760, %v4817_v49  ;;  %v4852_v26 = vrot.slane %v11738_v34, %v4851_v46 }
 0x72c   :  { %v4820_v42 = vpop.permute.xlu0 %4819  ;;  %v4790_v1 = vpop.permute.xlu1 %4789 }
 0x72d   :  { %v4797_v12 = vmul.f32 %v4796_v32, %v4790_v1  ;;  %v4842_v1 = vrot.slane %v11738_v34, %v4841_v5  ;;  %v12132_v9 = vsub.f32 %v4808_v58, %v4895_v41 }
 0x72f   :  { %v4886_v40 = vand.u32 4294901760, %v4797_v12 }
 0x730   :  { %v4836_v33 = vpop.permute.xlu0 %4835  ;;  %v4800_v24 = vpop.permute.xlu1 %4799 }
 0x731   :  { %v12123_v47 = vpack.c.bf16 %v4889_v38, %v4886_v40  ;;  %v12125_v62 = vsub.f32 %v4797_v12, %v4886_v40  ;;  %v4807_v61 = vmul.f32 %v4806_v15, %v4800_v24  ;;  %v13271_v12 = vmov 0.0|0.0  }
 0x732   :  { %v4827_v15 = vmul.f32 %v4826_v36, %v4820_v42  ;;  %v4843_v17 = vmul.f32 %v4842_v1, %v4836_v33  ;;  %v13060_v33 = vand.u32 4294901760, %v12132_v9 }
 0x733   :  { %13270 = vst [vmem:[#allocation57_spill] sm:$0xff] %v12123_v47  ;;  %v13050_v32 = vand.u32 4294901760, %v12125_v62  ;;  %v4892_v52 = vand.u32 4294901760, %v4807_v61  ;;  %9087 = vmatpush1.bf16.msra.mxu1 %v12123_v47 }
 0x734   :  { %v4846_v14 = vpop.permute.xlu0 %4845  ;;  %v4812_v54 = vpop.permute.xlu1 %4811  ;;  %9088 = vmatprep.subr.bf16.mxu1 %v13271_v12 }
 0x735   :  { %v4818_v38 = vmul.f32 %v4816_v48, %v4812_v54  ;;  %v12135_v24 = vpack.c.bf16 %v4895_v41, %v4892_v52  ;;  %v12137_v5 = vsub.f32 %v4807_v61, %v4892_v52  ;;  %v12143_v40 = vpack.c.bf16 %v13049_v56, %v13050_v32 }
 0x736   :  { %v4861_v48 = vsub.s32 7, %v13238_v53  ;;  %v12154_v41 = vsub.f32 %v4817_v49, %v4898_v35  ;;  %v4904_v61 = vand.u32 4294901760, %v4827_v15  ;;  %v4916_v32 = vand.u32 4294901760, %v4843_v17 }
 0x737   :  { %13272 = vst [vmem:[#allocation59_spill] sm:$0xff] %v12135_v24  ;;  %13273 = vst [vmem:[#allocation32_spill] sm:$0xff] %v12143_v40  ;;  %v4901_v13 = vand.u32 4294901760, %v4818_v38  ;;  %9090 = vmatpush1.bf16.msra.mxu1 %v12135_v24  ;;  %v4853_v58 = vmul.f32 %v4852_v26, %v4846_v14 }
 0x738   :  { %v4822_v42 = vpop.permute.xlu1 %4821  ;;  %9091 = vmatprep.subr.bf16.mxu1 %v13271_v12  ;;  %v4856_v46 = vpop.permute.xlu0 %4855  ;;  %v4862_v53 = vrot.slane %v11738_v34, %v4861_v48  ;;  %v13065_v14 = vand.u32 4294901760, %v12154_v41  ;;  %v12174_v48 = vsub.f32 %v4843_v17, %v4916_v32  ;;  %v7146_v17 = vld [vmem:[#allocation13 + $0x8] ss:$0 sm:$0xff] }
 0x739   :  { %v12149_v54 = vpack.c.bf16 %v4901_v13, %v4898_v35  ;;  %v12151_v52 = vsub.f32 %v4818_v38, %v4901_v13  ;;  %v4828_v56 = vmul.f32 %v4826_v36, %v4822_v42  ;;  %v13275_v38 = vand.u32 4294901760, %v12137_v5  ;;  %v4878_v36 = vld [vmem:[#allocation8 + $0x18] sm:$0xff] }
 0x73a   :  { %v12168_v42 = vsub.f32 %v4827_v15, %v4904_v61  ;;  %v4922_v29 = vand.u32 4294901760, %v4853_v58  ;;  %v4863_v22 = vmul.f32 %v4862_v53, %v4856_v46 }
 0x73b   :  { %13274 = vst [vmem:[#allocation60_spill] sm:$0xff] %v12149_v54  ;;  %v4907_v4 = vand.u32 4294901760, %v4828_v56  ;;  %9093 = vmatpush1.bf16.msra.mxu1 %v12149_v54  ;;  %v12164_v35 = vpack.c.bf16 %v13060_v33, %v13275_v38  ;;  %v4883_v33 = vsel %vm4232_vm0, %v4878_v36, 0  ;;  %v13278_v15 = vand.u32 4294901760, %v12151_v52 }
 0x73c   :  { %v4838_v13 = vpop.permute.xlu1 %4837  ;;  %9094 = vmatprep.subr.bf16.mxu1 %v13271_v12  ;;  %v12189_v38 = vand.u32 4294901760, %v4875_v55  ;;  %v12192_v60 = vsub.f32 %v4853_v58, %v4922_v29  ;;  %v13282_v58 = vand.u32 4294901760, %v12174_v48 }
 0x73d   :  { %13276 = vst [vmem:[#allocation33_spill] sm:$0xff] %v12164_v35  ;;  %v4844_v49 = vmul.f32 %v4842_v1, %v4838_v13  ;;  %v12170_v40 = vpack.c.bf16 %v4907_v4, %v4904_v61  ;;  %v12172_v34 = vsub.f32 %v4828_v56, %v4907_v4  ;;  %v4866_v1 = vpop.permute.xlu0 %4865  ;;  %v12183_v4 = vpack.c.bf16 %v13278_v15, %v13065_v14 }
 0x73e   :  { %v13078_v61 = vand.u32 4294901760, %v12168_v42  ;;  %v4928_v15 = vand.u32 4294901760, %v4863_v22  ;;  %v4873_v14 = vmul.f32 %v7146_v17, %v4866_v1  ;;  %v12216_v31 = vsub.f32 %v4875_v55, %v12189_v38 }
 0x73f   :  { %13277 = vst [vmem:[#allocation28_spill] sm:$0xff] %v12170_v40  ;;  %v4919_v59 = vand.u32 4294901760, %v4844_v49  ;;  %9096 = vmatpush1.bf16.msra.mxu1 %v12170_v40  ;;  %13279 = vst [vmem:[#allocation61_spill] sm:$0xff] %v12183_v4  ;;  %v12195_v40 = vand.u32 4294901760, %v4883_v33 }
 0x740   :  { %v4848_v13 = vpop.permute.xlu1 %4847  ;;  %9097 = vmatprep.subr.bf16.mxu1 %v13271_v12  ;;  %13285 = vst [vmem:[#allocation65_spill] sm:$0xff] %v12216_v31 }
 0x741   :  { %v12185_v56 = vsub.f32 %v4844_v49, %v4919_v59  ;;  %v4854_v46 = vmul.f32 %v4852_v26, %v4848_v13  ;;  %v13280_v26 = vand.u32 4294901760, %v12172_v34  ;;  %v12211_v1 = vpack.c.bf16 %v4919_v59, %v4916_v32 }
 0x743   :  { %v13079_v36 = vand.u32 4294901760, %v12185_v56  ;;  %v4925_v4 = vand.u32 4294901760, %v4854_v46  ;;  %9099 = vmatpush1.bf16.msra.mxu1 %v11752_v2  ;;  %v12202_v13 = vpack.c.bf16 %v13280_v26, %v13078_v61  ;;  %13284 = vst [vmem:[#allocation64_spill] sm:$0xff] %v12211_v1  ;;  %v3521_v2 = vpop.permute.xlu0 %3520  ;;  %v12219_v26 = vsub.f32 %v4883_v33, %v12195_v40 }
 0x744   :  { %v4858_v49 = vpop.permute.xlu1 %4857  ;;  %9100 = vmatprep.subr.bf16.mxu1 %v13271_v12  ;;  %v12224_v61 = vsub.f32 %v4863_v22, %v4928_v15 }
 0x745   :  { %13281 = vst [vmem:[#allocation62_spill] sm:$0xff] %v12202_v13  ;;  %v4864_v35 = vmul.f32 %v4862_v53, %v4858_v49  ;;  %v12209_v54 = vpack.c.bf16 %v13079_v36, %v13282_v58  ;;  %v12213_v44 = vsub.f32 %v4854_v46, %v4925_v4  ;;  %13286 = vst [vmem:[#allocation66_spill] sm:$0xff] %v12219_v26  ;;  %v12221_v53 = vand.u32 4294901760, %v4877_v25 }
 0x746   :  { %v13082_v49 = vand.u32 4294901760, %v12192_v60  ;;  %v4934_v58 = vand.u32 4294901760, %v4873_v14  ;;  %v12231_v55 = vpack.c.bf16 %v4925_v4, %v4922_v29 }
 0x747   :  { %13283 = vst [vmem:[#allocation63_spill] sm:$0xff] %v12209_v54  ;;  %v4931_v24 = vand.u32 4294901760, %v4864_v35  ;;  %v13083_v59 = vand.u32 4294901760, %v12213_v44  ;;  %9102 = vmatpush1.bf16.msra.mxu1 %v12211_v1  ;;  %v12242_v1 = vsub.f32 %v4877_v25, %v12221_v53  ;;  %v3531_v29 = vpop.permute.xlu0 %3530  ;;  %v13290_v25 = vand.u32 4294901760, %v12125_v62 }
 0x748   :  { %v4868_v32 = vpop.permute.xlu1 %4867  ;;  %9103 = vmatprep.subr.bf16.mxu1 %v13271_v12  ;;  %13287 = vst [vmem:[#allocation67_spill] sm:$0xff] %v12231_v55 }
 0x749   :  { %v12228_v46 = vsub.f32 %v4864_v35, %v4931_v24  ;;  %v4874_v36 = vmul.f32 %v7146_v17, %v4868_v32  ;;  %v12237_v33 = vpack.c.bf16 %v13083_v59, %v13082_v49  ;;  %13289 = vst [vmem:[#allocation69_spill] sm:$0xff] %v12242_v1  ;;  %v12245_v17 = vsub.f32 %v4873_v14, %v4934_v58 }
 0x74a   :  { %v3524_v49 = vmax.f32 %v11721_v23, %v3521_v2  ;;  %v5002_v13 = vsub.f32 %v12125_v62, %v13290_v25  ;;  %v12256_v35 = vpack.c.bf16 %v4931_v24, %v4928_v15  ;;  %v13292_v14 = vand.u32 4294901760, %v12224_v61 }
 0x74b   :  { %13288 = vst [vmem:[#allocation68_spill] sm:$0xff] %v12237_v33  ;;  %v4937_v54 = vand.u32 4294901760, %v4874_v36  ;;  %9105 = vmatpush1.bf16.msra.mxu1 %v12231_v55  ;;  %v13293_v33 = vand.u32 4294901760, %v12228_v46  ;;  %v13295_v2 = vand.u32 4294901760, %v12216_v31  ;;  %v13095_v15 = vand.u32 4294901760, %v12245_v17 }
 0x74c   :  { %v3527_v4 = vpop.permute.xlu1 %3526  ;;  %9106 = vmatprep.subr.bf16.mxu1 %v13271_v12  ;;  %13291 = vst [vmem:[#allocation70_spill] sm:$0xff] %v12256_v35 }
 0x74d   :  { %v12250_v59 = vsub.f32 %v4874_v36, %v4937_v54  ;;  %v3534_v22 = vmax.f32 %v3527_v4, %v3531_v29  ;;  %v12262_v55 = vpack.c.bf16 %v13293_v33, %v13292_v14  ;;  %v4976_v36 = vsub.f32 %v12216_v31, %v13295_v2 }
 0x74e   :  { %v13296_v4 = vand.u32 4294901760, %v12118_v37  ;;  %v13297_v33 = vand.u32 4294901760, %v12219_v26  ;;  %v13298_v2 = vand.u32 4294901760, %v12137_v5  ;;  %v12283_v32 = vpack.c.bf16 %v4937_v54, %v4934_v58  ;;  %v3529_v58 = vpop.permute.xlu0 %3528 }
 0x74f   :  { %13294 = vst [vmem:[#allocation71_spill] sm:$0xff] %v12262_v55  ;;  %v3536_v23 = vmax.f32 %v3524_v49, %v3534_v22  ;;  %9108 = vmatpush1.bf16.msra.mxu1 %v12256_v35  ;;  %v5003_v22 = vand.u32 4294901760, %v5002_v13  ;;  %v13302_v31 = vand.u32 4294901760, %v12132_v9 }
 0x750   :  { %v5009_v24 = vsub.f32 %v12118_v37, %v13296_v4  ;;  %v3523_v25 = vpop.permute.xlu1 %3522  ;;  %v4985_v14 = vsub.f32 %v12219_v26, %v13297_v33  ;;  %9109 = vmatprep.subr.bf16.mxu1 %v13271_v12  ;;  %v5016_v29 = vsub.f32 %v12137_v5, %v13298_v2  ;;  %v13299_v4 = vand.u32 4294901760, %v12250_v59 }
 0x751   :  { %v12277_v49 = vand.u32 4294901760, %v3536_v23  ;;  %v4977_v33 = vand.u32 4294901760, %v4976_v36  ;;  %v13301_v26 = vand.u32 4294901760, %v12242_v1  ;;  %v5023_v54 = vsub.f32 %v12132_v9, %v13302_v31 }
 0x752   :  { %v12289_v55 = vpack.c.bf16 %v13299_v4, %v13095_v15  ;;  %v5010_v47 = vand.u32 4294901760, %v5009_v24  ;;  %v4986_v50 = vand.u32 4294901760, %v4985_v14  ;;  %v3525_v4 = vmax.f32 %v11725_v11, %v3523_v25 }
 0x753   :  { %v12292_v35 = vsub.f32 %v3536_v23, %v12277_v49  ;;  %v4991_v13 = vsub.f32 %v12242_v1, %v13301_v26  ;;  %9111 = vmatpush1.bf16.msra.mxu1 %v12283_v32  ;;  %v5017_v36 = vand.u32 4294901760, %v5016_v29  ;;  %v13303_v26 = vand.u32 4294901760, %v12151_v52 }
 0x754   :  { %13300 = vst [vmem:[#allocation72_spill] sm:$0xff] %v12289_v55  ;;  %v3533_v2 = vpop.permute.xlu1 %3532  ;;  %9112 = vmatprep.subr.bf16.mxu1 %v13271_v12  ;;  %v9113_v55 = vpack.c.bf16 %v5010_v47, %v5003_v22  ;;  %v13304_v11 = vand.u32 4294901760, %v12154_v41 }
 0x755   :  { %v3535_v15 = vmax.f32 %v3529_v58, %v3533_v2  ;;  %v3621_v23 = vand.u32 4294901760, %v12292_v35  ;;  %v5037_v24 = vsub.f32 %v12151_v52, %v13303_v26  ;;  %v4992_v14 = vand.u32 4294901760, %v4991_v13 }
 0x756   :  { %4978 = vmatmul.mubr.f32.vlgmr.msra.gmra.mrb[38].mxu1 %v4977_v33  ;;  %v5030_v25 = vsub.f32 %v12154_v41, %v13304_v11  ;;  %v5024_v58 = vand.u32 4294901760, %v5023_v54 }
 0x757   :  { %v3537_v1 = vmax.f32 %v3525_v4, %v3535_v15  ;;  %v3622_v31 = vsub.f32 %v12292_v35, %v3621_v23  ;;  %9114 = vmatpush1.bf16.msra.mxu1 %v9113_v55  ;;  %4987 = vmatprep.mubr.f32.mxu1 %v4986_v50  ;;  %v5038_v47 = vand.u32 4294901760, %v5037_v24  ;;  %v13305_v15 = vand.u32 4294901760, %v12172_v34 }
 0x758   :  { %9115 = vmatprep.subr.bf16.mxu1 %v13271_v12  ;;  %v9116_v33 = vpack.c.bf16 %v5024_v58, %v5017_v36  ;;  %v5031_v4 = vand.u32 4294901760, %v5030_v25  ;;  %v13306_v55 = vand.u32 4294901760, %v12168_v42  ;;  %v13308_v58 = vand.u32 4294901760, %v12174_v48 }
 0x759   :  { %v12313_v29 = vand.u32 4294901760, %v3537_v1  ;;  %v3623_v2 = vand.u32 4294901760, %v3622_v31  ;;  %v5051_v22 = vsub.f32 %v12172_v34, %v13305_v15  ;;  %v13309_v15 = vand.u32 4294901760, %v12213_v44 }
 0x75a   :  { %4993 = vmatmul.mubr.f32.gmra.mrb[40].mxu1 %v4992_v14  ;;  %v5044_v50 = vsub.f32 %v12168_v42, %v13306_v55  ;;  %v9119_v24 = vpack.c.bf16 %v5038_v47, %v5031_v4  ;;  %v13307_v14 = vand.u32 4294901760, %v12185_v56  ;;  %v13310_v4 = vand.u32 4294901760, %v12192_v60 }
 0x75b   :  { %v12320_v13 = vsub.f32 %v3537_v1, %v12313_v29  ;;  %7923 = vmatprep.mubr.f32.mxu0 %v3623_v2  ;;  %9117 = vmatpush1.bf16.msra.mxu1 %v9116_v33  ;;  %v5052_v26 = vand.u32 4294901760, %v5051_v22  ;;  %v5072_v2 = vsub.f32 %v12174_v48, %v13308_v58  ;;  %v5093_v22 = vsub.f32 %v12213_v44, %v13309_v15 }
 0x75c   :  { %5153 = vmatprep.mubr.f32.mxu1 %v11830_v57  ;;  %9118 = vmatprep.subr.bf16.mxu1 %v13271_v12  ;;  %v5045_v36 = vand.u32 4294901760, %v5044_v50  ;;  %v5079_v11 = vsub.f32 %v12185_v56, %v13307_v14  ;;  %v5086_v55 = vsub.f32 %v12192_v60, %v13310_v4 }
 0x75d   :  { %v3631_v54 = vand.u32 4294901760, %v12320_v13  ;;  %v5073_v33 = vand.u32 4294901760, %v5072_v2  ;;  %v5094_v50 = vand.u32 4294901760, %v5093_v22 }
 0x75e   :  { %v9122_v25 = vpack.c.bf16 %v5052_v26, %v5045_v36  ;;  %v5080_v47 = vand.u32 4294901760, %v5079_v11  ;;  %v13311_v26 = vand.u32 4294901760, %v12228_v46  ;;  %v5087_v36 = vand.u32 4294901760, %v5086_v55 }
 0x75f   :  { %v3632_v1 = vsub.f32 %v12320_v13, %v3631_v54  ;;  %9120 = vmatpush1.bf16.msra.mxu1 %v9119_v24  ;;  %v13313_v11 = vand.u32 4294901760, %v12250_v59 }
 0x760   :  { %9121 = vmatprep.subr.bf16.mxu1 %v13271_v12  ;;  %v5107_v24 = vsub.f32 %v12228_v46, %v13311_v26  ;;  %v9131_v58 = vpack.c.bf16 %v5094_v50, %v5087_v36  ;;  %v9140_v50 = vpack.c.bf16 %v12118_v37, %v12125_v62  ;;  %v9143_v26 = vpack.c.bf16 %v12132_v9, %v12137_v5  ;;  %v13332_v36 = vld [vmem:[#allocation58_spill] sm:$0xff] }
 0x761   :  { %v3633_v31 = vand.u32 4294901760, %v3632_v1  ;;  %v9128_v1 = vpack.c.bf16 %v5080_v47, %v5073_v33  ;;  %v13314_v47 = vand.u32 4294901760, %v12245_v17  ;;  %v9146_v62 = vpack.c.bf16 %v12151_v52, %v12154_v41  ;;  %v13318_v41 = vld [vmem:[#allocation57_spill] sm:$0xff] }
 0x762   :  { %v9149_v37 = vpack.c.bf16 %v12172_v34, %v12168_v42  ;;  %v13315_v9 = vpack.c.bf16 %v11748_v0, %v11754_v28  ;;  %v9155_v5 = vpack.c.bf16 %v12185_v56, %v12174_v48  ;;  %v9158_v52 = vpack.c.bf16 %v12213_v44, %v12192_v60  ;;  %v13316_v44 = vld [vmem:[#allocation56_spill] sm:$0xff]  ;;  %v13317_v60 = vld [vmem:[#allocation65_spill] sm:$0xff]  ;;  %v13320_v34 = vld [vmem:[#allocation66_spill] sm:$0xff] }
 0x763   :  { %7924 = vmatmul.mubr.f32.vlgmr.msra.gmra.mrb[24].mxu0 %v3633_v31  ;;  %9123 = vmatpush1.bf16.msra.mxu1 %v9122_v25  ;;  %v13312_v31 = vand.u32 4294901760, %v12224_v61  ;;  %v5121_v25 = vsub.f32 %v12250_v59, %v13313_v11  ;;  %v5114_v15 = vsub.f32 %v12245_v17, %v13314_v47  ;;  %v9161_v0 = vpack.c.bf16 %v12228_v46, %v12224_v61  ;;  %v13319_v42 = vld [vmem:[#allocation36_spill] sm:$0xff]  ;;  %v13321_v48 = vld [vmem:[#allocation59_spill] sm:$0xff]  ;;  %v13322_v56 = vld [vmem:[#allocation37_spill] sm:$0xff] }
 0x764   :  { %8904 = vmatpush3.bf16.msra.mxu0 %v11943_v3  ;;  %7958 = vmatprep.mubr.f32.mxu0 %v12277_v49  ;;  %v9164_v28 = vpack.c.bf16 %v12250_v59, %v12245_v17  ;;  %v13324_v59 = vand.u32 4294901760, %v11844_v16  ;;  %v13325_v46 = vld [vmem:[#allocation60_spill] sm:$0xff]  ;;  %v13326_v17 = vld [vmem:[#allocation38_spill] sm:$0xff] }
 0x765   :  { %8906 = vmatprep.subr.bf16.mxu0 %v11982_v18  ;;  %9124 = vmatprep.subr.bf16.mxu1 %v13271_v12  ;;  %v5100_v14 = vsub.f32 %v12224_v61, %v13312_v31  ;;  %v5122_v22 = vand.u32 4294901760, %v5121_v25  ;;  %v5115_v4 = vand.u32 4294901760, %v5114_v15  ;;  %v13323_v61 = vld [vmem:[#allocation69_spill] sm:$0xff]  ;;  %v13333_v31 = vld [vmem:[#allocation67_spill] sm:$0xff]  ;;  %v13336_v11 = vld [vmem:[#allocation42_spill] sm:$0xff] }
 0x766   :  { %v13337_v25 = vld [vmem:[#allocation43_spill] sm:$0xff] }
 0x767   :  { %9126 = vmatpush1.bf16.msra.mxu1 %v11783_v63  ;;  %v5108_v63 = vand.u32 4294901760, %v5107_v24  ;;  %v5101_v2 = vand.u32 4294901760, %v5100_v14  ;;  %v9137_v55 = vpack.c.bf16 %v5122_v22, %v5115_v4  ;;  %v13330_v24 = vld [vmem:[#allocation29_spill] sm:$0xff]  ;;  %v13334_v14 = vld [vmem:[#allocation31_spill] sm:$0xff] }
 0x768   :  { %8908 = vmatpush3.bf16.msra.mxu0 %v11982_v18  ;;  %9127 = vmatprep.subr.bf16.mxu1 %v13271_v12  ;;  %v13341_v22 = vld [vmem:[#allocation41_spill] sm:$0xff] }
 0x769   :  { %8910 = vmatprep.subr.bf16.mxu0 %v11986_v30  ;;  %v9134_v33 = vpack.c.bf16 %v5108_v63, %v5101_v2  ;;  %v13335_v63 = vld [vmem:[#allocation70_spill] sm:$0xff]  ;;  %v13339_v2 = vld [vmem:[#allocation40_spill] sm:$0xff]  ;;  %v13343_v4 = vld [vmem:[#allocation53_spill] sm:$0xff] }
 0x76a   :  { %v13340_v47 = vand.u32 4294901760, %v13339_v2  ;;  %v13357_v2 = vld [vmem:[#allocation33_spill] sm:$0xff] }
 0x76b   :  { %9129 = vmatpush1.bf16.msra.mxu1 %v9128_v1  ;;  %v13331_v1 = vld [vmem:[#allocation64_spill] sm:$0xff] }
 0x76c   :  { %8912 = vmatpush3.bf16.msra.mxu0 %v11986_v30  ;;  %9130 = vmatprep.subr.bf16.mxu1 %v13271_v12 }
 0x76d   :  { %8914 = vmatprep.subr.bf16.mxu0 %v12006_v51 }
 0x76f   :  { %9132 = vmatpush1.bf16.msra.mxu1 %v9131_v58  ;;  %v13338_v58 = vand.u32 4294901760, %v13337_v25 }
 0x770   :  { %8916 = vmatpush3.bf16.msra.mxu0 %v12006_v51  ;;  %9133 = vmatprep.subr.bf16.mxu1 %v13271_v12 }
 0x771   :  { %8918 = vmatprep.subr.bf16.mxu0 %v12042_v45  ;;  %v12471_v15 = vpack.c.bf16 %v13340_v47, %v13338_v58  ;;  %v13356_v58 = vand.u32 4294901760, %v13323_v61 }
 0x773   :  { %9135 = vmatpush1.bf16.msra.mxu1 %v9134_v33  ;;  %v13342_v33 = vand.u32 4294901760, %v13341_v22  ;;  %v13360_v22 = vld [vmem:[#allocation47_spill] sm:$0xff] }
 0x774   :  { %8920 = vmatpush3.bf16.msra.mxu0 %v12042_v45  ;;  %9136 = vmatprep.subr.bf16.mxu1 %v13271_v12 }
 0x775   :  { %8922 = vmatprep.subr.bf16.mxu0 %v12046_v19 }
 0x777   :  { %9138 = vmatpush1.bf16.msra.mxu1 %v9137_v55  ;;  %v13344_v55 = vand.u32 4294901760, %v13343_v4 }
 0x778   :  { %8924 = vmatpush3.bf16.msra.mxu0 %v12046_v19  ;;  %9139 = vmatprep.subr.bf16.mxu1 %v13271_v12 }
 0x779   :  { %8926 = vmatprep.subr.bf16.mxu0 %v12066_v43 }
 0x77a   :  { %5155 = vmatmul.mubr.f32.vlgmr.msra.gmra.mrb[38].mxu1 %v12189_v38 }
 0x77b   :  { %9141 = vmatpush1.bf16.msra.mxu1 %v9140_v50  ;;  %5160 = vmatprep.mubr.f32.mxu1 %v12195_v40  ;;  %v12481_v50 = vpack.c.bf16 %v13344_v55, %v13342_v33  ;;  %v13361_v33 = vand.u32 4294901760, %v13360_v22  ;;  %v13362_v55 = vld [vmem:[#allocation61_spill] sm:$0xff] }
 0x77c   :  { %8928 = vmatpush3.bf16.msra.mxu0 %v12066_v43  ;;  %9142 = vmatprep.subr.bf16.mxu1 %v13271_v12 }
 0x77d   :  { %8930 = vmatprep.subr.bf16.mxu0 %v12074_v8 }
 0x77e   :  { %5162 = vmatmul.mubr.f32.gmra.mrb[40].mxu1 %v12221_v53 }
 0x77f   :  { %9144 = vmatpush1.bf16.msra.mxu1 %v9143_v26  ;;  %5269 = vmatprep.mubr.f32.mxu1 %v11844_v16  ;;  %v13329_v16 = vld [vmem:[#allocation34_spill] sm:$0xff]  ;;  %v13345_v26 = vand.u32 4294901760, %v13317_v60 }
 0x780   :  { %8932 = vmatpush3.bf16.msra.mxu0 %v12074_v8  ;;  %9145 = vmatprep.subr.bf16.mxu1 %v13271_v12 }
 0x781   :  { %8934 = vmatprep.subr.bf16.mxu0 %v12078_v39 }
 0x783   :  { %7959 = vmatmul.mubr.f32.vlgmr.msra.gmra.mrb[24].mxu0 %v12313_v29  ;;  %9147 = vmatpush1.bf16.msra.mxu1 %v9146_v62  ;;  %v13346_v62 = vld [vmem:[#allocation55_spill] sm:$0xff] }
 0x784   :  { %8936 = vmatpush3.bf16.msra.mxu0 %v12078_v39  ;;  %7993 = vmatprep.mubr.f32.mxu0 %v12292_v35  ;;  %v13327_v35 = vld [vmem:[#allocation28_spill] sm:$0xff] }
 0x785   :  { %8938 = vmatprep.subr.bf16.mxu0 %v12082_v10  ;;  %9148 = vmatprep.subr.bf16.mxu1 %v13271_v12 }
 0x787   :  { %9150 = vmatpush1.bf16.msra.mxu1 %v9149_v37  ;;  %v13347_v37 = vand.u32 4294901760, %v13346_v62  ;;  %v13365_v62 = vld [vmem:[#allocation49_spill] sm:$0xff] }
 0x788   :  { %8940 = vmatpush3.bf16.msra.mxu0 %v12082_v10  ;;  %9151 = vmatprep.subr.bf16.mxu1 %v13271_v12 }
 0x789   :  { %8942 = vmatprep.subr.bf16.mxu0 %v12086_v20 }
 0x78b   :  { %9153 = vmatpush1.bf16.msra.mxu1 %v13315_v9  ;;  %v13348_v9 = vld [vmem:[#allocation30_spill] sm:$0xff] }
 0x78c   :  { %8944 = vmatpush3.bf16.msra.mxu0 %v12086_v20  ;;  %9154 = vmatprep.subr.bf16.mxu1 %v13271_v12 }
 0x78d   :  { %8946 = vmatprep.subr.bf16.mxu0 %v12090_v21 }
 0x78f   :  { %9156 = vmatpush1.bf16.msra.mxu1 %v9155_v5  ;;  %v13349_v5 = vand.u32 4294901760, %v13348_v9 }
 0x790   :  { %8948 = vmatpush3.bf16.msra.mxu0 %v12090_v21  ;;  %9157 = vmatprep.subr.bf16.mxu1 %v13271_v12 }
 0x791   :  { %8950 = vmatprep.subr.bf16.mxu0 %v12094_v6 }
 0x793   :  { %9159 = vmatpush1.bf16.msra.mxu1 %v9158_v52  ;;  %v12495_v52 = vpack.c.bf16 %v13349_v5, %v13347_v37  ;;  %v13366_v37 = vand.u32 4294901760, %v13365_v62  ;;  %v13367_v5 = vld [vmem:[#allocation62_spill] sm:$0xff] }
 0x794   :  { %8952 = vmatpush3.bf16.msra.mxu0 %v12094_v6  ;;  %9160 = vmatprep.subr.bf16.mxu1 %v13271_v12 }
 0x795   :  { %8954 = vmatprep.subr.bf16.mxu0 %v12098_v7 }
 0x797   :  { %9162 = vmatpush1.bf16.msra.mxu1 %v9161_v0  ;;  %v13350_v0 = vld [vmem:[#allocation32_spill] sm:$0xff] }
 0x798   :  { %8956 = vmatpush3.bf16.msra.mxu0 %v12098_v7  ;;  %9163 = vmatprep.subr.bf16.mxu1 %v13271_v12 }
 0x799   :  { %8958 = vmatprep.subr.bf16.mxu0 %v12102_v27 }
 0x79b   :  { %9165 = vmatpush1.bf16.msra.mxu1 %v9164_v28 }
 0x79c   :  { %8960 = vmatpush3.bf16.msra.mxu0 %v12102_v27  ;;  %9166 = vmatprep.subr.bf16.mxu1 %v13271_v12 }
 0x79d   :  { %8962 = vmatprep.subr.bf16.mxu0 %v13316_v44 }
 0x79e   :  { %5272 = vmatmul.mubr.f32.vlgmr.msra.gmra.mrb[38].mxu1 %v13317_v60  ;;  %v13354_v60 = vld [vmem:[#allocation45_spill] sm:$0xff] }
 0x79f   :  { %9168 = vmatpush1.bf16.msra.mxu1 %v13318_v41  ;;  %5278 = vmatprep.mubr.f32.mxu1 %v13320_v34 }
 0x7a0   :  { %8964 = vmatpush3.bf16.msra.mxu0 %v13316_v44  ;;  %9169 = vmatprep.subr.bf16.mxu1 %v13271_v12 }
 0x7a1   :  { %8966 = vmatprep.subr.bf16.mxu0 %v13319_v42 }
 0x7a2   :  { %5281 = vmatmul.mubr.f32.gmra.mrb[40].mxu1 %v13323_v61  ;;  %v13363_v61 = vld [vmem:[#allocation48_spill] sm:$0xff] }
 0x7a3   :  { %7994 = vmatmul.mubr.f32.vlgmr.msra.gmra.mrb[24].mxu0 %v12320_v13  ;;  %9171 = vmatpush1.bf16.msra.mxu1 %v13321_v48  ;;  %v13351_v13 = vand.u32 4294901760, %v13320_v34  ;;  %v13358_v34 = vld [vmem:[#allocation46_spill] sm:$0xff] }
 0x7a4   :  { %8968 = vmatpush3.bf16.msra.mxu0 %v13319_v42  ;;  %8028 = vmatprep.mubr.f32.mxu0 %v3621_v23  ;;  %v13328_v23 = vld [vmem:[#allocation39_spill] sm:$0xff]  ;;  %v13359_v47 = vand.u32 4294901760, %v13358_v34  ;;  %v13375_v34 = vld [vmem:[#allocation54_spill] sm:$0xff] }
 0x7a5   :  { %8970 = vmatprep.subr.bf16.mxu0 %v13322_v56  ;;  %9172 = vmatprep.subr.bf16.mxu1 %v13271_v12 }
 0x7a6   :  { %5371 = vmatprep.mubr.f32.mxu1 %v13324_v59  ;;  %v13355_v59 = vand.u32 4294901760, %v13354_v60  ;;  %v12520_v4 = vpack.c.bf16 %v13361_v33, %v13359_v47  ;;  %v13376_v47 = vand.u32 4294901760, %v13375_v34  ;;  %v13377_v33 = vld [vmem:[#allocation63_spill] sm:$0xff] }
 0x7a7   :  { %9174 = vmatpush1.bf16.msra.mxu1 %v13325_v46 }
 0x7a8   :  { %8972 = vmatpush3.bf16.msra.mxu0 %v13322_v56  ;;  %9175 = vmatprep.subr.bf16.mxu1 %v13271_v12 }
 0x7a9   :  { %8974 = vmatprep.subr.bf16.mxu0 %v13326_v17 }
 0x7ab   :  { %9177 = vmatpush1.bf16.msra.mxu1 %v13327_v35 }
 0x7ac   :  { %8976 = vmatpush3.bf16.msra.mxu0 %v13326_v17  ;;  %9178 = vmatprep.subr.bf16.mxu1 %v13271_v12 }
 0x7ad   :  { %8978 = vmatprep.subr.bf16.mxu0 %v13328_v23 }
 0x7af   :  { %9180 = vmatpush1.bf16.msra.mxu1 %v13329_v16 }
 0x7b0   :  { %8980 = vmatpush3.bf16.msra.mxu0 %v13328_v23  ;;  %9181 = vmatprep.subr.bf16.mxu1 %v13271_v12 }
 0x7b1   :  { %8982 = vmatprep.subr.bf16.mxu0 %v13330_v24 }
 0x7b3   :  { %9183 = vmatpush1.bf16.msra.mxu1 %v13331_v1 }
 0x7b4   :  { %8984 = vmatpush3.bf16.msra.mxu0 %v13330_v24  ;;  %9184 = vmatprep.subr.bf16.mxu1 %v13271_v12 }
 0x7b5   :  { %8986 = vmatprep.subr.bf16.mxu0 %v13332_v36 }
 0x7b7   :  { %9186 = vmatpush1.bf16.msra.mxu1 %v13333_v31 }
 0x7b8   :  { %8988 = vmatpush3.bf16.msra.mxu0 %v13332_v36  ;;  %9187 = vmatprep.subr.bf16.mxu1 %v13271_v12 }
 0x7b9   :  { %8990 = vmatprep.subr.bf16.mxu0 %v13334_v14 }
 0x7bb   :  { %9189 = vmatpush1.bf16.msra.mxu1 %v13335_v63 }
 0x7bc   :  { %8992 = vmatpush3.bf16.msra.mxu0 %v13334_v14  ;;  %9190 = vmatprep.subr.bf16.mxu1 %v13271_v12 }
 0x7bd   :  { %8994 = vmatprep.subr.bf16.mxu0 %v13336_v11 }
 0x7bf   :  { %9192 = vmatpush1.bf16.msra.mxu1 %v12283_v32 }
 0x7c0   :  { %8996 = vmatpush3.bf16.msra.mxu0 %v13336_v11  ;;  %9193 = vmatprep.subr.bf16.mxu1 %v13271_v12 }
 0x7c1   :  { %8998 = vmatprep.subr.bf16.mxu0 %v12471_v15 }
 0x7c2   :  { %5375 = vmatmul.mubr.f32.vlgmr.msra.gmra.mrb[38].mxu1 %v13345_v26  ;;  %v13364_v26 = vand.u32 4294901760, %v13363_v61  ;;  %v13379_v61 = vld [vmem:[#allocation71_spill] sm:$0xff] }
 0x7c3   :  { %8029 = vmatmul.mubr.f32.vlgmr.msra.gmra.mrb[24].mxu0 %v3631_v54  ;;  %9195 = vmatpush1.bf16.msra.mxu1 %v13350_v0  ;;  %v13352_v54 = vld [vmem:[#allocation44_spill] sm:$0xff]  ;;  %v13368_v0 = vld [vmem:[#allocation50_spill] sm:$0xff] }
 0x7c4   :  { %9000 = vmatpush3.bf16.msra.mxu0 %v12471_v15  ;;  %8063 = vmatprep.mubr.f32.mxu0 %v12277_v49  ;;  %v13353_v28 = vand.u32 4294901760, %v13352_v54  ;;  %v12530_v9 = vpack.c.bf16 %v13366_v37, %v13364_v26  ;;  %v13370_v54 = vld [vmem:[#allocation51_spill] sm:$0xff]  ;;  %v13380_v26 = vld [vmem:[#allocation72_spill] sm:$0xff] }
 0x7c5   :  { %9002 = vmatprep.subr.bf16.mxu0 %v12481_v50  ;;  %5382 = vmatprep.mubr.f32.mxu1 %v13351_v13  ;;  %v13369_v13 = vand.u32 4294901760, %v13368_v0 }
 0x7c6   :  { %9196 = vmatprep.subr.bf16.mxu1 %v13271_v12  ;;  %v12507_v25 = vpack.c.bf16 %v13355_v59, %v13353_v28  ;;  %5386 = vmatmul.mubr.f32.gmra.mrb[40].mxu1 %v13356_v58  ;;  %v13371_v28 = vand.u32 4294901760, %v13370_v54  ;;  %v13372_v59 = vld [vmem:[#allocation35_spill] sm:$0xff]  ;;  %v13373_v58 = vld [vmem:[#allocation52_spill] sm:$0xff] }
 0x7c7   :  { %9198 = vmatpush1.bf16.msra.mxu1 %v13357_v2  ;;  %5510 = vmatprep.mubr.f32.mxu1 %v11830_v57  ;;  %v13374_v2 = vand.u32 4294901760, %v13373_v58 }
 0x7c8   :  { %9004 = vmatpush3.bf16.msra.mxu0 %v12481_v50  ;;  %9199 = vmatprep.subr.bf16.mxu1 %v13271_v12  ;;  %v12540_v60 = vpack.c.bf16 %v13371_v28, %v13369_v13 }
 0x7c9   :  { %9006 = vmatprep.subr.bf16.mxu0 %v12495_v52  ;;  %v12550_v22 = vpack.c.bf16 %v13376_v47, %v13374_v2 }
 0x7cb   :  { %9201 = vmatpush1.bf16.msra.mxu1 %v13362_v55  ;;  %v13378_v55 = vld [vmem:[#allocation68_spill] sm:$0xff] }
 0x7cc   :  { %9008 = vmatpush3.bf16.msra.mxu0 %v12495_v52  ;;  %9202 = vmatprep.subr.bf16.mxu1 %v13271_v12 }
 0x7cd   :  { %9010 = vmatprep.subr.bf16.mxu0 %v12507_v25 }
 0x7cf   :  { %9204 = vmatpush1.bf16.msra.mxu1 %v13367_v5 }
 0x7d0   :  { %9012 = vmatpush3.bf16.msra.mxu0 %v12507_v25  ;;  %9205 = vmatprep.subr.bf16.mxu1 %v13271_v12 }
 0x7d1   :  { %9014 = vmatprep.subr.bf16.mxu0 %v12520_v4 }
 0x7d3   :  { %9207 = vmatpush1.bf16.msra.mxu1 %v13372_v59 }
 0x7d4   :  { %9016 = vmatpush3.bf16.msra.mxu0 %v12520_v4  ;;  %9208 = vmatprep.subr.bf16.mxu1 %v13271_v12 }
 0x7d5   :  { %9018 = vmatprep.subr.bf16.mxu0 %v12530_v9 }
 0x7d7   :  { %9210 = vmatpush1.bf16.msra.mxu1 %v13377_v33 }
 0x7d8   :  { %9020 = vmatpush3.bf16.msra.mxu0 %v12530_v9  ;;  %9211 = vmatprep.subr.bf16.mxu1 %v13271_v12 }
 0x7d9   :  { %9022 = vmatprep.subr.bf16.mxu0 %v12540_v60 }
 0x7db   :  { %9213 = vmatpush1.bf16.msra.mxu1 %v13378_v55 }
 0x7dc   :  { %9024 = vmatpush3.bf16.msra.mxu0 %v12540_v60  ;;  %9214 = vmatprep.subr.bf16.mxu1 %v13271_v12 }
 0x7dd   :  { %9026 = vmatprep.subr.bf16.mxu0 %v12550_v22 }
 0x7df   :  { %9216 = vmatpush1.bf16.msra.mxu1 %v13379_v61 }
 0x7e0   :  { %9028 = vmatpush3.bf16.msra.mxu0 %v12550_v22  ;;  %9217 = vmatprep.subr.bf16.mxu1 %v13271_v12 }
 0x7e1   :  { %9030 = vmatprep.subr.bf16.mxu0 %v13319_v42 }
 0x7e3   :  { %8064 = vmatmul.mubr.f32.vlgmr.msra.gmra.mrb[24].mxu0 %v12313_v29  ;;  %9219 = vmatpush1.bf16.msra.mxu1 %v13380_v26 }
 0x7e4   :  { %9032 = vmatpush3.bf16.msra.mxu0 %v13319_v42  ;;  %8098 = vmatprep.mubr.f32.mxu0 %v12277_v49 }
 0x7e5   :  { %9034 = vmatprep.subr.bf16.mxu0 %v13322_v56  ;;  %9220 = vmatprep.subr.bf16.mxu1 %v13271_v12 }
 0x7e6   :  { %5512 = vmatmul.mubr.f32.vlgmr.msra.gmra.mrb[38].mxu1 %v12189_v38 }
 0x7e7   :  { %9222 = vmatpush1.bf16.msra.mxu1 %v13318_v41  ;;  %5517 = vmatprep.mubr.f32.mxu1 %v12195_v40 }
 0x7e8   :  { %9036 = vmatpush3.bf16.msra.mxu0 %v13322_v56  ;;  %9223 = vmatprep.subr.bf16.mxu1 %v13271_v12 }
 0x7e9   :  { %9038 = vmatprep.subr.bf16.mxu0 %v13326_v17 }
 0x7ea   :  { %5519 = vmatmul.mubr.f32.gmra.mrb[40].mxu1 %v12221_v53 }
 0x7eb   :  { %9225 = vmatpush1.bf16.msra.mxu1 %v13321_v48  ;;  %5607 = vmatprep.mubr.f32.mxu1 %v11830_v57 }
 0x7ec   :  { %9040 = vmatpush3.bf16.msra.mxu0 %v13326_v17  ;;  %9226 = vmatprep.subr.bf16.mxu1 %v13271_v12 }
 0x7ed   :  { %9042 = vmatprep.subr.bf16.mxu0 %v13328_v23 }
 0x7ef   :  { %9228 = vmatpush1.bf16.msra.mxu1 %v13325_v46 }
 0x7f0   :  { %9044 = vmatpush3.bf16.msra.mxu0 %v13328_v23  ;;  %9229 = vmatprep.subr.bf16.mxu1 %v13271_v12 }
 0x7f1   :  { %9046 = vmatprep.subr.bf16.mxu0 %v13330_v24 }
 0x7f3   :  { %9231 = vmatpush1.bf16.msra.mxu1 %v13327_v35 }
 0x7f4   :  { %9048 = vmatpush3.bf16.msra.mxu0 %v13330_v24  ;;  %9232 = vmatprep.subr.bf16.mxu1 %v13271_v12 }
 0x7f5   :  { %9050 = vmatprep.subr.bf16.mxu0 %v13332_v36 }
 0x7f7   :  { %9234 = vmatpush1.bf16.msra.mxu1 %v13329_v16 }
 0x7f8   :  { %9052 = vmatpush3.bf16.msra.mxu0 %v13332_v36  ;;  %9235 = vmatprep.subr.bf16.mxu1 %v13271_v12 }
 0x7f9   :  { %9054 = vmatprep.subr.bf16.mxu0 %v13334_v14 }
 0x7fb   :  { %9237 = vmatpush1.bf16.msra.mxu1 %v13331_v1 }
 0x7fc   :  { %9056 = vmatpush3.bf16.msra.mxu0 %v13334_v14  ;;  %9238 = vmatprep.subr.bf16.mxu1 %v13271_v12 }
 0x7fd   :  { %9058 = vmatprep.subr.bf16.mxu0 %v13336_v11 }
 0x7ff   :  { %9240 = vmatpush1.bf16.msra.mxu1 %v13333_v31 }
 0x800   :  { %9060 = vmatpush3.bf16.msra.mxu0 %v13336_v11  ;;  %9241 = vmatprep.subr.bf16.mxu1 %v13271_v12 }
 0x801   :  { %9248 = vmatprep.subr.bf16.mxu0 %v13319_v42 }
 0x803   :  { %8099 = vmatmul.mubr.f32.vlgmr.msra.gmra.mrb[24].mxu0 %v12313_v29  ;;  %9243 = vmatpush1.bf16.msra.mxu1 %v13335_v63 }
 0x804   :  { %9250 = vmatpush3.bf16.msra.mxu0 %v13319_v42  ;;  %9244 = vmatprep.subr.bf16.mxu1 %v13271_v12 }
 0x805   :  { %9252 = vmatprep.subr.bf16.mxu0 %v13322_v56 }
 0x807   :  { %9246 = vmatpush1.bf16.msra.mxu1 %v12283_v32 }
 0x808   :  { %9254 = vmatpush3.bf16.msra.mxu0 %v13322_v56 }
 0x809   :  { %9256 = vmatprep.subr.bf16.mxu0 %v13326_v17 }
 0x80a   :  { %5609 = vmatmul.mubr.f32.vlgmr.msra.gmra.mrb[38].mxu1 %v12189_v38 }
 0x80b   :  { %5614 = vmatprep.mubr.f32.mxu1 %v12195_v40 }
 0x80c   :  { %9258 = vmatpush3.bf16.msra.mxu0 %v13326_v17 }
 0x80d   :  { %9260 = vmatprep.subr.bf16.mxu0 %v13328_v23 }
 0x80e   :  { %5616 = vmatmul.mubr.f32.gmra.mrb[40].mxu1 %v12221_v53 }
 0x810   :  { %9262 = vmatpush3.bf16.msra.mxu0 %v13328_v23 }
 0x811   :  { %9264 = vmatprep.subr.bf16.mxu0 %v13330_v24 }
 0x814   :  { %9266 = vmatpush3.bf16.msra.mxu0 %v13330_v24 }
 0x815   :  { %9268 = vmatprep.subr.bf16.mxu0 %v13332_v36 }
 0x818   :  { %9270 = vmatpush3.bf16.msra.mxu0 %v13332_v36 }
 0x819   :  { %9272 = vmatprep.subr.bf16.mxu0 %v13334_v14 }
 0x81c   :  { %9274 = vmatpush3.bf16.msra.mxu0 %v13334_v14 }
 0x81d   :  { %9276 = vmatprep.subr.bf16.mxu0 %v13336_v11 }
 0x820   :  { %9278 = vmatpush3.bf16.msra.mxu0 %v13336_v11 }
 0x821   :  { %9280 = vmatprep.subr.bf16.mxu0 %v11943_v3 }
 0x8d6   :  { %v8100_v57 = vpop.f32.mrb[24].mxu0 }
 0x8d7   :  { %v6406_v12 = vand.u32 4294901760, %v8100_v57  ;;  %v4212_v40 = vpop.f32.mrb[25].mxu0 }
 0x8d8   :  { %v6403_v38 = vand.u32 4294901760, %v4212_v40 }
 0x8d9   :  { %v6520_v53 = vsub.f32 %v8100_v57, %v6406_v12 }
 0x8da   :  { %v12623_v32 = vpack.c.bf16 %v6406_v12, %v6403_v38  ;;  %v6513_v49 = vsub.f32 %v4212_v40, %v6403_v38 }
 0x8db   :  { %v6521_v29 = vand.u32 4294901760, %v6520_v53 }
 0x8dc   :  { %v6514_v41 = vand.u32 4294901760, %v6513_v49  ;;  %9440 = vmatprep.subr.bf16.mxu1 %v12623_v32  ;;  %v12626_v48 = vpack.c.bf16 %v6520_v53, %v6513_v49 }
 0x8dd   :  { %v6522_v46 = vsub.f32 %v6520_v53, %v6521_v29  ;;  %9442 = vmatpush3.bf16.msra.mxu1 %v12623_v32  ;;  %v5610_v31 = vpop.f32.mrb[38].mxu1 }
 0x8de   :  { %v6515_v35 = vsub.f32 %v6513_v49, %v6514_v41  ;;  %v12629_v16 = vpack.c.bf16 %v6521_v29, %v6514_v41  ;;  %v12631_v62 = vand.u32 4294901760, %v5610_v31  ;;  %v5612_v37 = vpop.f32.mrb[39].mxu1 }
 0x8df   :  { %v6523_v1 = vand.u32 4294901760, %v6522_v46 }
 0x8e0   :  { %v6516_v63 = vand.u32 4294901760, %v6515_v35  ;;  %v5711_v0 = vsub.f32 %v5610_v31, %v12631_v62  ;;  %v6368_v31 = vld [vmem:[#allocation10 + $0x10] sm:$0xff] }
 0x8e1   :  { %v5617_v13 = vpop.f32.mrb[40].mxu1  ;;  %v6397_v37 = vsel %vm6313_vm1, %v6368_v31, 0 }
 0x8e2   :  { %v12633_v5 = vpack.c.bf16 %v6523_v1, %v6516_v63  ;;  %v5712_v54 = vand.u32 4294901760, %v5711_v0  ;;  %v12636_v28 = vand.u32 4294901760, %v5617_v13  ;;  %v5619_v59 = vpop.f32.mrb[41].mxu1  ;;  %v6367_v1 = vld [vmem:[#allocation10 + $0x8] sm:$0xff] }
 0x8e4   :  { %v12639_v58 = vsub.f32 %v5617_v13, %v12636_v28  ;;  %v5713_v2 = vsub.f32 %v5711_v0, %v5712_v54 }
 0x8e6   :  { %v5722_v34 = vand.u32 4294901760, %v12639_v58  ;;  %v5714_v47 = vand.u32 4294901760, %v5713_v2 }
 0x8e8   :  { %v5723_v33 = vsub.f32 %v12639_v58, %v5722_v34  ;;  %8175 = vmatprep.mubr.f32.mxu0 %v5714_v47 }
 0x8ea   :  { %v5724_v55 = vand.u32 4294901760, %v5723_v33 }
 0x8ec   :  { %8176 = vmatmul.mubr.f32.vlgmr.msra.gmra.mrb[26].mxu0 %v5724_v55 }
 0x8ed   :  { %9282 = vmatpush3.bf16.msra.mxu0 %v11943_v3  ;;  %8210 = vmatprep.mubr.f32.mxu0 %v12631_v62  ;;  %v12668_v3 = vld [vmem:[#allocation17] sm:$0xff] }
 0x8ee   :  { %9284 = vmatprep.subr.bf16.mxu0 %v11982_v18 }
 0x8f1   :  { %9286 = vmatpush3.bf16.msra.mxu0 %v11982_v18  ;;  %v10006_v18 = vmov 6  }
 0x8f2   :  { %9288 = vmatprep.subr.bf16.mxu0 %v11986_v30  ;;  %9658 = vset.pattern.permute.xlu1 %v10006_v18 }
 0x8f3   :  { %9657 = vset.pattern.permute.xlu0 %v10006_v18 }
 0x8f4   :  { %5622 = vperm.xlu0 %9657, %v12668_v3  }
 0x8f5   :  { %9290 = vmatpush3.bf16.msra.mxu0 %v11986_v30  ;;  %v12665_v30 = vld [vmem:[#allocation17 + $0x8] sm:$0xff] }
 0x8f6   :  { %9292 = vmatprep.subr.bf16.mxu0 %v12006_v51  ;;  %5626 = vperm.xlu1 %9658, %v12665_v30  }
 0x8f9   :  { %9294 = vmatpush3.bf16.msra.mxu0 %v12006_v51 }
 0x8fa   :  { %9296 = vmatprep.subr.bf16.mxu0 %v12042_v45 }
 0x8fd   :  { %9298 = vmatpush3.bf16.msra.mxu0 %v12042_v45 }
 0x8fe   :  { %9300 = vmatprep.subr.bf16.mxu0 %v12046_v19 }
 0x901   :  { %9302 = vmatpush3.bf16.msra.mxu0 %v12046_v19  ;;  %v10007_v19 = vmov 7  }
 0x902   :  { %9304 = vmatprep.subr.bf16.mxu0 %v12066_v43  ;;  %9660 = vset.pattern.permute.xlu1 %v10007_v19 }
 0x903   :  { %9659 = vset.pattern.permute.xlu0 %v10007_v19 }
 0x905   :  { %9306 = vmatpush3.bf16.msra.mxu0 %v12066_v43 }
 0x906   :  { %9308 = vmatprep.subr.bf16.mxu0 %v12074_v8 }
 0x909   :  { %9310 = vmatpush3.bf16.msra.mxu0 %v12074_v8 }
 0x90a   :  { %9312 = vmatprep.subr.bf16.mxu0 %v12078_v39 }
 0x90c   :  { %8211 = vmatmul.mubr.f32.vlgmr.msra.gmra.mrb[26].mxu0 %v12636_v28 }
 0x90d   :  { %9314 = vmatpush3.bf16.msra.mxu0 %v12078_v39  ;;  %8245 = vmatprep.mubr.f32.mxu0 %v5711_v0  ;;  %v6369_v0 = vld [vmem:[#allocation10 + $0x18] sm:$0xff] }
 0x90e   :  { %9316 = vmatprep.subr.bf16.mxu0 %v12082_v10  ;;  %v6400_v2 = vsel %vm6313_vm1, %v6369_v0, 0 }
 0x911   :  { %9318 = vmatpush3.bf16.msra.mxu0 %v12082_v10 }
 0x912   :  { %9320 = vmatprep.subr.bf16.mxu0 %v12086_v20 }
 0x915   :  { %9322 = vmatpush3.bf16.msra.mxu0 %v12086_v20 }
 0x916   :  { %9324 = vmatprep.subr.bf16.mxu0 %v12090_v21 }
 0x919   :  { %9326 = vmatpush3.bf16.msra.mxu0 %v12090_v21 }
 0x91a   :  { %9328 = vmatprep.subr.bf16.mxu0 %v12094_v6 }
 0x91d   :  { %9330 = vmatpush3.bf16.msra.mxu0 %v12094_v6 }
 0x91e   :  { %9332 = vmatprep.subr.bf16.mxu0 %v12098_v7 }
 0x921   :  { %9334 = vmatpush3.bf16.msra.mxu0 %v12098_v7 }
 0x922   :  { %9336 = vmatprep.subr.bf16.mxu0 %v12102_v27 }
 0x925   :  { %9338 = vmatpush3.bf16.msra.mxu0 %v12102_v27 }
 0x926   :  { %9340 = vmatprep.subr.bf16.mxu0 %v13316_v44 }
 0x929   :  { %9342 = vmatpush3.bf16.msra.mxu0 %v13316_v44 }
 0x92a   :  { %9344 = vmatprep.subr.bf16.mxu0 %v13319_v42 }
 0x92c   :  { %8246 = vmatmul.mubr.f32.vlgmr.msra.gmra.mrb[26].mxu0 %v12639_v58  ;;  %v12787_v58 = vand.u32 4294901760, %v6397_v37 }
 0x92d   :  { %9346 = vmatpush3.bf16.msra.mxu0 %v13319_v42  ;;  %8280 = vmatprep.mubr.f32.mxu0 %v5712_v54 }
 0x92e   :  { %9348 = vmatprep.subr.bf16.mxu0 %v13322_v56 }
 0x931   :  { %9350 = vmatpush3.bf16.msra.mxu0 %v13322_v56 }
 0x932   :  { %9352 = vmatprep.subr.bf16.mxu0 %v13326_v17 }
 0x935   :  { %9354 = vmatpush3.bf16.msra.mxu0 %v13326_v17 }
 0x936   :  { %9356 = vmatprep.subr.bf16.mxu0 %v13328_v23 }
 0x939   :  { %9358 = vmatpush3.bf16.msra.mxu0 %v13328_v23 }
 0x93a   :  { %9360 = vmatprep.subr.bf16.mxu0 %v13330_v24 }
 0x93d   :  { %9362 = vmatpush3.bf16.msra.mxu0 %v13330_v24 }
 0x93e   :  { %9364 = vmatprep.subr.bf16.mxu0 %v13332_v36 }
 0x941   :  { %9366 = vmatpush3.bf16.msra.mxu0 %v13332_v36 }
 0x942   :  { %9368 = vmatprep.subr.bf16.mxu0 %v13334_v14 }
 0x945   :  { %9370 = vmatpush3.bf16.msra.mxu0 %v13334_v14 }
 0x946   :  { %9372 = vmatprep.subr.bf16.mxu0 %v13336_v11 }
 0x949   :  { %9374 = vmatpush3.bf16.msra.mxu0 %v13336_v11 }
 0x94a   :  { %9376 = vmatprep.subr.bf16.mxu0 %v12471_v15 }
 0x94c   :  { %8281 = vmatmul.mubr.f32.vlgmr.msra.gmra.mrb[26].mxu0 %v5722_v34 }
 0x94d   :  { %9378 = vmatpush3.bf16.msra.mxu0 %v12471_v15  ;;  %8315 = vmatprep.mubr.f32.mxu0 %v12631_v62 }
 0x94e   :  { %9380 = vmatprep.subr.bf16.mxu0 %v12481_v50 }
 0x951   :  { %9382 = vmatpush3.bf16.msra.mxu0 %v12481_v50 }
 0x952   :  { %9384 = vmatprep.subr.bf16.mxu0 %v12495_v52 }
 0x955   :  { %9386 = vmatpush3.bf16.msra.mxu0 %v12495_v52  ;;  %v12769_v52 = vld [vmem:[#allocation19] sm:$0xff] }
 0x956   :  { %9388 = vmatprep.subr.bf16.mxu0 %v12507_v25 }
 0x959   :  { %9390 = vmatpush3.bf16.msra.mxu0 %v12507_v25  ;;  %v12772_v25 = vld [vmem:[#allocation19 + $0x8] sm:$0xff] }
 0x95a   :  { %9392 = vmatprep.subr.bf16.mxu0 %v12520_v4 }
 0x95d   :  { %9394 = vmatpush3.bf16.msra.mxu0 %v12520_v4  ;;  %v12775_v4 = vld [vmem:[#allocation19 + $0x10] sm:$0xff] }
 0x95e   :  { %9396 = vmatprep.subr.bf16.mxu0 %v12530_v9 }
 0x961   :  { %9398 = vmatpush3.bf16.msra.mxu0 %v12530_v9  ;;  %v12778_v9 = vld [vmem:[#allocation19 + $0x18] sm:$0xff] }
 0x962   :  { %9400 = vmatprep.subr.bf16.mxu0 %v12540_v60 }
 0x965   :  { %9402 = vmatpush3.bf16.msra.mxu0 %v12540_v60 }
 0x966   :  { %9404 = vmatprep.subr.bf16.mxu0 %v12550_v22 }
 0x969   :  { %9406 = vmatpush3.bf16.msra.mxu0 %v12550_v22 }
 0x96a   :  { %9408 = vmatprep.subr.bf16.mxu0 %v13319_v42 }
 0x96c   :  { %8316 = vmatmul.mubr.f32.vlgmr.msra.gmra.mrb[26].mxu0 %v12636_v28 }
 0x96d   :  { %9410 = vmatpush3.bf16.msra.mxu0 %v13319_v42  ;;  %8350 = vmatprep.mubr.f32.mxu0 %v12631_v62  ;;  %v10008_v42 = vmov 8   ;;  %v6394_v62 = vsel %vm6313_vm1, %v6367_v1, 0 }
 0x96e   :  { %9412 = vmatprep.subr.bf16.mxu0 %v13322_v56  ;;  %v12784_v54 = vand.u32 4294901760, %v6394_v62 }
 0x970   :  { %v6482_v18 = vsub.f32 %v6394_v62, %v12784_v54 }
 0x971   :  { %9414 = vmatpush3.bf16.msra.mxu0 %v13322_v56  ;;  %v13381_v56 = vmov 1  }
 0x972   :  { %9416 = vmatprep.subr.bf16.mxu0 %v13326_v17 }
 0x973   :  { %v5623_v45 = vpop.permute.xlu0 %5622 }
 0x975   :  { %9418 = vmatpush3.bf16.msra.mxu0 %v13326_v17  ;;  %v5627_v51 = vpop.permute.xlu1 %5626  ;;  %v13382_v17 = vmov 0  }
 0x976   :  { %9420 = vmatprep.subr.bf16.mxu0 %v13328_v23 }
 0x979   :  { %9422 = vmatpush3.bf16.msra.mxu0 %v13328_v23  ;;  %v6366_v23 = vld [vmem:[#allocation10] sm:$0xff] }
 0x97a   :  { %9424 = vmatprep.subr.bf16.mxu0 %v13330_v24 }
 0x97d   :  { %9426 = vmatpush3.bf16.msra.mxu0 %v13330_v24  ;;  %v6391_v24 = vsel %vm6313_vm1, %v6366_v23, 0 }
 0x97e   :  { %9428 = vmatprep.subr.bf16.mxu0 %v13332_v36 }
 0x981   :  { %9430 = vmatpush3.bf16.msra.mxu0 %v13332_v36  ;;  %v12760_v36 = vand.u32 4294901760, %v6391_v24 }
 0x982   :  { %9432 = vmatprep.subr.bf16.mxu0 %v13334_v14 }
 0x985   :  { %9434 = vmatpush3.bf16.msra.mxu0 %v13334_v14  ;;  %v12763_v14 = vsub.f32 %v6391_v24, %v12760_v36 }
 0x986   :  { %9436 = vmatprep.subr.bf16.mxu0 %v13336_v11 }
 0x989   :  { %9438 = vmatpush3.bf16.msra.mxu0 %v13336_v11  ;;  %v6473_v11 = vand.u32 4294901760, %v12763_v14 }
 0x98b   :  { %v6474_v15 = vsub.f32 %v12763_v14, %v6473_v11 }
 0x98c   :  { %8351 = vmatmul.mubr.f32.vlgmr.msra.gmra.mrb[26].mxu0 %v12636_v28 }
 0x98d   :  { %v6475_v50 = vand.u32 4294901760, %v6474_v15 }
 0x98f   :  { %8361 = vmatprep.mubr.f32.mxu1 %v6475_v50 }
 0xa5f   :  { %v8352_v43 = vpop.f32.mrb[26].mxu0 }
 0xa60   :  { %v12739_v8 = vadd.f32 %v8352_v43, %v5627_v51  ;;  %v6303_v39 = vpop.f32.mrb[27].mxu0  ;;  %v6492_v51 = vsub.f32 %v6397_v37, %v12787_v58 }
 0xa61   :  { %v12741_v10 = vadd.f32 %v6303_v39, %v5623_v45 }
 0xa62   :  { %v6317_v20 = vsel %vm6313_vm1, %v12739_v8, 0.0  ;;  %v6321_v7 = vmul.f32 %v12739_v8, %v12739_v8 }
 0xa63   :  { %6318 = vadd.xlane.f32.xlu0 %v6317_v20  ;;  %v6314_v21 = vsel %vm6313_vm1, %v12741_v10, 0.0  ;;  %v6320_v6 = vmul.f32 %v12741_v10, %v12741_v10  ;;  %v6483_v20 = vand.u32 4294901760, %v6482_v18 }
 0xa64   :  { %6315 = vadd.xlane.f32.xlu1 %v6314_v21  ;;  %v6325_v44 = vsel %vm6313_vm1, %v6321_v7, 0.0 }
 0xa65   :  { %v6322_v27 = vsel %vm6313_vm1, %v6320_v6, 0.0 }
 0xa67   :  { %6323 = vadd.xlane.f32.xlu0 %v6322_v27 }
 0xa68   :  { %6326 = vadd.xlane.f32.xlu1 %v6325_v44 }
 0xa79   :  { %6343 = vperm.xlu1 %9660, %v12665_v30  }
 0xa7d   :  { %6339 = vperm.xlu0 %9659, %v12668_v3   ;;  %9661 = vset.pattern.permute.xlu1 %v10008_v42  ;;  %v6484_v42 = vsub.f32 %v6482_v18, %v6483_v20 }
 0xa7e   :  { %6355 = vperm.xlu1 %9661, %v12668_v3  }
 0xa81   :  { %9663 = vset.pattern.permute.xlu0 %v13381_v56 }
 0xa82   :  { %6359 = vperm.xlu1 %9661, %v12665_v30   ;;  %v12792_v30 = vand.u32 4294901760, %v6400_v2 }
 0xa84   :  { %v6502_v21 = vsub.f32 %v6400_v2, %v12792_v30 }
 0xa86   :  { %9662 = vset.pattern.permute.xlu1 %v13382_v17 }
 0xa87   :  { %6372 = vperm.xlu1 %9662, %v12769_v52  }
 0xa8b   :  { %6377 = vperm.xlu1 %9662, %v12772_v25  }
 0xa8f   :  { %6382 = vperm.xlu1 %9662, %v12775_v4  }
 0xa93   :  { %6387 = vperm.xlu1 %9662, %v12778_v9  }
 0xa97   :  { %9664 = vset.pattern.permute.xlu1 %v13381_v56  ;;  %v6503_v56 = vand.u32 4294901760, %v6502_v21 }
 0xaf0   :  { %v6319_v60 = vpop.xlane.xlu0 %6318 }
 0xaf1   :  { %v6316_v22 = vpop.xlane.xlu1 %6315  ;;  %v6329_v61 = vmul.f32 0.03125, %v6319_v60 }
 0xaf2   :  { %v6328_v26 = vmul.f32 0.03125, %v6316_v22  ;;  %v6485_v22 = vand.u32 4294901760, %v6484_v42 }
 0xaf3   :  { %v6333_v53 = vmul.f32 %v6329_v61, %v6329_v61  ;;  %v6337_v34 = vsub.f32 %v12739_v8, %v6329_v61  ;;  %v6493_v8 = vand.u32 4294901760, %v6492_v51  ;;  %v6504_v61 = vsub.f32 %v6502_v21, %v6503_v56 }
 0xaf4   :  { %v6332_v57 = vmul.f32 %v6328_v26, %v6328_v26  ;;  %v6324_v12 = vpop.xlane.xlu0 %6323  ;;  %v6336_v28 = vsub.f32 %v12741_v10, %v6328_v26 }
 0xaf5   :  { %v6330_v40 = vmul.f32 0.03125, %v6324_v12  ;;  %v6327_v38 = vpop.xlane.xlu1 %6326  ;;  %v6494_v23 = vsub.f32 %v6492_v51, %v6493_v8 }
 0xaf6   :  { %v6331_v49 = vmul.f32 0.03125, %v6327_v38  ;;  %v6505_v38 = vand.u32 4294901760, %v6504_v61 }
 0xaf7   :  { %v6334_v29 = vsub.f32 %v6330_v40, %v6332_v57  ;;  %v6495_v26 = vand.u32 4294901760, %v6494_v23 }
 0xaf8   :  { %v6335_v41 = vsub.f32 %v6331_v49, %v6333_v53 }
 0xaf9   :  { %v6348_v46 = vadd.f32 1e-05, %v6334_v29  ;;  %v6344_v63 = vpop.permute.xlu1 %6343 }
 0xafa   :  { %v6349_v35 = vadd.f32 1e-05, %v6335_v41  ;;  %v6347_v55 = vmul.f32 %v6344_v63, %v6337_v34 }
 0xafb   :  { %9675 = vrsqrt.f32 %v6348_v46 }
 0xafc   :  { %9677 = vrsqrt.f32 %v6349_v35  ;;  %v6340_v13 = vpop.permute.xlu0 %6339 }
 0xafd   :  { %v6356_v59 = vpop.permute.xlu1 %6355  ;;  %v6346_v47 = vmul.f32 %v6340_v13, %v6336_v28 }
 0xb01   :  { %v6360_v39 = vpop.permute.xlu1 %6359 }
 0xb05   :  { %v9676_v33 = vpop.eup %9675 }
 0xb06   :  { %v9678_v3 = vpop.eup %9677  ;;  %v6352_v19 = vmul.f32 %v9676_v33, %v6346_v47 }
 0xb07   :  { %v6353_v45 = vmul.f32 %v9678_v3, %v6347_v55  ;;  %v13383_v55 = vmov 2  }
 0xb08   :  { %v6362_v43 = vadd.f32 %v6356_v59, %v6352_v19 }
 0xb09   :  { %v6363_v10 = vadd.f32 %v6360_v39, %v6353_v45 }
 0xb0a   :  { %v6364_v6 = vmax.f32 %v6362_v43, 0.0 }
 0xb0b   :  { %v6365_v7 = vmax.f32 %v6363_v10, 0.0 }
 0xb0c   :  { %v6409_v27 = vand.u32 4294901760, %v6364_v6 }
 0xb0d   :  { %v6412_v44 = vand.u32 4294901760, %v6365_v7 }
 0xb0e   :  { %v6527_v17 = vsub.f32 %v6364_v6, %v6409_v27 }
 0xb0f   :  { %v9443_v24 = vpack.c.bf16 %v6412_v44, %v6409_v27  ;;  %v6534_v15 = vsub.f32 %v6365_v7, %v6412_v44 }
 0xb10   :  { %v6528_v50 = vand.u32 4294901760, %v6527_v17 }
 0xb11   :  { %v6535_v60 = vand.u32 4294901760, %v6534_v15  ;;  %9444 = vmatprep.subr.bf16.mxu1 %v9443_v24  ;;  %v9459_v29 = vpack.c.bf16 %v6534_v15, %v6527_v17 }
 0xb12   :  { %9446 = vmatpush3.bf16.msra.mxu1 %v9443_v24  ;;  %v6529_v57 = vsub.f32 %v6527_v17, %v6528_v50 }
 0xb13   :  { %9448 = vmatprep.subr.bf16.mxu1 %v12633_v5  ;;  %v6536_v12 = vsub.f32 %v6534_v15, %v6535_v60 }
 0xb14   :  { %v6530_v40 = vand.u32 4294901760, %v6529_v57 }
 0xb15   :  { %8362 = vmatmul.mubr.f32.vlgmr.msra.gmra.mrb[42].mxu1 %v6485_v22  ;;  %v6537_v53 = vand.u32 4294901760, %v6536_v12 }
 0xb16   :  { %9450 = vmatpush3.bf16.msra.mxu1 %v12633_v5  ;;  %8364 = vmatprep.mubr.f32.mxu1 %v6495_v26 }
 0xb17   :  { %v9451_v49 = vpack.c.bf16 %v6537_v53, %v6530_v40 }
 0xb19   :  { %8365 = vmatmul.mubr.f32.gmra.mrb[44].mxu1 %v6505_v38  ;;  %9452 = vmatprep.subr.bf16.mxu1 %v9451_v49 }
 0xb1a   :  { %9454 = vmatpush3.bf16.msra.mxu1 %v9451_v49  ;;  %8375 = vmatprep.mubr.f32.mxu1 %v12760_v36 }
 0xb1b   :  { %9456 = vmatprep.subr.bf16.mxu1 %v12626_v48 }
 0xb1d   :  { %8376 = vmatmul.mubr.f32.vlgmr.msra.gmra.mrb[42].mxu1 %v12784_v54 }
 0xb1e   :  { %9458 = vmatpush3.bf16.msra.mxu1 %v12626_v48  ;;  %8378 = vmatprep.mubr.f32.mxu1 %v12787_v58  ;;  %v9475_v48 = vpack.c.bf16 %v6535_v60, %v6528_v50 }
 0xb1f   :  { %9460 = vmatprep.subr.bf16.mxu1 %v9459_v29 }
 0xb21   :  { %8379 = vmatmul.mubr.f32.gmra.mrb[44].mxu1 %v12792_v30 }
 0xb22   :  { %9462 = vmatpush3.bf16.msra.mxu1 %v9459_v29  ;;  %8389 = vmatprep.mubr.f32.mxu1 %v12763_v14 }
 0xb23   :  { %9464 = vmatprep.subr.bf16.mxu1 %v12623_v32 }
 0xb25   :  { %8390 = vmatmul.mubr.f32.vlgmr.msra.gmra.mrb[42].mxu1 %v6482_v18 }
 0xb26   :  { %9466 = vmatpush3.bf16.msra.mxu1 %v12623_v32  ;;  %8392 = vmatprep.mubr.f32.mxu1 %v6492_v51 }
 0xb27   :  { %9468 = vmatprep.subr.bf16.mxu1 %v9443_v24 }
 0xb29   :  { %8393 = vmatmul.mubr.f32.gmra.mrb[44].mxu1 %v6502_v21 }
 0xb2a   :  { %9470 = vmatpush3.bf16.msra.mxu1 %v9443_v24  ;;  %8403 = vmatprep.mubr.f32.mxu1 %v6473_v11 }
 0xb2b   :  { %9472 = vmatprep.subr.bf16.mxu1 %v12629_v16 }
 0xb2d   :  { %8404 = vmatmul.mubr.f32.vlgmr.msra.gmra.mrb[42].mxu1 %v6483_v20 }
 0xb2e   :  { %9474 = vmatpush3.bf16.msra.mxu1 %v12629_v16  ;;  %8406 = vmatprep.mubr.f32.mxu1 %v6493_v8  ;;  %v6373_v16 = vpop.permute.xlu1 %6372 }
 0xb2f   :  { %9476 = vmatprep.subr.bf16.mxu1 %v9475_v48 }
 0xb31   :  { %8407 = vmatmul.mubr.f32.gmra.mrb[44].mxu1 %v6503_v56 }
 0xb32   :  { %9478 = vmatpush3.bf16.msra.mxu1 %v9475_v48  ;;  %8417 = vmatprep.mubr.f32.mxu1 %v12760_v36  ;;  %v6378_v5 = vpop.permute.xlu1 %6377 }
 0xb33   :  { %9480 = vmatprep.subr.bf16.mxu1 %v12623_v32 }
 0xb35   :  { %8418 = vmatmul.mubr.f32.vlgmr.msra.gmra.mrb[42].mxu1 %v12784_v54 }
 0xb36   :  { %9482 = vmatpush3.bf16.msra.mxu1 %v12623_v32  ;;  %8420 = vmatprep.mubr.f32.mxu1 %v12787_v58  ;;  %v6383_v11 = vpop.permute.xlu1 %6382 }
 0xb37   :  { %9484 = vmatprep.subr.bf16.mxu1 %v9443_v24 }
 0xb39   :  { %8421 = vmatmul.mubr.f32.gmra.mrb[44].mxu1 %v12792_v30 }
 0xb3a   :  { %9486 = vmatpush3.bf16.msra.mxu1 %v9443_v24  ;;  %8431 = vmatprep.mubr.f32.mxu1 %v12760_v36  ;;  %v6388_v0 = vpop.permute.xlu1 %6387 }
 0xb3d   :  { %8432 = vmatmul.mubr.f32.vlgmr.msra.gmra.mrb[42].mxu1 %v12784_v54 }
 0xb3e   :  { %8434 = vmatprep.mubr.f32.mxu1 %v12787_v58 }
 0xb41   :  { %8435 = vmatmul.mubr.f32.gmra.mrb[44].mxu1 %v12792_v30 }
 0xc10   :  { %v8433_v14 = vpop.f32.mrb[42].mxu1 }
 0xc11   :  { %v12821_v41 = vadd.f32 %v8433_v14, %v6378_v5  ;;  %v6994_v32 = vpop.f32.mrb[43].mxu1 }
 0xc12   :  { %v12823_v46 = vadd.f32 %v6994_v32, %v6373_v16 }
 0xc13   :  { %v7019_v35 = vsel %vm6313_vm1, %v12821_v41, 0.0  ;;  %v7029_v63 = vmul.f32 %v12821_v41, %v12821_v41 }
 0xc14   :  { %7020 = vadd.xlane.f32.xlu0 %v7019_v35  ;;  %v8436_v36 = vpop.f32.mrb[44].mxu1  ;;  %v7016_v1 = vsel %vm6313_vm1, %v12823_v46, 0.0  ;;  %v7028_v31 = vmul.f32 %v12823_v46, %v12823_v46 }
 0xc15   :  { %v7006_v62 = vpop.f32.mrb[45].mxu1  ;;  %7017 = vadd.xlane.f32.xlu1 %v7016_v1  ;;  %v12836_v54 = vadd.f32 %v8436_v36, %v6388_v0  ;;  %v7035_v28 = vsel %vm6313_vm1, %v7029_v63, 0.0 }
 0xc16   :  { %v7032_v37 = vsel %vm6313_vm1, %v7028_v31, 0.0  ;;  %v12834_v13 = vadd.f32 %v7006_v62, %v6383_v11 }
 0xc17   :  { %v7025_v2 = vsel %vm6313_vm1, %v12836_v54, 0.0  ;;  %v7031_v34 = vmul.f32 %v12836_v54, %v12836_v54 }
 0xc18   :  { %7033 = vadd.xlane.f32.xlu0 %v7032_v37  ;;  %v7022_v59 = vsel %vm6313_vm1, %v12834_v13, 0.0  ;;  %v7030_v58 = vmul.f32 %v12834_v13, %v12834_v13 }
 0xc19   :  { %7036 = vadd.xlane.f32.xlu1 %v7035_v28  ;;  %v7041_v33 = vsel %vm6313_vm1, %v7031_v34, 0.0 }
 0xc1a   :  { %v7038_v47 = vsel %vm6313_vm1, %v7030_v58, 0.0 }
 0xc1c   :  { %7023 = vadd.xlane.f32.xlu0 %v7022_v59 }
 0xc1d   :  { %7026 = vadd.xlane.f32.xlu1 %v7025_v2 }
 0xc20   :  { %7039 = vadd.xlane.f32.xlu0 %v7038_v47 }
 0xc21   :  { %7042 = vadd.xlane.f32.xlu1 %v7041_v33 }
 0xc32   :  { %7069 = vperm.xlu1 %9664, %v12772_v25  }
 0xc36   :  { %7065 = vperm.xlu0 %9663, %v12769_v52   ;;  %7073 = vperm.xlu1 %9664, %v12775_v4  }
 0xc3a   :  { %7077 = vperm.xlu1 %9664, %v12778_v9   ;;  %9666 = vset.pattern.permute.xlu0 %v13383_v55 }
 0xc3e   :  { %9665 = vset.pattern.permute.xlu1 %v13383_v55 }
 0xc3f   :  { %7097 = vperm.xlu1 %9665, %v12769_v52  }
 0xc43   :  { %7101 = vperm.xlu1 %9665, %v12772_v25  }
 0xc47   :  { %7105 = vperm.xlu1 %9665, %v12775_v4  }
 0xc4b   :  { %7109 = vperm.xlu1 %9665, %v12778_v9  }
 0xca1   :  { %v7021_v18 = vpop.xlane.xlu0 %7020 }
 0xca2   :  { %v7018_v30 = vpop.xlane.xlu1 %7017  ;;  %v7045_v45 = vmul.f32 0.03125, %v7021_v18 }
 0xca3   :  { %v7044_v3 = vmul.f32 0.03125, %v7018_v30 }
 0xca4   :  { %v7053_v6 = vmul.f32 %v7045_v45, %v7045_v45  ;;  %v7061_v53 = vsub.f32 %v12821_v41, %v7045_v45 }
 0xca5   :  { %v7052_v19 = vmul.f32 %v7044_v3, %v7044_v3  ;;  %v7034_v51 = vpop.xlane.xlu0 %7033  ;;  %v7060_v26 = vsub.f32 %v12823_v46, %v7044_v3 }
 0xca6   :  { %v7048_v43 = vmul.f32 0.03125, %v7034_v51  ;;  %v7037_v39 = vpop.xlane.xlu1 %7036 }
 0xca7   :  { %v7049_v20 = vmul.f32 0.03125, %v7037_v39 }
 0xca8   :  { %v7056_v10 = vsub.f32 %v7048_v43, %v7052_v19 }
 0xca9   :  { %v7024_v21 = vpop.xlane.xlu0 %7023  ;;  %v7057_v25 = vsub.f32 %v7049_v20, %v7053_v6 }
 0xcaa   :  { %v7046_v8 = vmul.f32 0.03125, %v7024_v21  ;;  %v7027_v52 = vpop.xlane.xlu1 %7026  ;;  %v7084_v7 = vadd.f32 1e-05, %v7056_v10 }
 0xcab   :  { %v7047_v44 = vmul.f32 0.03125, %v7027_v52  ;;  %v7085_v56 = vadd.f32 1e-05, %v7057_v25 }
 0xcac   :  { %v7054_v4 = vmul.f32 %v7046_v8, %v7046_v8  ;;  %9679 = vrsqrt.f32 %v7084_v7  ;;  %v7062_v14 = vsub.f32 %v12834_v13, %v7046_v8 }
 0xcad   :  { %v7040_v27 = vpop.xlane.xlu0 %7039  ;;  %v7055_v24 = vmul.f32 %v7047_v44, %v7047_v44  ;;  %9681 = vrsqrt.f32 %v7085_v56  ;;  %v7063_v31 = vsub.f32 %v12836_v54, %v7047_v44 }
 0xcae   :  { %v7050_v9 = vmul.f32 0.03125, %v7040_v27  ;;  %v7043_v42 = vpop.xlane.xlu1 %7042 }
 0xcaf   :  { %v7051_v23 = vmul.f32 0.03125, %v7043_v42 }
 0xcb0   :  { %v7058_v17 = vsub.f32 %v7050_v9, %v7054_v4 }
 0xcb1   :  { %v7059_v60 = vsub.f32 %v7051_v23, %v7055_v24 }
 0xcb2   :  { %v7070_v15 = vpop.permute.xlu1 %7069  ;;  %v7086_v50 = vadd.f32 1e-05, %v7058_v17 }
 0xcb3   :  { %v7087_v57 = vadd.f32 1e-05, %v7059_v60  ;;  %v7081_v16 = vmul.f32 %v7070_v15, %v7061_v53 }
 0xcb4   :  { %9683 = vrsqrt.f32 %v7086_v50 }
 0xcb5   :  { %v7066_v22 = vpop.permute.xlu0 %7065  ;;  %9685 = vrsqrt.f32 %v7087_v57 }
 0xcb6   :  { %v7074_v61 = vpop.permute.xlu1 %7073  ;;  %v7080_v12 = vmul.f32 %v7066_v22, %v7060_v26  ;;  %v9680_v40 = vpop.eup %9679 }
 0xcb7   :  { %v9682_v29 = vpop.eup %9681  ;;  %v7082_v46 = vmul.f32 %v7074_v61, %v7062_v14 }
 0xcb8   :  { %v7092_v49 = vmul.f32 %v9680_v40, %v7080_v12  ;;  %v7093_v32 = vmul.f32 %v9682_v29, %v7081_v16 }
 0xcba   :  { %v7078_v38 = vpop.permute.xlu1 %7077 }
 0xcbb   :  { %v7083_v0 = vmul.f32 %v7078_v38, %v7063_v31 }
 0xcbe   :  { %v7098_v48 = vpop.permute.xlu1 %7097  ;;  %v9684_v35 = vpop.eup %9683 }
 0xcbf   :  { %v7112_v5 = vadd.f32 %v7098_v48, %v7092_v49  ;;  %v7094_v62 = vmul.f32 %v9684_v35, %v7082_v46  ;;  %v9686_v41 = vpop.eup %9685 }
 0xcc0   :  { %v7095_v13 = vmul.f32 %v9686_v41, %v7083_v0 }
 0xcc1   :  { %v7116_v11 = vmax.f32 %v7112_v5, 0.0 }
 0xcc2   :  { %v7102_v36 = vpop.permute.xlu1 %7101 }
 0xcc3   :  { %7120 = vst.msk [vmem:[#allocation20] sm:$0xff] %vm6313_vm1, %v7116_v11  ;;  %v7113_v1 = vadd.f32 %v7102_v36, %v7093_v32 }
 0xcc5   :  { %v7117_v63 = vmax.f32 %v7113_v1, 0.0 }
 0xcc6   :  { %v7106_v37 = vpop.permute.xlu1 %7105 }
 0xcc7   :  { %7121 = vst.msk [vmem:[#allocation20 + $0x8] sm:$0xff] %vm6313_vm1, %v7117_v63  ;;  %v7114_v28 = vadd.f32 %v7106_v37, %v7094_v62 }
 0xcc9   :  { %v7118_v59 = vmax.f32 %v7114_v28, 0.0 }
 0xcca   :  { %v7110_v58 = vpop.permute.xlu1 %7109 }
 0xccb   :  { %7122 = vst.msk [vmem:[#allocation20 + $0x10] sm:$0xff] %vm6313_vm1, %v7118_v59  ;;  %v7115_v2 = vadd.f32 %v7110_v58, %v7095_v13 }
 0xccd   :  { %v7119_v34 = vmax.f32 %v7115_v2, 0.0 }
 0xccf   :  { %7123 = vst.msk [vmem:[#allocation20 + $0x18] sm:$0xff] %vm6313_vm1, %v7119_v34 }
 0xcd0   :  { %9944 = shalt.err (!%p9941_p8)
}
 0xcd1   :  { %s9945_s14 = scalar_lea.hbm %s12893_s11, 512 }
 0xcd2   :  { %p9946_p9 = scmp.ne.s32.totalorder %s12893_s11, %s9945_s14  ;;  %p9949_p10 = scmp.lt.u32.totalorder %s9945_s14, %s12893_s11 }
 0xcd4   :  { %p9951_p11 = pnand %p9949_p10, %p9946_p9 }
 0xcd6   :  { %9954 = shalt.err (!%p9951_p11)
}
 0xcd7   :  { %7135 = dma.vmem_to_hbm [thread:$0]  %s7130_s13, 512, %s12893_s11, [#allocation4], %s9970_s27, %s9970_s27, %s9971_s28  }
 0xcd8   :  { %9967 = dma.done.wait [#allocation4], 512  }
 0xcd9   :  { %9968 = vsyncadd [#allocation4], 4294966784 }
 0xcda   :  { %7139 = vsyncpa [#allocation3], 1 }
 0xcdb   :  { %7140 = vsyncpa [#allocation6], 1 }
 0xcdc   :  { %7141 = vsyncpa [#allocation9], 1 }
 0xcdd   :  { %7142 = vsyncpa [#allocation12], 1 }
 0xcde   :  { %7143 = vsyncpa [#allocation15], 1 }
 0xcdf   :  { %7144 = vsyncpa [#allocation18], 1 }
 0xce0   :  { %7145 = vsyncpa [#allocation4], 1 }

</bundles_post_ra>
